<compile_context>
chip_gen: v6e
topology: v6e:2x2x1
jax: 0.10.0
libtpu: 0.0.40
codegen_flags: <defaults>
</compile_context>

<pallas_src>
import functools

import jax
import jax.numpy as jnp
from jax import lax
from jax.experimental import pallas as pl
from jax.experimental.pallas import tpu as pltpu

# The reference forward hardcodes groups=21 in F.conv2d, so class_num == 21.
CLASS_NUM = 21


def _round_up(x, m):
    return (x + m - 1) // m * m


def _edge_loss_kernel(pred_ref, edge_ref, out_ref, *, h_real, w_real):
    # pred_ref: (C, Hp, Wp) logits for one image (batch dim squeezed away)
    # edge_ref: (Hp, Wp) edge target in [0, 255]
    # out_ref : (1, Wp) per-column ratio  sum_h(e*|e-ev/255|) / sum_h(e)
    c_num, hp, wp = pred_ref.shape

    # Valid-pixel mask, built ONCE per image.  Folding it into the softmax
    # normalizer below makes padded halo pixels reproduce the conv's zero
    # padding with zero extra per-channel work.
    row = lax.broadcasted_iota(jnp.int32, (hp, wp), 0)
    col = lax.broadcasted_iota(jnp.int32, (hp, wp), 1)
    mask = jnp.where((row < h_real) & (col < w_real), 1.0, 0.0)

    # ---- sweep 1: per-pixel channel max (numerically stable softmax) ----
    m = pred_ref[0].astype(jnp.float32)
    for c in range(1, c_num):
        m = jnp.maximum(m, pred_ref[c].astype(jnp.float32))

    # ---- sweep 2: softmax denominator ----
    l = jnp.zeros((hp, wp), jnp.float32)
    for c in range(c_num):
        l = l + jnp.exp(pred_ref[c].astype(jnp.float32) - m)

    # EUP approximate reciprocal + one Newton refinement (keeps ~f32 accuracy
    # for the softmax normalizer); pad mask folded in.  Per-image cost only.
    r = pl.reciprocal(l, approx=True)
    r = r * (2.0 - l * r)
    linv = mask * r

    # ---- sweep 3: softmax -> depthwise 3x3 Laplacian -> acc += |conv_c| ----
    acc = jnp.zeros((hp, wp), jnp.float32)
    for c in range(c_num):
        s = jnp.exp(pred_ref[c].astype(jnp.float32) - m) * linv   # softmax_c
        # Zero-padded 3x3 box sum via XLU rolls.  Because hp >= H+1 and
        # wp >= W+1 and halo pixels are zeroed through linv, every roll
        # wraparound reads zeros (or only pollutes halo rows/cols that are
        # masked/sliced later) -> no boundary masks in the hot loop.
        dn = pltpu.roll(s, hp - 1, axis=0)        # s[i+1]
        up = pltpu.roll(s, 1, axis=0)             # s[i-1]
        v3 = up + s + dn
        rt = pltpu.roll(v3, wp - 1, axis=1)       # v3[:, j+1]
        lf = pltpu.roll(v3, 1, axis=1)            # v3[:, j-1]
        conv = 9.0 * s - (lf + v3 + rt)           # depthwise Laplacian, chan c
        acc = acc + jnp.abs(conv)

    # ---- finalize: edge map, H-axis sums, lane-dense (1, Wp) store ----
    edge = jnp.tanh(acc) * mask        # halo rows must not leak into H-sums
    ev = edge_ref[...].astype(jnp.float32) * (1.0 / 255.0)
    num = jnp.sum(edge * jnp.abs(edge - ev), axis=0, keepdims=True)   # (1, Wp)
    den = jnp.sum(edge, axis=0, keepdims=True)                        # (1, Wp)
    out_ref[...] = num / den           # exact divide for the final ratio


def edge_loss_entropy(pred_sg_up, edge_v):
    """pred_sg_up: (N, 21, H, W) logits; edge_v: (N, 1, H, W) in [0, 255]."""
    N, C, H, W = pred_sg_up.shape
    assert C == CLASS_NUM, "groups=21 is hardcoded in the reference forward"

    # Guarantee >= 1 zero halo row/column so roll wraparounds read zeros,
    # while staying sublane(8)/lane(128) aligned (lane-dense output stores).
    hp = _round_up(H + 1, 8)
    wp = _round_up(W + 1, 128)
    pred = jnp.pad(pred_sg_up, ((0, 0), (0, 0), (0, hp - H), (0, wp - W)))
    edge = jnp.pad(edge_v, ((0, 0), (0, 0), (0, hp - H), (0, wp - W)))

    # Explicit VMEM budget (v5e default scoped limit is only 16 MiB):
    # double-buffered pred+edge blocks plus elementwise temporaries + margin.
    block_bytes = (C + 1) * hp * wp * 4
    vmem_limit = int(min(128 * 1024 * 1024,
                         max(32 * 1024 * 1024,
                             2 * block_bytes + 12 * hp * wp * 4 + (2 << 20))))
    # TODO(synk): for very large images / v7x's 64 MiB VMEM, add a channel- or
    # W-stripe grid axis (Cb=7 blocks) instead of the full (21, Hp, Wp) block.

    kernel = functools.partial(_edge_loss_kernel, h_real=H, w_real=W)
    ratio = pl.pallas_call(
        kernel,
        out_shape=jax.ShapeDtypeStruct((N, 1, wp), jnp.float32),
        grid_spec=pltpu.PrefetchScalarGridSpec(
            num_scalar_prefetch=0,
            grid=(N,),                                   # one step per image
            in_specs=[
                # full channel stack per image -> single HBM read of pred
                pl.BlockSpec((None, C, hp, wp), lambda n: (n, 0, 0, 0)),
                pl.BlockSpec((None, None, hp, wp), lambda n: (n, 0, 0, 0)),
            ],
            out_specs=pl.BlockSpec((None, 1, wp), lambda n: (n, 0, 0)),
        ),
        compiler_params=pltpu.CompilerParams(
            dimension_semantics=("parallel",),
            vmem_limit_bytes=vmem_limit),
    )(pred, edge)

    # drop padded columns (NaN-safe: 0/0 columns are sliced away) and take the
    # scalar mean over (N, W) ratios (trivial XLA glue).
    return jnp.mean(ratio[:, 0, :W])


def _reference(pred, edge_v):
    """Pure-JAX (XLA) reference matching the PyTorch forward."""
    s = jax.nn.softmax(pred, axis=1)
    k = jnp.array([[-1, -1, -1], [-1, 8, -1], [-1, -1, -1]], jnp.float32)
    w = jnp.broadcast_to(k.reshape(1, 1, 3, 3), (CLASS_NUM, 1, 3, 3))
    conv = lax.conv_general_dilated(
        s, w, window_strides=(1, 1), padding=((1, 1), (1, 1)),
        dimension_numbers=("NCHW", "OIHW", "NCHW"),
        feature_group_count=CLASS_NUM)
    edge_pred = jnp.tanh(jnp.sum(jnp.abs(conv), axis=1, keepdims=True))
    num = jnp.sum(edge_pred * jnp.abs(edge_pred - edge_v / 255.0), axis=(1, 2))
    den = jnp.sum(edge_pred, axis=(1, 2))
    return jnp.mean(num / den)


if __name__ == "__main__":
    key = jax.random.PRNGKey(0)
    k1, k2, k3, k4 = jax.random.split(key, 4)

    # primary small test (groups=21 is fixed by the module)
    N, C, H, W = 2, CLASS_NUM, 16, 16
    pred_sg_up = jax.random.normal(k1, (N, C, H, W), jnp.float32)
    edge_v = jax.random.uniform(k2, (N, 1, H, W), jnp.float32) * 255.0
    loss = edge_loss_entropy(pred_sg_up, edge_v)
    jax.block_until_ready(loss)
    ref = _reference(pred_sg_up, edge_v)
    assert jnp.allclose(loss, ref, atol=1e-5, rtol=1e-4), (loss, ref)

    # odd spatial shape exercises the pad-and-mask / halo path
    H2, W2 = 12, 20
    pred2 = jax.random.normal(k3, (N, C, H2, W2), jnp.float32)
    edge2 = jax.random.uniform(k4, (N, 1, H2, W2), jnp.float32) * 255.0
    loss2 = edge_loss_entropy(pred2, edge2)
    jax.block_until_ready(loss2)
    ref2 = _reference(pred2, edge2)
    assert jnp.allclose(loss2, ref2, atol=1e-5, rtol=1e-4), (loss2, ref2)

    print("KERNEL_OK")
</pallas_src>

<mosaic_0001>
module attributes {stable_mosaic.version = 11 : i64} {
  func.func @_edge_loss_kernel(%arg0: i32, %arg1: memref<1x21x24x128xf32, #tpu.memory_space<vmem>>, %arg2: memref<1x1x24x128xf32, #tpu.memory_space<vmem>>, %arg3: memref<1x1x128xf32, #tpu.memory_space<vmem>>) attributes {dimension_semantics = [#tpu.dimension_semantics<parallel>], iteration_bounds = array<i64: 2>, scalar_prefetch = 0 : i64, scratch_operands = 0 : i64, tpu.core_type = #tpu.core_type<tc>, window_params = [{transform_indices = @transform_0, window_bounds = array<i64: 1, 21, 24, 128>}, {transform_indices = @transform_1, window_bounds = array<i64: 1, 1, 24, 128>}, {transform_indices = @transform_2, window_bounds = array<i64: 1, 1, 128>}]} {
    %0 = tpu.iota {dimensions = array<i32: 0>} : vector<24x128xi32>
    %1 = tpu.iota {dimensions = array<i32: 1>} : vector<24x128xi32>
    %c16_i32 = arith.constant 16 : i32
    %2 = vector.broadcast %c16_i32 : i32 to vector<24x128xi32>
    %3 = arith.cmpi slt, %0, %2 : vector<24x128xi32>
    %c16_i32_0 = arith.constant 16 : i32
    %4 = vector.broadcast %c16_i32_0 : i32 to vector<24x128xi32>
    %5 = arith.cmpi slt, %1, %4 : vector<24x128xi32>
    %6 = arith.andi %3, %5 : vector<24x128xi1>
    %cst = arith.constant 1.000000e+00 : f32
    %cst_1 = arith.constant 0.000000e+00 : f32
    %7 = vector.broadcast %cst : f32 to vector<24x128xf32>
    %8 = vector.broadcast %cst_1 : f32 to vector<24x128xf32>
    %9 = arith.select %6, %7, %8 : vector<24x128xi1>, vector<24x128xf32>
    %c0 = arith.constant 0 : index
    %c0_2 = arith.constant 0 : index
    %c0_3 = arith.constant 0 : index
    %c0_4 = arith.constant 0 : index
    %10 = vector.load %arg1[%c0, %c0_2, %c0_3, %c0_4] : memref<1x21x24x128xf32, #tpu.memory_space<vmem>>, vector<1x1x24x128xf32>
    %11 = vector.shape_cast %10 : vector<1x1x24x128xf32> to vector<24x128xf32>
    %c0_5 = arith.constant 0 : index
    %c1 = arith.constant 1 : index
    %c0_6 = arith.constant 0 : index
    %c0_7 = arith.constant 0 : index
    %12 = vector.load %arg1[%c0_5, %c1, %c0_6, %c0_7] : memref<1x21x24x128xf32, #tpu.memory_space<vmem>>, vector<1x1x24x128xf32>
    %13 = vector.shape_cast %12 : vector<1x1x24x128xf32> to vector<24x128xf32>
    %14 = arith.maximumf %11, %13 : vector<24x128xf32>
    %c0_8 = arith.constant 0 : index
    %c2 = arith.constant 2 : index
    %c0_9 = arith.constant 0 : index
    %c0_10 = arith.constant 0 : index
    %15 = vector.load %arg1[%c0_8, %c2, %c0_9, %c0_10] : memref<1x21x24x128xf32, #tpu.memory_space<vmem>>, vector<1x1x24x128xf32>
    %16 = vector.shape_cast %15 : vector<1x1x24x128xf32> to vector<24x128xf32>
    %17 = arith.maximumf %14, %16 : vector<24x128xf32>
    %c0_11 = arith.constant 0 : index
    %c3 = arith.constant 3 : index
    %c0_12 = arith.constant 0 : index
    %c0_13 = arith.constant 0 : index
    %18 = vector.load %arg1[%c0_11, %c3, %c0_12, %c0_13] : memref<1x21x24x128xf32, #tpu.memory_space<vmem>>, vector<1x1x24x128xf32>
    %19 = vector.shape_cast %18 : vector<1x1x24x128xf32> to vector<24x128xf32>
    %20 = arith.maximumf %17, %19 : vector<24x128xf32>
    %c0_14 = arith.constant 0 : index
    %c4 = arith.constant 4 : index
    %c0_15 = arith.constant 0 : index
    %c0_16 = arith.constant 0 : index
    %21 = vector.load %arg1[%c0_14, %c4, %c0_15, %c0_16] : memref<1x21x24x128xf32, #tpu.memory_space<vmem>>, vector<1x1x24x128xf32>
    %22 = vector.shape_cast %21 : vector<1x1x24x128xf32> to vector<24x128xf32>
    %23 = arith.maximumf %20, %22 : vector<24x128xf32>
    %c0_17 = arith.constant 0 : index
    %c5 = arith.constant 5 : index
    %c0_18 = arith.constant 0 : index
    %c0_19 = arith.constant 0 : index
    %24 = vector.load %arg1[%c0_17, %c5, %c0_18, %c0_19] : memref<1x21x24x128xf32, #tpu.memory_space<vmem>>, vector<1x1x24x128xf32>
    %25 = vector.shape_cast %24 : vector<1x1x24x128xf32> to vector<24x128xf32>
    %26 = arith.maximumf %23, %25 : vector<24x128xf32>
    %c0_20 = arith.constant 0 : index
    %c6 = arith.constant 6 : index
    %c0_21 = arith.constant 0 : index
    %c0_22 = arith.constant 0 : index
    %27 = vector.load %arg1[%c0_20, %c6, %c0_21, %c0_22] : memref<1x21x24x128xf32, #tpu.memory_space<vmem>>, vector<1x1x24x128xf32>
    %28 = vector.shape_cast %27 : vector<1x1x24x128xf32> to vector<24x128xf32>
    %29 = arith.maximumf %26, %28 : vector<24x128xf32>
    %c0_23 = arith.constant 0 : index
    %c7 = arith.constant 7 : index
    %c0_24 = arith.constant 0 : index
    %c0_25 = arith.constant 0 : index
    %30 = vector.load %arg1[%c0_23, %c7, %c0_24, %c0_25] : memref<1x21x24x128xf32, #tpu.memory_space<vmem>>, vector<1x1x24x128xf32>
    %31 = vector.shape_cast %30 : vector<1x1x24x128xf32> to vector<24x128xf32>
    %32 = arith.maximumf %29, %31 : vector<24x128xf32>
    %c0_26 = arith.constant 0 : index
    %c8 = arith.constant 8 : index
    %c0_27 = arith.constant 0 : index
    %c0_28 = arith.constant 0 : index
    %33 = vector.load %arg1[%c0_26, %c8, %c0_27, %c0_28] : memref<1x21x24x128xf32, #tpu.memory_space<vmem>>, vector<1x1x24x128xf32>
    %34 = vector.shape_cast %33 : vector<1x1x24x128xf32> to vector<24x128xf32>
    %35 = arith.maximumf %32, %34 : vector<24x128xf32>
    %c0_29 = arith.constant 0 : index
    %c9 = arith.constant 9 : index
    %c0_30 = arith.constant 0 : index
    %c0_31 = arith.constant 0 : index
    %36 = vector.load %arg1[%c0_29, %c9, %c0_30, %c0_31] : memref<1x21x24x128xf32, #tpu.memory_space<vmem>>, vector<1x1x24x128xf32>
    %37 = vector.shape_cast %36 : vector<1x1x24x128xf32> to vector<24x128xf32>
    %38 = arith.maximumf %35, %37 : vector<24x128xf32>
    %c0_32 = arith.constant 0 : index
    %c10 = arith.constant 10 : index
    %c0_33 = arith.constant 0 : index
    %c0_34 = arith.constant 0 : index
    %39 = vector.load %arg1[%c0_32, %c10, %c0_33, %c0_34] : memref<1x21x24x128xf32, #tpu.memory_space<vmem>>, vector<1x1x24x128xf32>
    %40 = vector.shape_cast %39 : vector<1x1x24x128xf32> to vector<24x128xf32>
    %41 = arith.maximumf %38, %40 : vector<24x128xf32>
    %c0_35 = arith.constant 0 : index
    %c11 = arith.constant 11 : index
    %c0_36 = arith.constant 0 : index
    %c0_37 = arith.constant 0 : index
    %42 = vector.load %arg1[%c0_35, %c11, %c0_36, %c0_37] : memref<1x21x24x128xf32, #tpu.memory_space<vmem>>, vector<1x1x24x128xf32>
    %43 = vector.shape_cast %42 : vector<1x1x24x128xf32> to vector<24x128xf32>
    %44 = arith.maximumf %41, %43 : vector<24x128xf32>
    %c0_38 = arith.constant 0 : index
    %c12 = arith.constant 12 : index
    %c0_39 = arith.constant 0 : index
    %c0_40 = arith.constant 0 : index
    %45 = vector.load %arg1[%c0_38, %c12, %c0_39, %c0_40] : memref<1x21x24x128xf32, #tpu.memory_space<vmem>>, vector<1x1x24x128xf32>
    %46 = vector.shape_cast %45 : vector<1x1x24x128xf32> to vector<24x128xf32>
    %47 = arith.maximumf %44, %46 : vector<24x128xf32>
    %c0_41 = arith.constant 0 : index
    %c13 = arith.constant 13 : index
    %c0_42 = arith.constant 0 : index
    %c0_43 = arith.constant 0 : index
    %48 = vector.load %arg1[%c0_41, %c13, %c0_42, %c0_43] : memref<1x21x24x128xf32, #tpu.memory_space<vmem>>, vector<1x1x24x128xf32>
    %49 = vector.shape_cast %48 : vector<1x1x24x128xf32> to vector<24x128xf32>
    %50 = arith.maximumf %47, %49 : vector<24x128xf32>
    %c0_44 = arith.constant 0 : index
    %c14 = arith.constant 14 : index
    %c0_45 = arith.constant 0 : index
    %c0_46 = arith.constant 0 : index
    %51 = vector.load %arg1[%c0_44, %c14, %c0_45, %c0_46] : memref<1x21x24x128xf32, #tpu.memory_space<vmem>>, vector<1x1x24x128xf32>
    %52 = vector.shape_cast %51 : vector<1x1x24x128xf32> to vector<24x128xf32>
    %53 = arith.maximumf %50, %52 : vector<24x128xf32>
    %c0_47 = arith.constant 0 : index
    %c15 = arith.constant 15 : index
    %c0_48 = arith.constant 0 : index
    %c0_49 = arith.constant 0 : index
    %54 = vector.load %arg1[%c0_47, %c15, %c0_48, %c0_49] : memref<1x21x24x128xf32, #tpu.memory_space<vmem>>, vector<1x1x24x128xf32>
    %55 = vector.shape_cast %54 : vector<1x1x24x128xf32> to vector<24x128xf32>
    %56 = arith.maximumf %53, %55 : vector<24x128xf32>
    %c0_50 = arith.constant 0 : index
    %c16 = arith.constant 16 : index
    %c0_51 = arith.constant 0 : index
    %c0_52 = arith.constant 0 : index
    %57 = vector.load %arg1[%c0_50, %c16, %c0_51, %c0_52] : memref<1x21x24x128xf32, #tpu.memory_space<vmem>>, vector<1x1x24x128xf32>
    %58 = vector.shape_cast %57 : vector<1x1x24x128xf32> to vector<24x128xf32>
    %59 = arith.maximumf %56, %58 : vector<24x128xf32>
    %c0_53 = arith.constant 0 : index
    %c17 = arith.constant 17 : index
    %c0_54 = arith.constant 0 : index
    %c0_55 = arith.constant 0 : index
    %60 = vector.load %arg1[%c0_53, %c17, %c0_54, %c0_55] : memref<1x21x24x128xf32, #tpu.memory_space<vmem>>, vector<1x1x24x128xf32>
    %61 = vector.shape_cast %60 : vector<1x1x24x128xf32> to vector<24x128xf32>
    %62 = arith.maximumf %59, %61 : vector<24x128xf32>
    %c0_56 = arith.constant 0 : index
    %c18 = arith.constant 18 : index
    %c0_57 = arith.constant 0 : index
    %c0_58 = arith.constant 0 : index
    %63 = vector.load %arg1[%c0_56, %c18, %c0_57, %c0_58] : memref<1x21x24x128xf32, #tpu.memory_space<vmem>>, vector<1x1x24x128xf32>
    %64 = vector.shape_cast %63 : vector<1x1x24x128xf32> to vector<24x128xf32>
    %65 = arith.maximumf %62, %64 : vector<24x128xf32>
    %c0_59 = arith.constant 0 : index
    %c19 = arith.constant 19 : index
    %c0_60 = arith.constant 0 : index
    %c0_61 = arith.constant 0 : index
    %66 = vector.load %arg1[%c0_59, %c19, %c0_60, %c0_61] : memref<1x21x24x128xf32, #tpu.memory_space<vmem>>, vector<1x1x24x128xf32>
    %67 = vector.shape_cast %66 : vector<1x1x24x128xf32> to vector<24x128xf32>
    %68 = arith.maximumf %65, %67 : vector<24x128xf32>
    %c0_62 = arith.constant 0 : index
    %c20 = arith.constant 20 : index
    %c0_63 = arith.constant 0 : index
    %c0_64 = arith.constant 0 : index
    %69 = vector.load %arg1[%c0_62, %c20, %c0_63, %c0_64] : memref<1x21x24x128xf32, #tpu.memory_space<vmem>>, vector<1x1x24x128xf32>
    %70 = vector.shape_cast %69 : vector<1x1x24x128xf32> to vector<24x128xf32>
    %71 = arith.maximumf %68, %70 : vector<24x128xf32>
    %cst_65 = arith.constant 0.000000e+00 : f32
    %72 = vector.broadcast %cst_65 : f32 to vector<24x128xf32>
    %c0_66 = arith.constant 0 : index
    %c0_67 = arith.constant 0 : index
    %c0_68 = arith.constant 0 : index
    %c0_69 = arith.constant 0 : index
    %73 = vector.load %arg1[%c0_66, %c0_67, %c0_68, %c0_69] : memref<1x21x24x128xf32, #tpu.memory_space<vmem>>, vector<1x1x24x128xf32>
    %74 = vector.shape_cast %73 : vector<1x1x24x128xf32> to vector<24x128xf32>
    %75 = arith.subf %74, %71 : vector<24x128xf32>
    %76 = math.exp %75 : vector<24x128xf32>
    %77 = arith.addf %72, %76 : vector<24x128xf32>
    %c0_70 = arith.constant 0 : index
    %c1_71 = arith.constant 1 : index
    %c0_72 = arith.constant 0 : index
    %c0_73 = arith.constant 0 : index
    %78 = vector.load %arg1[%c0_70, %c1_71, %c0_72, %c0_73] : memref<1x21x24x128xf32, #tpu.memory_space<vmem>>, vector<1x1x24x128xf32>
    %79 = vector.shape_cast %78 : vector<1x1x24x128xf32> to vector<24x128xf32>
    %80 = arith.subf %79, %71 : vector<24x128xf32>
    %81 = math.exp %80 : vector<24x128xf32>
    %82 = arith.addf %77, %81 : vector<24x128xf32>
    %c0_74 = arith.constant 0 : index
    %c2_75 = arith.constant 2 : index
    %c0_76 = arith.constant 0 : index
    %c0_77 = arith.constant 0 : index
    %83 = vector.load %arg1[%c0_74, %c2_75, %c0_76, %c0_77] : memref<1x21x24x128xf32, #tpu.memory_space<vmem>>, vector<1x1x24x128xf32>
    %84 = vector.shape_cast %83 : vector<1x1x24x128xf32> to vector<24x128xf32>
    %85 = arith.subf %84, %71 : vector<24x128xf32>
    %86 = math.exp %85 : vector<24x128xf32>
    %87 = arith.addf %82, %86 : vector<24x128xf32>
    %c0_78 = arith.constant 0 : index
    %c3_79 = arith.constant 3 : index
    %c0_80 = arith.constant 0 : index
    %c0_81 = arith.constant 0 : index
    %88 = vector.load %arg1[%c0_78, %c3_79, %c0_80, %c0_81] : memref<1x21x24x128xf32, #tpu.memory_space<vmem>>, vector<1x1x24x128xf32>
    %89 = vector.shape_cast %88 : vector<1x1x24x128xf32> to vector<24x128xf32>
    %90 = arith.subf %89, %71 : vector<24x128xf32>
    %91 = math.exp %90 : vector<24x128xf32>
    %92 = arith.addf %87, %91 : vector<24x128xf32>
    %c0_82 = arith.constant 0 : index
    %c4_83 = arith.constant 4 : index
    %c0_84 = arith.constant 0 : index
    %c0_85 = arith.constant 0 : index
    %93 = vector.load %arg1[%c0_82, %c4_83, %c0_84, %c0_85] : memref<1x21x24x128xf32, #tpu.memory_space<vmem>>, vector<1x1x24x128xf32>
    %94 = vector.shape_cast %93 : vector<1x1x24x128xf32> to vector<24x128xf32>
    %95 = arith.subf %94, %71 : vector<24x128xf32>
    %96 = math.exp %95 : vector<24x128xf32>
    %97 = arith.addf %92, %96 : vector<24x128xf32>
    %c0_86 = arith.constant 0 : index
    %c5_87 = arith.constant 5 : index
    %c0_88 = arith.constant 0 : index
    %c0_89 = arith.constant 0 : index
    %98 = vector.load %arg1[%c0_86, %c5_87, %c0_88, %c0_89] : memref<1x21x24x128xf32, #tpu.memory_space<vmem>>, vector<1x1x24x128xf32>
    %99 = vector.shape_cast %98 : vector<1x1x24x128xf32> to vector<24x128xf32>
    %100 = arith.subf %99, %71 : vector<24x128xf32>
    %101 = math.exp %100 : vector<24x128xf32>
    %102 = arith.addf %97, %101 : vector<24x128xf32>
    %c0_90 = arith.constant 0 : index
    %c6_91 = arith.constant 6 : index
    %c0_92 = arith.constant 0 : index
    %c0_93 = arith.constant 0 : index
    %103 = vector.load %arg1[%c0_90, %c6_91, %c0_92, %c0_93] : memref<1x21x24x128xf32, #tpu.memory_space<vmem>>, vector<1x1x24x128xf32>
    %104 = vector.shape_cast %103 : vector<1x1x24x128xf32> to vector<24x128xf32>
    %105 = arith.subf %104, %71 : vector<24x128xf32>
    %106 = math.exp %105 : vector<24x128xf32>
    %107 = arith.addf %102, %106 : vector<24x128xf32>
    %c0_94 = arith.constant 0 : index
    %c7_95 = arith.constant 7 : index
    %c0_96 = arith.constant 0 : index
    %c0_97 = arith.constant 0 : index
    %108 = vector.load %arg1[%c0_94, %c7_95, %c0_96, %c0_97] : memref<1x21x24x128xf32, #tpu.memory_space<vmem>>, vector<1x1x24x128xf32>
    %109 = vector.shape_cast %108 : vector<1x1x24x128xf32> to vector<24x128xf32>
    %110 = arith.subf %109, %71 : vector<24x128xf32>
    %111 = math.exp %110 : vector<24x128xf32>
    %112 = arith.addf %107, %111 : vector<24x128xf32>
    %c0_98 = arith.constant 0 : index
    %c8_99 = arith.constant 8 : index
    %c0_100 = arith.constant 0 : index
    %c0_101 = arith.constant 0 : index
    %113 = vector.load %arg1[%c0_98, %c8_99, %c0_100, %c0_101] : memref<1x21x24x128xf32, #tpu.memory_space<vmem>>, vector<1x1x24x128xf32>
    %114 = vector.shape_cast %113 : vector<1x1x24x128xf32> to vector<24x128xf32>
    %115 = arith.subf %114, %71 : vector<24x128xf32>
    %116 = math.exp %115 : vector<24x128xf32>
    %117 = arith.addf %112, %116 : vector<24x128xf32>
    %c0_102 = arith.constant 0 : index
    %c9_103 = arith.constant 9 : index
    %c0_104 = arith.constant 0 : index
    %c0_105 = arith.constant 0 : index
    %118 = vector.load %arg1[%c0_102, %c9_103, %c0_104, %c0_105] : memref<1x21x24x128xf32, #tpu.memory_space<vmem>>, vector<1x1x24x128xf32>
    %119 = vector.shape_cast %118 : vector<1x1x24x128xf32> to vector<24x128xf32>
    %120 = arith.subf %119, %71 : vector<24x128xf32>
    %121 = math.exp %120 : vector<24x128xf32>
    %122 = arith.addf %117, %121 : vector<24x128xf32>
    %c0_106 = arith.constant 0 : index
    %c10_107 = arith.constant 10 : index
    %c0_108 = arith.constant 0 : index
    %c0_109 = arith.constant 0 : index
    %123 = vector.load %arg1[%c0_106, %c10_107, %c0_108, %c0_109] : memref<1x21x24x128xf32, #tpu.memory_space<vmem>>, vector<1x1x24x128xf32>
    %124 = vector.shape_cast %123 : vector<1x1x24x128xf32> to vector<24x128xf32>
    %125 = arith.subf %124, %71 : vector<24x128xf32>
    %126 = math.exp %125 : vector<24x128xf32>
    %127 = arith.addf %122, %126 : vector<24x128xf32>
    %c0_110 = arith.constant 0 : index
    %c11_111 = arith.constant 11 : index
    %c0_112 = arith.constant 0 : index
    %c0_113 = arith.constant 0 : index
    %128 = vector.load %arg1[%c0_110, %c11_111, %c0_112, %c0_113] : memref<1x21x24x128xf32, #tpu.memory_space<vmem>>, vector<1x1x24x128xf32>
    %129 = vector.shape_cast %128 : vector<1x1x24x128xf32> to vector<24x128xf32>
    %130 = arith.subf %129, %71 : vector<24x128xf32>
    %131 = math.exp %130 : vector<24x128xf32>
    %132 = arith.addf %127, %131 : vector<24x128xf32>
    %c0_114 = arith.constant 0 : index
    %c12_115 = arith.constant 12 : index
    %c0_116 = arith.constant 0 : index
    %c0_117 = arith.constant 0 : index
    %133 = vector.load %arg1[%c0_114, %c12_115, %c0_116, %c0_117] : memref<1x21x24x128xf32, #tpu.memory_space<vmem>>, vector<1x1x24x128xf32>
    %134 = vector.shape_cast %133 : vector<1x1x24x128xf32> to vector<24x128xf32>
    %135 = arith.subf %134, %71 : vector<24x128xf32>
    %136 = math.exp %135 : vector<24x128xf32>
    %137 = arith.addf %132, %136 : vector<24x128xf32>
    %c0_118 = arith.constant 0 : index
    %c13_119 = arith.constant 13 : index
    %c0_120 = arith.constant 0 : index
    %c0_121 = arith.constant 0 : index
    %138 = vector.load %arg1[%c0_118, %c13_119, %c0_120, %c0_121] : memref<1x21x24x128xf32, #tpu.memory_space<vmem>>, vector<1x1x24x128xf32>
    %139 = vector.shape_cast %138 : vector<1x1x24x128xf32> to vector<24x128xf32>
    %140 = arith.subf %139, %71 : vector<24x128xf32>
    %141 = math.exp %140 : vector<24x128xf32>
    %142 = arith.addf %137, %141 : vector<24x128xf32>
    %c0_122 = arith.constant 0 : index
    %c14_123 = arith.constant 14 : index
    %c0_124 = arith.constant 0 : index
    %c0_125 = arith.constant 0 : index
    %143 = vector.load %arg1[%c0_122, %c14_123, %c0_124, %c0_125] : memref<1x21x24x128xf32, #tpu.memory_space<vmem>>, vector<1x1x24x128xf32>
    %144 = vector.shape_cast %143 : vector<1x1x24x128xf32> to vector<24x128xf32>
    %145 = arith.subf %144, %71 : vector<24x128xf32>
    %146 = math.exp %145 : vector<24x128xf32>
    %147 = arith.addf %142, %146 : vector<24x128xf32>
    %c0_126 = arith.constant 0 : index
    %c15_127 = arith.constant 15 : index
    %c0_128 = arith.constant 0 : index
    %c0_129 = arith.constant 0 : index
    %148 = vector.load %arg1[%c0_126, %c15_127, %c0_128, %c0_129] : memref<1x21x24x128xf32, #tpu.memory_space<vmem>>, vector<1x1x24x128xf32>
    %149 = vector.shape_cast %148 : vector<1x1x24x128xf32> to vector<24x128xf32>
    %150 = arith.subf %149, %71 : vector<24x128xf32>
    %151 = math.exp %150 : vector<24x128xf32>
    %152 = arith.addf %147, %151 : vector<24x128xf32>
    %c0_130 = arith.constant 0 : index
    %c16_131 = arith.constant 16 : index
    %c0_132 = arith.constant 0 : index
    %c0_133 = arith.constant 0 : index
    %153 = vector.load %arg1[%c0_130, %c16_131, %c0_132, %c0_133] : memref<1x21x24x128xf32, #tpu.memory_space<vmem>>, vector<1x1x24x128xf32>
    %154 = vector.shape_cast %153 : vector<1x1x24x128xf32> to vector<24x128xf32>
    %155 = arith.subf %154, %71 : vector<24x128xf32>
    %156 = math.exp %155 : vector<24x128xf32>
    %157 = arith.addf %152, %156 : vector<24x128xf32>
    %c0_134 = arith.constant 0 : index
    %c17_135 = arith.constant 17 : index
    %c0_136 = arith.constant 0 : index
    %c0_137 = arith.constant 0 : index
    %158 = vector.load %arg1[%c0_134, %c17_135, %c0_136, %c0_137] : memref<1x21x24x128xf32, #tpu.memory_space<vmem>>, vector<1x1x24x128xf32>
    %159 = vector.shape_cast %158 : vector<1x1x24x128xf32> to vector<24x128xf32>
    %160 = arith.subf %159, %71 : vector<24x128xf32>
    %161 = math.exp %160 : vector<24x128xf32>
    %162 = arith.addf %157, %161 : vector<24x128xf32>
    %c0_138 = arith.constant 0 : index
    %c18_139 = arith.constant 18 : index
    %c0_140 = arith.constant 0 : index
    %c0_141 = arith.constant 0 : index
    %163 = vector.load %arg1[%c0_138, %c18_139, %c0_140, %c0_141] : memref<1x21x24x128xf32, #tpu.memory_space<vmem>>, vector<1x1x24x128xf32>
    %164 = vector.shape_cast %163 : vector<1x1x24x128xf32> to vector<24x128xf32>
    %165 = arith.subf %164, %71 : vector<24x128xf32>
    %166 = math.exp %165 : vector<24x128xf32>
    %167 = arith.addf %162, %166 : vector<24x128xf32>
    %c0_142 = arith.constant 0 : index
    %c19_143 = arith.constant 19 : index
    %c0_144 = arith.constant 0 : index
    %c0_145 = arith.constant 0 : index
    %168 = vector.load %arg1[%c0_142, %c19_143, %c0_144, %c0_145] : memref<1x21x24x128xf32, #tpu.memory_space<vmem>>, vector<1x1x24x128xf32>
    %169 = vector.shape_cast %168 : vector<1x1x24x128xf32> to vector<24x128xf32>
    %170 = arith.subf %169, %71 : vector<24x128xf32>
    %171 = math.exp %170 : vector<24x128xf32>
    %172 = arith.addf %167, %171 : vector<24x128xf32>
    %c0_146 = arith.constant 0 : index
    %c20_147 = arith.constant 20 : index
    %c0_148 = arith.constant 0 : index
    %c0_149 = arith.constant 0 : index
    %173 = vector.load %arg1[%c0_146, %c20_147, %c0_148, %c0_149] : memref<1x21x24x128xf32, #tpu.memory_space<vmem>>, vector<1x1x24x128xf32>
    %174 = vector.shape_cast %173 : vector<1x1x24x128xf32> to vector<24x128xf32>
    %175 = arith.subf %174, %71 : vector<24x128xf32>
    %176 = math.exp %175 : vector<24x128xf32>
    %177 = arith.addf %172, %176 : vector<24x128xf32>
    %178 = tpu.reciprocal %177 {approx = true} : vector<24x128xf32> -> vector<24x128xf32>
    %179 = arith.mulf %177, %178 : vector<24x128xf32>
    %cst_150 = arith.constant 2.000000e+00 : f32
    %180 = vector.broadcast %cst_150 : f32 to vector<24x128xf32>
    %181 = arith.subf %180, %179 : vector<24x128xf32>
    %182 = arith.mulf %178, %181 : vector<24x128xf32>
    %183 = arith.mulf %9, %182 : vector<24x128xf32>
    %cst_151 = arith.constant 0.000000e+00 : f32
    %184 = vector.broadcast %cst_151 : f32 to vector<24x128xf32>
    %c0_152 = arith.constant 0 : index
    %c0_153 = arith.constant 0 : index
    %c0_154 = arith.constant 0 : index
    %c0_155 = arith.constant 0 : index
    %185 = vector.load %arg1[%c0_152, %c0_153, %c0_154, %c0_155] : memref<1x21x24x128xf32, #tpu.memory_space<vmem>>, vector<1x1x24x128xf32>
    %186 = vector.shape_cast %185 : vector<1x1x24x128xf32> to vector<24x128xf32>
    %187 = arith.subf %186, %71 : vector<24x128xf32>
    %188 = math.exp %187 : vector<24x128xf32>
    %189 = arith.mulf %188, %183 : vector<24x128xf32>
    %c23_i32 = arith.constant 23 : i32
    %190 = tpu.dynamic_rotate %189 by %c23_i32 dim 0 : vector<24x128xf32>, i32 -> vector<24x128xf32>
    %c1_i32 = arith.constant 1 : i32
    %191 = tpu.dynamic_rotate %189 by %c1_i32 dim 0 : vector<24x128xf32>, i32 -> vector<24x128xf32>
    %192 = arith.addf %191, %189 : vector<24x128xf32>
    %193 = arith.addf %192, %190 : vector<24x128xf32>
    %c127_i32 = arith.constant 127 : i32
    %194 = tpu.dynamic_rotate %193 by %c127_i32 dim 1 : vector<24x128xf32>, i32 -> vector<24x128xf32>
    %c1_i32_156 = arith.constant 1 : i32
    %195 = tpu.dynamic_rotate %193 by %c1_i32_156 dim 1 : vector<24x128xf32>, i32 -> vector<24x128xf32>
    %cst_157 = arith.constant 9.000000e+00 : f32
    %196 = vector.broadcast %cst_157 : f32 to vector<24x128xf32>
    %197 = arith.mulf %196, %189 : vector<24x128xf32>
    %198 = arith.addf %195, %193 : vector<24x128xf32>
    %199 = arith.addf %198, %194 : vector<24x128xf32>
    %200 = arith.subf %197, %199 : vector<24x128xf32>
    %201 = math.absf %200 : vector<24x128xf32>
    %202 = arith.addf %184, %201 : vector<24x128xf32>
    %c0_158 = arith.constant 0 : index
    %c1_159 = arith.constant 1 : index
    %c0_160 = arith.constant 0 : index
    %c0_161 = arith.constant 0 : index
    %203 = vector.load %arg1[%c0_158, %c1_159, %c0_160, %c0_161] : memref<1x21x24x128xf32, #tpu.memory_space<vmem>>, vector<1x1x24x128xf32>
    %204 = vector.shape_cast %203 : vector<1x1x24x128xf32> to vector<24x128xf32>
    %205 = arith.subf %204, %71 : vector<24x128xf32>
    %206 = math.exp %205 : vector<24x128xf32>
    %207 = arith.mulf %206, %183 : vector<24x128xf32>
    %c23_i32_162 = arith.constant 23 : i32
    %208 = tpu.dynamic_rotate %207 by %c23_i32_162 dim 0 : vector<24x128xf32>, i32 -> vector<24x128xf32>
    %c1_i32_163 = arith.constant 1 : i32
    %209 = tpu.dynamic_rotate %207 by %c1_i32_163 dim 0 : vector<24x128xf32>, i32 -> vector<24x128xf32>
    %210 = arith.addf %209, %207 : vector<24x128xf32>
    %211 = arith.addf %210, %208 : vector<24x128xf32>
    %c127_i32_164 = arith.constant 127 : i32
    %212 = tpu.dynamic_rotate %211 by %c127_i32_164 dim 1 : vector<24x128xf32>, i32 -> vector<24x128xf32>
    %c1_i32_165 = arith.constant 1 : i32
    %213 = tpu.dynamic_rotate %211 by %c1_i32_165 dim 1 : vector<24x128xf32>, i32 -> vector<24x128xf32>
    %cst_166 = arith.constant 9.000000e+00 : f32
    %214 = vector.broadcast %cst_166 : f32 to vector<24x128xf32>
    %215 = arith.mulf %214, %207 : vector<24x128xf32>
    %216 = arith.addf %213, %211 : vector<24x128xf32>
    %217 = arith.addf %216, %212 : vector<24x128xf32>
    %218 = arith.subf %215, %217 : vector<24x128xf32>
    %219 = math.absf %218 : vector<24x128xf32>
    %220 = arith.addf %202, %219 : vector<24x128xf32>
    %c0_167 = arith.constant 0 : index
    %c2_168 = arith.constant 2 : index
    %c0_169 = arith.constant 0 : index
    %c0_170 = arith.constant 0 : index
    %221 = vector.load %arg1[%c0_167, %c2_168, %c0_169, %c0_170] : memref<1x21x24x128xf32, #tpu.memory_space<vmem>>, vector<1x1x24x128xf32>
    %222 = vector.shape_cast %221 : vector<1x1x24x128xf32> to vector<24x128xf32>
    %223 = arith.subf %222, %71 : vector<24x128xf32>
    %224 = math.exp %223 : vector<24x128xf32>
    %225 = arith.mulf %224, %183 : vector<24x128xf32>
    %c23_i32_171 = arith.constant 23 : i32
    %226 = tpu.dynamic_rotate %225 by %c23_i32_171 dim 0 : vector<24x128xf32>, i32 -> vector<24x128xf32>
    %c1_i32_172 = arith.constant 1 : i32
    %227 = tpu.dynamic_rotate %225 by %c1_i32_172 dim 0 : vector<24x128xf32>, i32 -> vector<24x128xf32>
    %228 = arith.addf %227, %225 : vector<24x128xf32>
    %229 = arith.addf %228, %226 : vector<24x128xf32>
    %c127_i32_173 = arith.constant 127 : i32
    %230 = tpu.dynamic_rotate %229 by %c127_i32_173 dim 1 : vector<24x128xf32>, i32 -> vector<24x128xf32>
    %c1_i32_174 = arith.constant 1 : i32
    %231 = tpu.dynamic_rotate %229 by %c1_i32_174 dim 1 : vector<24x128xf32>, i32 -> vector<24x128xf32>
    %cst_175 = arith.constant 9.000000e+00 : f32
    %232 = vector.broadcast %cst_175 : f32 to vector<24x128xf32>
    %233 = arith.mulf %232, %225 : vector<24x128xf32>
    %234 = arith.addf %231, %229 : vector<24x128xf32>
    %235 = arith.addf %234, %230 : vector<24x128xf32>
    %236 = arith.subf %233, %235 : vector<24x128xf32>
    %237 = math.absf %236 : vector<24x128xf32>
    %238 = arith.addf %220, %237 : vector<24x128xf32>
    %c0_176 = arith.constant 0 : index
    %c3_177 = arith.constant 3 : index
    %c0_178 = arith.constant 0 : index
    %c0_179 = arith.constant 0 : index
    %239 = vector.load %arg1[%c0_176, %c3_177, %c0_178, %c0_179] : memref<1x21x24x128xf32, #tpu.memory_space<vmem>>, vector<1x1x24x128xf32>
    %240 = vector.shape_cast %239 : vector<1x1x24x128xf32> to vector<24x128xf32>
    %241 = arith.subf %240, %71 : vector<24x128xf32>
    %242 = math.exp %241 : vector<24x128xf32>
    %243 = arith.mulf %242, %183 : vector<24x128xf32>
    %c23_i32_180 = arith.constant 23 : i32
    %244 = tpu.dynamic_rotate %243 by %c23_i32_180 dim 0 : vector<24x128xf32>, i32 -> vector<24x128xf32>
    %c1_i32_181 = arith.constant 1 : i32
    %245 = tpu.dynamic_rotate %243 by %c1_i32_181 dim 0 : vector<24x128xf32>, i32 -> vector<24x128xf32>
    %246 = arith.addf %245, %243 : vector<24x128xf32>
    %247 = arith.addf %246, %244 : vector<24x128xf32>
    %c127_i32_182 = arith.constant 127 : i32
    %248 = tpu.dynamic_rotate %247 by %c127_i32_182 dim 1 : vector<24x128xf32>, i32 -> vector<24x128xf32>
    %c1_i32_183 = arith.constant 1 : i32
    %249 = tpu.dynamic_rotate %247 by %c1_i32_183 dim 1 : vector<24x128xf32>, i32 -> vector<24x128xf32>
    %cst_184 = arith.constant 9.000000e+00 : f32
    %250 = vector.broadcast %cst_184 : f32 to vector<24x128xf32>
    %251 = arith.mulf %250, %243 : vector<24x128xf32>
    %252 = arith.addf %249, %247 : vector<24x128xf32>
    %253 = arith.addf %252, %248 : vector<24x128xf32>
    %254 = arith.subf %251, %253 : vector<24x128xf32>
    %255 = math.absf %254 : vector<24x128xf32>
    %256 = arith.addf %238, %255 : vector<24x128xf32>
    %c0_185 = arith.constant 0 : index
    %c4_186 = arith.constant 4 : index
    %c0_187 = arith.constant 0 : index
    %c0_188 = arith.constant 0 : index
    %257 = vector.load %arg1[%c0_185, %c4_186, %c0_187, %c0_188] : memref<1x21x24x128xf32, #tpu.memory_space<vmem>>, vector<1x1x24x128xf32>
    %258 = vector.shape_cast %257 : vector<1x1x24x128xf32> to vector<24x128xf32>
    %259 = arith.subf %258, %71 : vector<24x128xf32>
    %260 = math.exp %259 : vector<24x128xf32>
    %261 = arith.mulf %260, %183 : vector<24x128xf32>
    %c23_i32_189 = arith.constant 23 : i32
    %262 = tpu.dynamic_rotate %261 by %c23_i32_189 dim 0 : vector<24x128xf32>, i32 -> vector<24x128xf32>
    %c1_i32_190 = arith.constant 1 : i32
    %263 = tpu.dynamic_rotate %261 by %c1_i32_190 dim 0 : vector<24x128xf32>, i32 -> vector<24x128xf32>
    %264 = arith.addf %263, %261 : vector<24x128xf32>
    %265 = arith.addf %264, %262 : vector<24x128xf32>
    %c127_i32_191 = arith.constant 127 : i32
    %266 = tpu.dynamic_rotate %265 by %c127_i32_191 dim 1 : vector<24x128xf32>, i32 -> vector<24x128xf32>
    %c1_i32_192 = arith.constant 1 : i32
    %267 = tpu.dynamic_rotate %265 by %c1_i32_192 dim 1 : vector<24x128xf32>, i32 -> vector<24x128xf32>
    %cst_193 = arith.constant 9.000000e+00 : f32
    %268 = vector.broadcast %cst_193 : f32 to vector<24x128xf32>
    %269 = arith.mulf %268, %261 : vector<24x128xf32>
    %270 = arith.addf %267, %265 : vector<24x128xf32>
    %271 = arith.addf %270, %266 : vector<24x128xf32>
    %272 = arith.subf %269, %271 : vector<24x128xf32>
    %273 = math.absf %272 : vector<24x128xf32>
    %274 = arith.addf %256, %273 : vector<24x128xf32>
    %c0_194 = arith.constant 0 : index
    %c5_195 = arith.constant 5 : index
    %c0_196 = arith.constant 0 : index
    %c0_197 = arith.constant 0 : index
    %275 = vector.load %arg1[%c0_194, %c5_195, %c0_196, %c0_197] : memref<1x21x24x128xf32, #tpu.memory_space<vmem>>, vector<1x1x24x128xf32>
    %276 = vector.shape_cast %275 : vector<1x1x24x128xf32> to vector<24x128xf32>
    %277 = arith.subf %276, %71 : vector<24x128xf32>
    %278 = math.exp %277 : vector<24x128xf32>
    %279 = arith.mulf %278, %183 : vector<24x128xf32>
    %c23_i32_198 = arith.constant 23 : i32
    %280 = tpu.dynamic_rotate %279 by %c23_i32_198 dim 0 : vector<24x128xf32>, i32 -> vector<24x128xf32>
    %c1_i32_199 = arith.constant 1 : i32
    %281 = tpu.dynamic_rotate %279 by %c1_i32_199 dim 0 : vector<24x128xf32>, i32 -> vector<24x128xf32>
    %282 = arith.addf %281, %279 : vector<24x128xf32>
    %283 = arith.addf %282, %280 : vector<24x128xf32>
    %c127_i32_200 = arith.constant 127 : i32
    %284 = tpu.dynamic_rotate %283 by %c127_i32_200 dim 1 : vector<24x128xf32>, i32 -> vector<24x128xf32>
    %c1_i32_201 = arith.constant 1 : i32
    %285 = tpu.dynamic_rotate %283 by %c1_i32_201 dim 1 : vector<24x128xf32>, i32 -> vector<24x128xf32>
    %cst_202 = arith.constant 9.000000e+00 : f32
    %286 = vector.broadcast %cst_202 : f32 to vector<24x128xf32>
    %287 = arith.mulf %286, %279 : vector<24x128xf32>
    %288 = arith.addf %285, %283 : vector<24x128xf32>
    %289 = arith.addf %288, %284 : vector<24x128xf32>
    %290 = arith.subf %287, %289 : vector<24x128xf32>
    %291 = math.absf %290 : vector<24x128xf32>
    %292 = arith.addf %274, %291 : vector<24x128xf32>
    %c0_203 = arith.constant 0 : index
    %c6_204 = arith.constant 6 : index
    %c0_205 = arith.constant 0 : index
    %c0_206 = arith.constant 0 : index
    %293 = vector.load %arg1[%c0_203, %c6_204, %c0_205, %c0_206] : memref<1x21x24x128xf32, #tpu.memory_space<vmem>>, vector<1x1x24x128xf32>
    %294 = vector.shape_cast %293 : vector<1x1x24x128xf32> to vector<24x128xf32>
    %295 = arith.subf %294, %71 : vector<24x128xf32>
    %296 = math.exp %295 : vector<24x128xf32>
    %297 = arith.mulf %296, %183 : vector<24x128xf32>
    %c23_i32_207 = arith.constant 23 : i32
    %298 = tpu.dynamic_rotate %297 by %c23_i32_207 dim 0 : vector<24x128xf32>, i32 -> vector<24x128xf32>
    %c1_i32_208 = arith.constant 1 : i32
    %299 = tpu.dynamic_rotate %297 by %c1_i32_208 dim 0 : vector<24x128xf32>, i32 -> vector<24x128xf32>
    %300 = arith.addf %299, %297 : vector<24x128xf32>
    %301 = arith.addf %300, %298 : vector<24x128xf32>
    %c127_i32_209 = arith.constant 127 : i32
    %302 = tpu.dynamic_rotate %301 by %c127_i32_209 dim 1 : vector<24x128xf32>, i32 -> vector<24x128xf32>
    %c1_i32_210 = arith.constant 1 : i32
    %303 = tpu.dynamic_rotate %301 by %c1_i32_210 dim 1 : vector<24x128xf32>, i32 -> vector<24x128xf32>
    %cst_211 = arith.constant 9.000000e+00 : f32
    %304 = vector.broadcast %cst_211 : f32 to vector<24x128xf32>
    %305 = arith.mulf %304, %297 : vector<24x128xf32>
    %306 = arith.addf %303, %301 : vector<24x128xf32>
    %307 = arith.addf %306, %302 : vector<24x128xf32>
    %308 = arith.subf %305, %307 : vector<24x128xf32>
    %309 = math.absf %308 : vector<24x128xf32>
    %310 = arith.addf %292, %309 : vector<24x128xf32>
    %c0_212 = arith.constant 0 : index
    %c7_213 = arith.constant 7 : index
    %c0_214 = arith.constant 0 : index
    %c0_215 = arith.constant 0 : index
    %311 = vector.load %arg1[%c0_212, %c7_213, %c0_214, %c0_215] : memref<1x21x24x128xf32, #tpu.memory_space<vmem>>, vector<1x1x24x128xf32>
    %312 = vector.shape_cast %311 : vector<1x1x24x128xf32> to vector<24x128xf32>
    %313 = arith.subf %312, %71 : vector<24x128xf32>
    %314 = math.exp %313 : vector<24x128xf32>
    %315 = arith.mulf %314, %183 : vector<24x128xf32>
    %c23_i32_216 = arith.constant 23 : i32
    %316 = tpu.dynamic_rotate %315 by %c23_i32_216 dim 0 : vector<24x128xf32>, i32 -> vector<24x128xf32>
    %c1_i32_217 = arith.constant 1 : i32
    %317 = tpu.dynamic_rotate %315 by %c1_i32_217 dim 0 : vector<24x128xf32>, i32 -> vector<24x128xf32>
    %318 = arith.addf %317, %315 : vector<24x128xf32>
    %319 = arith.addf %318, %316 : vector<24x128xf32>
    %c127_i32_218 = arith.constant 127 : i32
    %320 = tpu.dynamic_rotate %319 by %c127_i32_218 dim 1 : vector<24x128xf32>, i32 -> vector<24x128xf32>
    %c1_i32_219 = arith.constant 1 : i32
    %321 = tpu.dynamic_rotate %319 by %c1_i32_219 dim 1 : vector<24x128xf32>, i32 -> vector<24x128xf32>
    %cst_220 = arith.constant 9.000000e+00 : f32
    %322 = vector.broadcast %cst_220 : f32 to vector<24x128xf32>
    %323 = arith.mulf %322, %315 : vector<24x128xf32>
    %324 = arith.addf %321, %319 : vector<24x128xf32>
    %325 = arith.addf %324, %320 : vector<24x128xf32>
    %326 = arith.subf %323, %325 : vector<24x128xf32>
    %327 = math.absf %326 : vector<24x128xf32>
    %328 = arith.addf %310, %327 : vector<24x128xf32>
    %c0_221 = arith.constant 0 : index
    %c8_222 = arith.constant 8 : index
    %c0_223 = arith.constant 0 : index
    %c0_224 = arith.constant 0 : index
    %329 = vector.load %arg1[%c0_221, %c8_222, %c0_223, %c0_224] : memref<1x21x24x128xf32, #tpu.memory_space<vmem>>, vector<1x1x24x128xf32>
    %330 = vector.shape_cast %329 : vector<1x1x24x128xf32> to vector<24x128xf32>
    %331 = arith.subf %330, %71 : vector<24x128xf32>
    %332 = math.exp %331 : vector<24x128xf32>
    %333 = arith.mulf %332, %183 : vector<24x128xf32>
    %c23_i32_225 = arith.constant 23 : i32
    %334 = tpu.dynamic_rotate %333 by %c23_i32_225 dim 0 : vector<24x128xf32>, i32 -> vector<24x128xf32>
    %c1_i32_226 = arith.constant 1 : i32
    %335 = tpu.dynamic_rotate %333 by %c1_i32_226 dim 0 : vector<24x128xf32>, i32 -> vector<24x128xf32>
    %336 = arith.addf %335, %333 : vector<24x128xf32>
    %337 = arith.addf %336, %334 : vector<24x128xf32>
    %c127_i32_227 = arith.constant 127 : i32
    %338 = tpu.dynamic_rotate %337 by %c127_i32_227 dim 1 : vector<24x128xf32>, i32 -> vector<24x128xf32>
    %c1_i32_228 = arith.constant 1 : i32
    %339 = tpu.dynamic_rotate %337 by %c1_i32_228 dim 1 : vector<24x128xf32>, i32 -> vector<24x128xf32>
    %cst_229 = arith.constant 9.000000e+00 : f32
    %340 = vector.broadcast %cst_229 : f32 to vector<24x128xf32>
    %341 = arith.mulf %340, %333 : vector<24x128xf32>
    %342 = arith.addf %339, %337 : vector<24x128xf32>
    %343 = arith.addf %342, %338 : vector<24x128xf32>
    %344 = arith.subf %341, %343 : vector<24x128xf32>
    %345 = math.absf %344 : vector<24x128xf32>
    %346 = arith.addf %328, %345 : vector<24x128xf32>
    %c0_230 = arith.constant 0 : index
    %c9_231 = arith.constant 9 : index
    %c0_232 = arith.constant 0 : index
    %c0_233 = arith.constant 0 : index
    %347 = vector.load %arg1[%c0_230, %c9_231, %c0_232, %c0_233] : memref<1x21x24x128xf32, #tpu.memory_space<vmem>>, vector<1x1x24x128xf32>
    %348 = vector.shape_cast %347 : vector<1x1x24x128xf32> to vector<24x128xf32>
    %349 = arith.subf %348, %71 : vector<24x128xf32>
    %350 = math.exp %349 : vector<24x128xf32>
    %351 = arith.mulf %350, %183 : vector<24x128xf32>
    %c23_i32_234 = arith.constant 23 : i32
    %352 = tpu.dynamic_rotate %351 by %c23_i32_234 dim 0 : vector<24x128xf32>, i32 -> vector<24x128xf32>
    %c1_i32_235 = arith.constant 1 : i32
    %353 = tpu.dynamic_rotate %351 by %c1_i32_235 dim 0 : vector<24x128xf32>, i32 -> vector<24x128xf32>
    %354 = arith.addf %353, %351 : vector<24x128xf32>
    %355 = arith.addf %354, %352 : vector<24x128xf32>
    %c127_i32_236 = arith.constant 127 : i32
    %356 = tpu.dynamic_rotate %355 by %c127_i32_236 dim 1 : vector<24x128xf32>, i32 -> vector<24x128xf32>
    %c1_i32_237 = arith.constant 1 : i32
    %357 = tpu.dynamic_rotate %355 by %c1_i32_237 dim 1 : vector<24x128xf32>, i32 -> vector<24x128xf32>
    %cst_238 = arith.constant 9.000000e+00 : f32
    %358 = vector.broadcast %cst_238 : f32 to vector<24x128xf32>
    %359 = arith.mulf %358, %351 : vector<24x128xf32>
    %360 = arith.addf %357, %355 : vector<24x128xf32>
    %361 = arith.addf %360, %356 : vector<24x128xf32>
    %362 = arith.subf %359, %361 : vector<24x128xf32>
    %363 = math.absf %362 : vector<24x128xf32>
    %364 = arith.addf %346, %363 : vector<24x128xf32>
    %c0_239 = arith.constant 0 : index
    %c10_240 = arith.constant 10 : index
    %c0_241 = arith.constant 0 : index
    %c0_242 = arith.constant 0 : index
    %365 = vector.load %arg1[%c0_239, %c10_240, %c0_241, %c0_242] : memref<1x21x24x128xf32, #tpu.memory_space<vmem>>, vector<1x1x24x128xf32>
    %366 = vector.shape_cast %365 : vector<1x1x24x128xf32> to vector<24x128xf32>
    %367 = arith.subf %366, %71 : vector<24x128xf32>
    %368 = math.exp %367 : vector<24x128xf32>
    %369 = arith.mulf %368, %183 : vector<24x128xf32>
    %c23_i32_243 = arith.constant 23 : i32
    %370 = tpu.dynamic_rotate %369 by %c23_i32_243 dim 0 : vector<24x128xf32>, i32 -> vector<24x128xf32>
    %c1_i32_244 = arith.constant 1 : i32
    %371 = tpu.dynamic_rotate %369 by %c1_i32_244 dim 0 : vector<24x128xf32>, i32 -> vector<24x128xf32>
    %372 = arith.addf %371, %369 : vector<24x128xf32>
    %373 = arith.addf %372, %370 : vector<24x128xf32>
    %c127_i32_245 = arith.constant 127 : i32
    %374 = tpu.dynamic_rotate %373 by %c127_i32_245 dim 1 : vector<24x128xf32>, i32 -> vector<24x128xf32>
    %c1_i32_246 = arith.constant 1 : i32
    %375 = tpu.dynamic_rotate %373 by %c1_i32_246 dim 1 : vector<24x128xf32>, i32 -> vector<24x128xf32>
    %cst_247 = arith.constant 9.000000e+00 : f32
    %376 = vector.broadcast %cst_247 : f32 to vector<24x128xf32>
    %377 = arith.mulf %376, %369 : vector<24x128xf32>
    %378 = arith.addf %375, %373 : vector<24x128xf32>
    %379 = arith.addf %378, %374 : vector<24x128xf32>
    %380 = arith.subf %377, %379 : vector<24x128xf32>
    %381 = math.absf %380 : vector<24x128xf32>
    %382 = arith.addf %364, %381 : vector<24x128xf32>
    %c0_248 = arith.constant 0 : index
    %c11_249 = arith.constant 11 : index
    %c0_250 = arith.constant 0 : index
    %c0_251 = arith.constant 0 : index
    %383 = vector.load %arg1[%c0_248, %c11_249, %c0_250, %c0_251] : memref<1x21x24x128xf32, #tpu.memory_space<vmem>>, vector<1x1x24x128xf32>
    %384 = vector.shape_cast %383 : vector<1x1x24x128xf32> to vector<24x128xf32>
    %385 = arith.subf %384, %71 : vector<24x128xf32>
    %386 = math.exp %385 : vector<24x128xf32>
    %387 = arith.mulf %386, %183 : vector<24x128xf32>
    %c23_i32_252 = arith.constant 23 : i32
    %388 = tpu.dynamic_rotate %387 by %c23_i32_252 dim 0 : vector<24x128xf32>, i32 -> vector<24x128xf32>
    %c1_i32_253 = arith.constant 1 : i32
    %389 = tpu.dynamic_rotate %387 by %c1_i32_253 dim 0 : vector<24x128xf32>, i32 -> vector<24x128xf32>
    %390 = arith.addf %389, %387 : vector<24x128xf32>
    %391 = arith.addf %390, %388 : vector<24x128xf32>
    %c127_i32_254 = arith.constant 127 : i32
    %392 = tpu.dynamic_rotate %391 by %c127_i32_254 dim 1 : vector<24x128xf32>, i32 -> vector<24x128xf32>
    %c1_i32_255 = arith.constant 1 : i32
    %393 = tpu.dynamic_rotate %391 by %c1_i32_255 dim 1 : vector<24x128xf32>, i32 -> vector<24x128xf32>
    %cst_256 = arith.constant 9.000000e+00 : f32
    %394 = vector.broadcast %cst_256 : f32 to vector<24x128xf32>
    %395 = arith.mulf %394, %387 : vector<24x128xf32>
    %396 = arith.addf %393, %391 : vector<24x128xf32>
    %397 = arith.addf %396, %392 : vector<24x128xf32>
    %398 = arith.subf %395, %397 : vector<24x128xf32>
    %399 = math.absf %398 : vector<24x128xf32>
    %400 = arith.addf %382, %399 : vector<24x128xf32>
    %c0_257 = arith.constant 0 : index
    %c12_258 = arith.constant 12 : index
    %c0_259 = arith.constant 0 : index
    %c0_260 = arith.constant 0 : index
    %401 = vector.load %arg1[%c0_257, %c12_258, %c0_259, %c0_260] : memref<1x21x24x128xf32, #tpu.memory_space<vmem>>, vector<1x1x24x128xf32>
    %402 = vector.shape_cast %401 : vector<1x1x24x128xf32> to vector<24x128xf32>
    %403 = arith.subf %402, %71 : vector<24x128xf32>
    %404 = math.exp %403 : vector<24x128xf32>
    %405 = arith.mulf %404, %183 : vector<24x128xf32>
    %c23_i32_261 = arith.constant 23 : i32
    %406 = tpu.dynamic_rotate %405 by %c23_i32_261 dim 0 : vector<24x128xf32>, i32 -> vector<24x128xf32>
    %c1_i32_262 = arith.constant 1 : i32
    %407 = tpu.dynamic_rotate %405 by %c1_i32_262 dim 0 : vector<24x128xf32>, i32 -> vector<24x128xf32>
    %408 = arith.addf %407, %405 : vector<24x128xf32>
    %409 = arith.addf %408, %406 : vector<24x128xf32>
    %c127_i32_263 = arith.constant 127 : i32
    %410 = tpu.dynamic_rotate %409 by %c127_i32_263 dim 1 : vector<24x128xf32>, i32 -> vector<24x128xf32>
    %c1_i32_264 = arith.constant 1 : i32
    %411 = tpu.dynamic_rotate %409 by %c1_i32_264 dim 1 : vector<24x128xf32>, i32 -> vector<24x128xf32>
    %cst_265 = arith.constant 9.000000e+00 : f32
    %412 = vector.broadcast %cst_265 : f32 to vector<24x128xf32>
    %413 = arith.mulf %412, %405 : vector<24x128xf32>
    %414 = arith.addf %411, %409 : vector<24x128xf32>
    %415 = arith.addf %414, %410 : vector<24x128xf32>
    %416 = arith.subf %413, %415 : vector<24x128xf32>
    %417 = math.absf %416 : vector<24x128xf32>
    %418 = arith.addf %400, %417 : vector<24x128xf32>
    %c0_266 = arith.constant 0 : index
    %c13_267 = arith.constant 13 : index
    %c0_268 = arith.constant 0 : index
    %c0_269 = arith.constant 0 : index
    %419 = vector.load %arg1[%c0_266, %c13_267, %c0_268, %c0_269] : memref<1x21x24x128xf32, #tpu.memory_space<vmem>>, vector<1x1x24x128xf32>
    %420 = vector.shape_cast %419 : vector<1x1x24x128xf32> to vector<24x128xf32>
    %421 = arith.subf %420, %71 : vector<24x128xf32>
    %422 = math.exp %421 : vector<24x128xf32>
    %423 = arith.mulf %422, %183 : vector<24x128xf32>
    %c23_i32_270 = arith.constant 23 : i32
    %424 = tpu.dynamic_rotate %423 by %c23_i32_270 dim 0 : vector<24x128xf32>, i32 -> vector<24x128xf32>
    %c1_i32_271 = arith.constant 1 : i32
    %425 = tpu.dynamic_rotate %423 by %c1_i32_271 dim 0 : vector<24x128xf32>, i32 -> vector<24x128xf32>
    %426 = arith.addf %425, %423 : vector<24x128xf32>
    %427 = arith.addf %426, %424 : vector<24x128xf32>
    %c127_i32_272 = arith.constant 127 : i32
    %428 = tpu.dynamic_rotate %427 by %c127_i32_272 dim 1 : vector<24x128xf32>, i32 -> vector<24x128xf32>
    %c1_i32_273 = arith.constant 1 : i32
    %429 = tpu.dynamic_rotate %427 by %c1_i32_273 dim 1 : vector<24x128xf32>, i32 -> vector<24x128xf32>
    %cst_274 = arith.constant 9.000000e+00 : f32
    %430 = vector.broadcast %cst_274 : f32 to vector<24x128xf32>
    %431 = arith.mulf %430, %423 : vector<24x128xf32>
    %432 = arith.addf %429, %427 : vector<24x128xf32>
    %433 = arith.addf %432, %428 : vector<24x128xf32>
    %434 = arith.subf %431, %433 : vector<24x128xf32>
    %435 = math.absf %434 : vector<24x128xf32>
    %436 = arith.addf %418, %435 : vector<24x128xf32>
    %c0_275 = arith.constant 0 : index
    %c14_276 = arith.constant 14 : index
    %c0_277 = arith.constant 0 : index
    %c0_278 = arith.constant 0 : index
    %437 = vector.load %arg1[%c0_275, %c14_276, %c0_277, %c0_278] : memref<1x21x24x128xf32, #tpu.memory_space<vmem>>, vector<1x1x24x128xf32>
    %438 = vector.shape_cast %437 : vector<1x1x24x128xf32> to vector<24x128xf32>
    %439 = arith.subf %438, %71 : vector<24x128xf32>
    %440 = math.exp %439 : vector<24x128xf32>
    %441 = arith.mulf %440, %183 : vector<24x128xf32>
    %c23_i32_279 = arith.constant 23 : i32
    %442 = tpu.dynamic_rotate %441 by %c23_i32_279 dim 0 : vector<24x128xf32>, i32 -> vector<24x128xf32>
    %c1_i32_280 = arith.constant 1 : i32
    %443 = tpu.dynamic_rotate %441 by %c1_i32_280 dim 0 : vector<24x128xf32>, i32 -> vector<24x128xf32>
    %444 = arith.addf %443, %441 : vector<24x128xf32>
    %445 = arith.addf %444, %442 : vector<24x128xf32>
    %c127_i32_281 = arith.constant 127 : i32
    %446 = tpu.dynamic_rotate %445 by %c127_i32_281 dim 1 : vector<24x128xf32>, i32 -> vector<24x128xf32>
    %c1_i32_282 = arith.constant 1 : i32
    %447 = tpu.dynamic_rotate %445 by %c1_i32_282 dim 1 : vector<24x128xf32>, i32 -> vector<24x128xf32>
    %cst_283 = arith.constant 9.000000e+00 : f32
    %448 = vector.broadcast %cst_283 : f32 to vector<24x128xf32>
    %449 = arith.mulf %448, %441 : vector<24x128xf32>
    %450 = arith.addf %447, %445 : vector<24x128xf32>
    %451 = arith.addf %450, %446 : vector<24x128xf32>
    %452 = arith.subf %449, %451 : vector<24x128xf32>
    %453 = math.absf %452 : vector<24x128xf32>
    %454 = arith.addf %436, %453 : vector<24x128xf32>
    %c0_284 = arith.constant 0 : index
    %c15_285 = arith.constant 15 : index
    %c0_286 = arith.constant 0 : index
    %c0_287 = arith.constant 0 : index
    %455 = vector.load %arg1[%c0_284, %c15_285, %c0_286, %c0_287] : memref<1x21x24x128xf32, #tpu.memory_space<vmem>>, vector<1x1x24x128xf32>
    %456 = vector.shape_cast %455 : vector<1x1x24x128xf32> to vector<24x128xf32>
    %457 = arith.subf %456, %71 : vector<24x128xf32>
    %458 = math.exp %457 : vector<24x128xf32>
    %459 = arith.mulf %458, %183 : vector<24x128xf32>
    %c23_i32_288 = arith.constant 23 : i32
    %460 = tpu.dynamic_rotate %459 by %c23_i32_288 dim 0 : vector<24x128xf32>, i32 -> vector<24x128xf32>
    %c1_i32_289 = arith.constant 1 : i32
    %461 = tpu.dynamic_rotate %459 by %c1_i32_289 dim 0 : vector<24x128xf32>, i32 -> vector<24x128xf32>
    %462 = arith.addf %461, %459 : vector<24x128xf32>
    %463 = arith.addf %462, %460 : vector<24x128xf32>
    %c127_i32_290 = arith.constant 127 : i32
    %464 = tpu.dynamic_rotate %463 by %c127_i32_290 dim 1 : vector<24x128xf32>, i32 -> vector<24x128xf32>
    %c1_i32_291 = arith.constant 1 : i32
    %465 = tpu.dynamic_rotate %463 by %c1_i32_291 dim 1 : vector<24x128xf32>, i32 -> vector<24x128xf32>
    %cst_292 = arith.constant 9.000000e+00 : f32
    %466 = vector.broadcast %cst_292 : f32 to vector<24x128xf32>
    %467 = arith.mulf %466, %459 : vector<24x128xf32>
    %468 = arith.addf %465, %463 : vector<24x128xf32>
    %469 = arith.addf %468, %464 : vector<24x128xf32>
    %470 = arith.subf %467, %469 : vector<24x128xf32>
    %471 = math.absf %470 : vector<24x128xf32>
    %472 = arith.addf %454, %471 : vector<24x128xf32>
    %c0_293 = arith.constant 0 : index
    %c16_294 = arith.constant 16 : index
    %c0_295 = arith.constant 0 : index
    %c0_296 = arith.constant 0 : index
    %473 = vector.load %arg1[%c0_293, %c16_294, %c0_295, %c0_296] : memref<1x21x24x128xf32, #tpu.memory_space<vmem>>, vector<1x1x24x128xf32>
    %474 = vector.shape_cast %473 : vector<1x1x24x128xf32> to vector<24x128xf32>
    %475 = arith.subf %474, %71 : vector<24x128xf32>
    %476 = math.exp %475 : vector<24x128xf32>
    %477 = arith.mulf %476, %183 : vector<24x128xf32>
    %c23_i32_297 = arith.constant 23 : i32
    %478 = tpu.dynamic_rotate %477 by %c23_i32_297 dim 0 : vector<24x128xf32>, i32 -> vector<24x128xf32>
    %c1_i32_298 = arith.constant 1 : i32
    %479 = tpu.dynamic_rotate %477 by %c1_i32_298 dim 0 : vector<24x128xf32>, i32 -> vector<24x128xf32>
    %480 = arith.addf %479, %477 : vector<24x128xf32>
    %481 = arith.addf %480, %478 : vector<24x128xf32>
    %c127_i32_299 = arith.constant 127 : i32
    %482 = tpu.dynamic_rotate %481 by %c127_i32_299 dim 1 : vector<24x128xf32>, i32 -> vector<24x128xf32>
    %c1_i32_300 = arith.constant 1 : i32
    %483 = tpu.dynamic_rotate %481 by %c1_i32_300 dim 1 : vector<24x128xf32>, i32 -> vector<24x128xf32>
    %cst_301 = arith.constant 9.000000e+00 : f32
    %484 = vector.broadcast %cst_301 : f32 to vector<24x128xf32>
    %485 = arith.mulf %484, %477 : vector<24x128xf32>
    %486 = arith.addf %483, %481 : vector<24x128xf32>
    %487 = arith.addf %486, %482 : vector<24x128xf32>
    %488 = arith.subf %485, %487 : vector<24x128xf32>
    %489 = math.absf %488 : vector<24x128xf32>
    %490 = arith.addf %472, %489 : vector<24x128xf32>
    %c0_302 = arith.constant 0 : index
    %c17_303 = arith.constant 17 : index
    %c0_304 = arith.constant 0 : index
    %c0_305 = arith.constant 0 : index
    %491 = vector.load %arg1[%c0_302, %c17_303, %c0_304, %c0_305] : memref<1x21x24x128xf32, #tpu.memory_space<vmem>>, vector<1x1x24x128xf32>
    %492 = vector.shape_cast %491 : vector<1x1x24x128xf32> to vector<24x128xf32>
    %493 = arith.subf %492, %71 : vector<24x128xf32>
    %494 = math.exp %493 : vector<24x128xf32>
    %495 = arith.mulf %494, %183 : vector<24x128xf32>
    %c23_i32_306 = arith.constant 23 : i32
    %496 = tpu.dynamic_rotate %495 by %c23_i32_306 dim 0 : vector<24x128xf32>, i32 -> vector<24x128xf32>
    %c1_i32_307 = arith.constant 1 : i32
    %497 = tpu.dynamic_rotate %495 by %c1_i32_307 dim 0 : vector<24x128xf32>, i32 -> vector<24x128xf32>
    %498 = arith.addf %497, %495 : vector<24x128xf32>
    %499 = arith.addf %498, %496 : vector<24x128xf32>
    %c127_i32_308 = arith.constant 127 : i32
    %500 = tpu.dynamic_rotate %499 by %c127_i32_308 dim 1 : vector<24x128xf32>, i32 -> vector<24x128xf32>
    %c1_i32_309 = arith.constant 1 : i32
    %501 = tpu.dynamic_rotate %499 by %c1_i32_309 dim 1 : vector<24x128xf32>, i32 -> vector<24x128xf32>
    %cst_310 = arith.constant 9.000000e+00 : f32
    %502 = vector.broadcast %cst_310 : f32 to vector<24x128xf32>
    %503 = arith.mulf %502, %495 : vector<24x128xf32>
    %504 = arith.addf %501, %499 : vector<24x128xf32>
    %505 = arith.addf %504, %500 : vector<24x128xf32>
    %506 = arith.subf %503, %505 : vector<24x128xf32>
    %507 = math.absf %506 : vector<24x128xf32>
    %508 = arith.addf %490, %507 : vector<24x128xf32>
    %c0_311 = arith.constant 0 : index
    %c18_312 = arith.constant 18 : index
    %c0_313 = arith.constant 0 : index
    %c0_314 = arith.constant 0 : index
    %509 = vector.load %arg1[%c0_311, %c18_312, %c0_313, %c0_314] : memref<1x21x24x128xf32, #tpu.memory_space<vmem>>, vector<1x1x24x128xf32>
    %510 = vector.shape_cast %509 : vector<1x1x24x128xf32> to vector<24x128xf32>
    %511 = arith.subf %510, %71 : vector<24x128xf32>
    %512 = math.exp %511 : vector<24x128xf32>
    %513 = arith.mulf %512, %183 : vector<24x128xf32>
    %c23_i32_315 = arith.constant 23 : i32
    %514 = tpu.dynamic_rotate %513 by %c23_i32_315 dim 0 : vector<24x128xf32>, i32 -> vector<24x128xf32>
    %c1_i32_316 = arith.constant 1 : i32
    %515 = tpu.dynamic_rotate %513 by %c1_i32_316 dim 0 : vector<24x128xf32>, i32 -> vector<24x128xf32>
    %516 = arith.addf %515, %513 : vector<24x128xf32>
    %517 = arith.addf %516, %514 : vector<24x128xf32>
    %c127_i32_317 = arith.constant 127 : i32
    %518 = tpu.dynamic_rotate %517 by %c127_i32_317 dim 1 : vector<24x128xf32>, i32 -> vector<24x128xf32>
    %c1_i32_318 = arith.constant 1 : i32
    %519 = tpu.dynamic_rotate %517 by %c1_i32_318 dim 1 : vector<24x128xf32>, i32 -> vector<24x128xf32>
    %cst_319 = arith.constant 9.000000e+00 : f32
    %520 = vector.broadcast %cst_319 : f32 to vector<24x128xf32>
    %521 = arith.mulf %520, %513 : vector<24x128xf32>
    %522 = arith.addf %519, %517 : vector<24x128xf32>
    %523 = arith.addf %522, %518 : vector<24x128xf32>
    %524 = arith.subf %521, %523 : vector<24x128xf32>
    %525 = math.absf %524 : vector<24x128xf32>
    %526 = arith.addf %508, %525 : vector<24x128xf32>
    %c0_320 = arith.constant 0 : index
    %c19_321 = arith.constant 19 : index
    %c0_322 = arith.constant 0 : index
    %c0_323 = arith.constant 0 : index
    %527 = vector.load %arg1[%c0_320, %c19_321, %c0_322, %c0_323] : memref<1x21x24x128xf32, #tpu.memory_space<vmem>>, vector<1x1x24x128xf32>
    %528 = vector.shape_cast %527 : vector<1x1x24x128xf32> to vector<24x128xf32>
    %529 = arith.subf %528, %71 : vector<24x128xf32>
    %530 = math.exp %529 : vector<24x128xf32>
    %531 = arith.mulf %530, %183 : vector<24x128xf32>
    %c23_i32_324 = arith.constant 23 : i32
    %532 = tpu.dynamic_rotate %531 by %c23_i32_324 dim 0 : vector<24x128xf32>, i32 -> vector<24x128xf32>
    %c1_i32_325 = arith.constant 1 : i32
    %533 = tpu.dynamic_rotate %531 by %c1_i32_325 dim 0 : vector<24x128xf32>, i32 -> vector<24x128xf32>
    %534 = arith.addf %533, %531 : vector<24x128xf32>
    %535 = arith.addf %534, %532 : vector<24x128xf32>
    %c127_i32_326 = arith.constant 127 : i32
    %536 = tpu.dynamic_rotate %535 by %c127_i32_326 dim 1 : vector<24x128xf32>, i32 -> vector<24x128xf32>
    %c1_i32_327 = arith.constant 1 : i32
    %537 = tpu.dynamic_rotate %535 by %c1_i32_327 dim 1 : vector<24x128xf32>, i32 -> vector<24x128xf32>
    %cst_328 = arith.constant 9.000000e+00 : f32
    %538 = vector.broadcast %cst_328 : f32 to vector<24x128xf32>
    %539 = arith.mulf %538, %531 : vector<24x128xf32>
    %540 = arith.addf %537, %535 : vector<24x128xf32>
    %541 = arith.addf %540, %536 : vector<24x128xf32>
    %542 = arith.subf %539, %541 : vector<24x128xf32>
    %543 = math.absf %542 : vector<24x128xf32>
    %544 = arith.addf %526, %543 : vector<24x128xf32>
    %c0_329 = arith.constant 0 : index
    %c20_330 = arith.constant 20 : index
    %c0_331 = arith.constant 0 : index
    %c0_332 = arith.constant 0 : index
    %545 = vector.load %arg1[%c0_329, %c20_330, %c0_331, %c0_332] : memref<1x21x24x128xf32, #tpu.memory_space<vmem>>, vector<1x1x24x128xf32>
    %546 = vector.shape_cast %545 : vector<1x1x24x128xf32> to vector<24x128xf32>
    %547 = arith.subf %546, %71 : vector<24x128xf32>
    %548 = math.exp %547 : vector<24x128xf32>
    %549 = arith.mulf %548, %183 : vector<24x128xf32>
    %c23_i32_333 = arith.constant 23 : i32
    %550 = tpu.dynamic_rotate %549 by %c23_i32_333 dim 0 : vector<24x128xf32>, i32 -> vector<24x128xf32>
    %c1_i32_334 = arith.constant 1 : i32
    %551 = tpu.dynamic_rotate %549 by %c1_i32_334 dim 0 : vector<24x128xf32>, i32 -> vector<24x128xf32>
    %552 = arith.addf %551, %549 : vector<24x128xf32>
    %553 = arith.addf %552, %550 : vector<24x128xf32>
    %c127_i32_335 = arith.constant 127 : i32
    %554 = tpu.dynamic_rotate %553 by %c127_i32_335 dim 1 : vector<24x128xf32>, i32 -> vector<24x128xf32>
    %c1_i32_336 = arith.constant 1 : i32
    %555 = tpu.dynamic_rotate %553 by %c1_i32_336 dim 1 : vector<24x128xf32>, i32 -> vector<24x128xf32>
    %cst_337 = arith.constant 9.000000e+00 : f32
    %556 = vector.broadcast %cst_337 : f32 to vector<24x128xf32>
    %557 = arith.mulf %556, %549 : vector<24x128xf32>
    %558 = arith.addf %555, %553 : vector<24x128xf32>
    %559 = arith.addf %558, %554 : vector<24x128xf32>
    %560 = arith.subf %557, %559 : vector<24x128xf32>
    %561 = math.absf %560 : vector<24x128xf32>
    %562 = arith.addf %544, %561 : vector<24x128xf32>
    %563 = math.tanh %562 : vector<24x128xf32>
    %564 = arith.mulf %563, %9 : vector<24x128xf32>
    %c0_338 = arith.constant 0 : index
    %c0_339 = arith.constant 0 : index
    %c0_340 = arith.constant 0 : index
    %c0_341 = arith.constant 0 : index
    %565 = vector.load %arg2[%c0_338, %c0_339, %c0_340, %c0_341] : memref<1x1x24x128xf32, #tpu.memory_space<vmem>>, vector<1x1x24x128xf32>
    %566 = vector.shape_cast %565 : vector<1x1x24x128xf32> to vector<24x128xf32>
    %cst_342 = arith.constant 0.00392156886 : f32
    %567 = vector.broadcast %cst_342 : f32 to vector<24x128xf32>
    %568 = arith.mulf %566, %567 : vector<24x128xf32>
    %569 = arith.subf %564, %568 : vector<24x128xf32>
    %570 = math.absf %569 : vector<24x128xf32>
    %571 = arith.mulf %564, %570 : vector<24x128xf32>
    %cst_343 = arith.constant dense<0.000000e+00> : vector<128xf32>
    %572 = vector.multi_reduction <add>, %571, %cst_343 [0] : vector<24x128xf32> to vector<128xf32>
    %573 = vector.shape_cast %572 : vector<128xf32> to vector<1x128xf32>
    %cst_344 = arith.constant dense<0.000000e+00> : vector<128xf32>
    %574 = vector.multi_reduction <add>, %564, %cst_344 [0] : vector<24x128xf32> to vector<128xf32>
    %575 = vector.shape_cast %574 : vector<128xf32> to vector<1x128xf32>
    %576 = arith.divf %573, %575 : vector<1x128xf32>
    %c0_345 = arith.constant 0 : index
    %c0_346 = arith.constant 0 : index
    %c0_347 = arith.constant 0 : index
    %577 = vector.load %arg3[%c0_345, %c0_346, %c0_347] : memref<1x1x128xf32, #tpu.memory_space<vmem>>, vector<1x1x128xf32>
    %578 = vector.shape_cast %577 : vector<1x1x128xf32> to vector<1x128xf32>
    %579 = vector.shape_cast %576 : vector<1x128xf32> to vector<1x1x128xf32>
    tpu.vector_store %arg3[%c0_345, %c0_346, %c0_347], %579 {strides = array<i32>} : memref<1x1x128xf32, #tpu.memory_space<vmem>>, vector<1x1x128xf32>,
    return
  }
  func.func @transform_0(%arg0: i32) -> (i32, i32, i32, i32) {
    %c0_i32 = arith.constant 0 : i32
    %c0_i32_0 = arith.constant 0 : i32
    %c0_i32_1 = arith.constant 0 : i32
    %c0_i32_2 = arith.constant 0 : i32
    return %arg0, %c0_i32, %c0_i32_0, %c0_i32_1 : i32, i32, i32, i32
  }
  func.func @transform_1(%arg0: i32) -> (i32, i32, i32, i32) {
    %c0_i32 = arith.constant 0 : i32
    %c0_i32_0 = arith.constant 0 : i32
    %c0_i32_1 = arith.constant 0 : i32
    %c0_i32_2 = arith.constant 0 : i32
    return %arg0, %c0_i32, %c0_i32_0, %c0_i32_1 : i32, i32, i32, i32
  }
  func.func @transform_2(%arg0: i32) -> (i32, i32, i32) {
    %c0_i32 = arith.constant 0 : i32
    %c0_i32_0 = arith.constant 0 : i32
    %c0_i32_1 = arith.constant 0 : i32
    return %arg0, %c0_i32, %c0_i32_0 : i32, i32, i32
  }
}

</mosaic_0001>

<bundles_post_ra>
// kernel: tpu_custom_call.1
= control target key start
LH: loop header
LB: loop body
LE: loop exit
PB: predicated region body
PF: predicated region fallthrough
CT: control target
= control target key end

     0   :  { %7 = vsyncpa [#allocation3], 0  ;;  %s4332_s0 = inlined_call_operand.hbm [shape: f32[2,21,24,128], index: 0, kind: input, shape index: {}]   ;;  %s4333_s1 = inlined_call_operand.hbm [shape: f32[2,1,24,128], index: 1, kind: input, shape index: {}]   ;;  %s4334_s2 = inlined_call_operand.hbm [shape: f32[2,1,128], index: 2, kind: output, shape index: {}]  }
   0x1   :  { %9 = vsyncpa [#allocation3 + $0x1], 0 }
   0x2   :  { %10 = vsyncpa [#allocation6], 0 }
   0x3   :  { %12 = vsyncpa [#allocation6 + $0x1], 0 }
   0x4   :  { %13 = vsyncpa [#allocation4], 0 }
   0x5   :  { %15 = vsyncpa [#allocation4 + $0x1], 0  ;;  %s2262_s9 = smov 0   ;;  %s2264_s10 = smov 0  }
   0x6   :  { %s2266_s11 = smov 0   ;;  %s2268_s12 = smov 0  }
   0x7 LB: > { %s2283_s13 = sadd.s32 4294967295, %s2237_s12   ;;  %s1842_s14 = sadd.s32 4294967294, %s2237_s12   ;;  %s2237_s12 = sphi %s2268_s12, %s4678_s12   ;;  %s2233_s11 = sphi %s2266_s11, %s4677_s11   ;;  %s2229_s10 = sphi %s2264_s10, %s4676_s10   ;;  %s2225_s9 = sphi %s2262_s9, %s4675_s9  }
   0x8   : > { %s2287_s15 = sadd.s32 1, %s2237_s12   ;;  %s28_s16 = sadd.s32 1, %s2233_s11 }
   0x9   : > { %s25_s17 = ssub.s32 %s2237_s12, %s2287_s15  ;;  %p35_p0 = scmp.ne.s32.totalorder %s2233_s11, %s2229_s10 }
   0xa   : > { %p26_p1 = scmp.eq.s32.totalorder %s25_s17, 0  ;;  %p36_p2 = scmp.eq.s32.totalorder %s2237_s12, 0 }
   0xb   : > { %p41_p3 = scmp.ne.s32.totalorder %s2229_s10, %s2225_s9  ;;  %p42_p4 = scmp.eq.s32.totalorder %s2283_s13, 0 }
   0xc   : > { %s2299_s18 = scalar_select %p26_p1, %s2233_s11, %s28_s16  }
   0xd   : > { %p37_p5 = por %p36_p2, %p35_p0  ;;  %p2301_p6 = por %p42_p4, %p41_p3 }
   0xe   : > { %p91_p7 = scmp.eq.s32.totalorder %s2283_s13, 1  ;;  %p97_p8 = scmp.eq.s32.totalorder %s1842_s14, 1 }
   0xf   : > { %s4447_s19 = scalar_select %p2301_p6, 1, 0 }
  0x10   : > { %p1934_p10 = scmp.lt.s32.totalorder %s2237_s12, 2  ;;  %p2308_p11 = por %p91_p7, %p35_p0 }
  0x11   : > { %p2312_p12 = por %p97_p8, %p41_p3  ;;  %s2317_s22 = sand.u32 1, %s2233_s11  }
  0x12   : > { %s4448_s20 = scalar_select %p2308_p11, 1, 0 }
  0x13   : > { %s4449_s21 = scalar_select %p2312_p12, 1, 0 }
  0x14   : > { %s1912_s23 = smul.u32 8064, %s2237_s12  ;;  %p2326_p13 = pnand %p1934_p10, %p37_p5 }
  0x15   : > { %s1911_s24 = smul.u32 504, %s2317_s22  ;;  %s118_s3 = scalar_lea.sflag [#allocation3], %s2317_s22 }
  0x16   : > { %s2324_s27 = scalar_lea.hbm %s4332_s0, %s1912_s23  ;;  %p2115_p1 = pneg %p2326_p13 }
  0x17   : > { %s121_s29 = scalar_lea.vmem [#allocation2], %s1911_s24  ;;  %s2113_s4 = scalar_lea.hbm %s2324_s27, 8064 }
  0x18   : > { %s128_s30 = sshll.u32 %s121_s29, 4  ;;  %p2114_p0 = scmp.ne.s32.totalorder %s2324_s27, %s2113_s4  ;;  %s2330_s30 = int_to_ptr.vmem [resolvable:$true] %s128_s30 }
  0x19   : > { %s2118_s7 = scalar_lea.hbm %s4332_s0, 16128  ;;  %p2119_p4 = scmp.lt.s32.totalorder %s2324_s27, %s4332_s0 }
  0x1a   : > { %p2116_p2 = pnand %p2115_p1, %p2114_p0  ;;  %p2120_p5 = scmp.lt.s32.totalorder %s2118_s7, %s2113_s4 }
  0x1c   : > { %p2117_p3 = pneg %p2116_p2  ;;  %p2121_p7 = por %p2120_p5, %p2119_p4 }
  0x1e   : > { %p2122_p8 = pnand %p2121_p7, %p2117_p3 }
  0x20   : > { %2125 = shalt.err (!%p2122_p8)
}
  0x21   : > { %s2126_s16 = scalar_lea.vmem %s2330_s30, 8064  ;;  %s2239_s17 = smov [#allocation2]  }
  0x22   : > { %p2127_p10 = scmp.ne.s32.totalorder %s2330_s30, %s2126_s16  ;;  %s2131_s23 = sshll.u32 %s2239_s17, 4  ;;  %s2132_s23 = int_to_ptr.vmem [resolvable:$false] %s2131_s23 }
  0x23   : > { %s2133_s24 = scalar_lea.vmem %s2132_s23, 16128  ;;  %p2134_p9 = scmp.lt.s32.totalorder %s2330_s30, %s2132_s23 }
  0x24   : > { %p2129_p0 = pnand %p2127_p10, %p2115_p1  ;;  %p2135_p12 = scmp.lt.s32.totalorder %s2133_s24, %s2126_s16 }
  0x26   : > { %p2130_p2 = pneg %p2129_p0  ;;  %p2136_p11 = por %p2135_p12, %p2134_p9 }
  0x28   : > { %p2137_p4 = pnand %p2136_p11, %p2130_p2 }
  0x2a   : > { %2140 = shalt.err (!%p2137_p4)
}
  0x2b   : > { %s2240_s25 = smov 128   ;;  %s2241_s26 = smov 8  }
  0x2c   : > { %1926 = dma.hbm_to_vmem [thread:$0]  (!%p2326_p13), %s2324_s27, 8064, %s2330_s30, %s118_s3, %s2240_s25, %s2240_s25, %s2241_s26  }
  0x2d   : > { %p1847_p9 = scmp.ge.s32.totalorder %s2237_s12, 1  ;;  %p157_p11 = scmp.lt.s32.totalorder %s2237_s12, 3 }
  0x2e   : > { %s1913_s29 = smul.u32 24, %s2317_s22  ;;  %s139_s27 = scalar_lea.sflag [#allocation6], %s2317_s22 }
  0x2f   : > { %p2365_p12 = pnand %p1847_p9, %p157_p11  ;;  %s1914_s5 = smul.u32 384, %s2237_s12 }
  0x30   : > { %s142_s14 = scalar_lea.vmem [#allocation5], %s1913_s29  ;;  %s2146_s23 = scalar_lea.hbm %s4333_s1, 768 }
  0x31   : > { %s2373_s8 = scalar_lea.hbm %s4333_s1, %s1914_s5  ;;  %s149_s16 = sshll.u32 %s142_s14, 4  ;;  %s2375_s16 = int_to_ptr.vmem [resolvable:$true] %s149_s16 }
  0x32   : > { %s2141_s30 = scalar_lea.hbm %s2373_s8, 384  ;;  %p2147_p8 = scmp.lt.s32.totalorder %s2373_s8, %s4333_s1 }
  0x33   : > { %p2142_p3 = scmp.ne.s32.totalorder %s2373_s8, %s2141_s30  ;;  %p2148_p10 = scmp.lt.s32.totalorder %s2146_s23, %s2141_s30 }
  0x35   : > { %p2144_p5 = pnand %p2142_p3, %p2115_p1  ;;  %p2149_p0 = por %p2148_p10, %p2147_p8 }
  0x37   : > { %p2145_p7 = pneg %p2144_p5 }
  0x39   : > { %p2150_p2 = pnand %p2149_p0, %p2145_p7 }
  0x3b   : > { %2153 = shalt.err (!%p2150_p2)
}
  0x3c   : > { %s2154_s22 = scalar_lea.vmem %s2375_s16, 384  ;;  %s2242_s29 = smov [#allocation5]  }
  0x3d   : > { %p2155_p4 = scmp.ne.s32.totalorder %s2375_s16, %s2154_s22  ;;  %s2159_s6 = sshll.u32 %s2242_s29, 4  ;;  %s2160_s6 = int_to_ptr.vmem [resolvable:$false] %s2159_s6 }
  0x3e   : > { %s2161_s7 = scalar_lea.vmem %s2160_s6, 768  ;;  %p2162_p3 = scmp.lt.s32.totalorder %s2375_s16, %s2160_s6 }
  0x3f   : > { %p2157_p9 = pnand %p2155_p4, %p2115_p1  ;;  %p2163_p5 = scmp.lt.s32.totalorder %s2161_s7, %s2154_s22 }
  0x41   : > { %p2158_p11 = pneg %p2157_p9  ;;  %p2164_p6 = por %p2163_p5, %p2162_p3 }
  0x43   : > { %p2165_p8 = pnand %p2164_p6, %p2158_p11 }
  0x45   : > { %2168 = shalt.err (!%p2165_p8)
}
  0x46   : > { %1929 = dma.hbm_to_vmem [thread:$0]  (!%p2326_p13), %s2373_s8, 384, %s2375_s16, %s139_s27, %s2240_s25, %s2240_s25, %s2241_s26  }
  0x47   : > { %161 = sbr.rel (%p2365_p12) target bundleno = 672 (0x2a0), region = 28 }
  0x4c   : > { %s2406_s14 = sand.u32 1, %s2229_s10   ;;  %p4452_p6 = scmp.ne.s32.totalorder %s4447_s19, 0 }
  0x4d   : > { %s1915_s30 = smul.u32 504, %s2406_s14  ;;  %s164_s3 = scalar_lea.sflag [#allocation3], %s2406_s14 }
  0x4f   : > { %s2410_s17 = scalar_lea.vmem [#allocation2], %s1915_s30 }
  0x50   : > { %2212 = dma.done.wait (%p4452_p6), %s164_s3, 8064  }
  0x51   : > { %2214 = vsyncadd (%p4452_p6), %s164_s3, 4294959232  ;;  %s1916_s28 = smul.u32 24, %s2406_s14  ;;  %s173_s25 = scalar_lea.sflag [#allocation6], %s2406_s14 }
  0x53   : > { %s2418_s26 = scalar_lea.vmem [#allocation5], %s1916_s28 }
  0x54   : > { %2216 = dma.done.wait (%p4452_p6), %s173_s25, 384  }
  0x55   : > { %2218 = vsyncadd (%p4452_p6), %s173_s25, 4294966912  ;;  %v2425_v0 = vld [vmem:[%s2410_s17] sm:$0xff]  ;;  %v2428_v1 = vld [vmem:[%s2410_s17 + $0x8] sm:$0xff]  ;;  %s2244_s19 = smov 127   ;;  %s2245_s4 = smov 1  }
  0x56   : > { %v2431_v2 = vld [vmem:[%s2410_s17 + $0x10] sm:$0xff]  ;;  %v2434_v3 = vld [vmem:[%s2410_s17 + $0x18] sm:$0xff]  ;;  %v2437_v4 = vld [vmem:[%s2410_s17 + $0x20] sm:$0xff]  ;;  %s1908_s8 = sshll.u32 %s2283_s13, 4  ;;  %s200_s16 = scalar_lea.vmem [#allocation7], %s2406_s14 }
  0x57   : > { %v2440_v5 = vld [vmem:[%s2410_s17 + $0x28] sm:$0xff]  ;;  %v224_v6 = vmax.f32 %v2425_v0, %v2434_v3  ;;  %v225_v7 = vmax.f32 %v2428_v1, %v2437_v4  ;;  %v2449_v9 = vld [vmem:[%s2410_s17 + $0x30] sm:$0xff]  ;;  %v2452_v10 = vld [vmem:[%s2410_s17 + $0x38] sm:$0xff]  ;;  %s1753_s27 = sshll.u32 %s200_s16, 4  ;;  %s1751_s5 = scalar_lea.hbm %s4334_s2, %s1908_s8  ;;  %s1754_s27 = int_to_ptr.vmem [resolvable:$true] %s1753_s27 }
  0x58   : > { %v226_v8 = vmax.f32 %v2431_v2, %v2440_v5  ;;  %v2455_v11 = vld [vmem:[%s2410_s17 + $0x40] sm:$0xff]  ;;  %v2458_v12 = vld [vmem:[%s2410_s17 + $0x48] sm:$0xff]  ;;  %v2461_v13 = vld [vmem:[%s2410_s17 + $0x50] sm:$0xff]  ;;  %s1741_s22 = scalar_lea.sflag [#allocation4], %s2406_s14  ;;  %s2169_s29 = scalar_lea.vmem %s1754_s27, 16 }
  0x59   : > { %v2464_v14 = vld [vmem:[%s2410_s17 + $0x58] sm:$0xff]  ;;  %v231_v15 = vmax.f32 %v224_v6, %v2449_v9  ;;  %v232_v16 = vmax.f32 %v225_v7, %v2452_v10  ;;  %v2470_v18 = vld [vmem:[%s2410_s17 + $0x60] sm:$0xff]  ;;  %v2473_v19 = vld [vmem:[%s2410_s17 + $0x68] sm:$0xff]  ;;  %p2170_p13 = scmp.ne.s32.totalorder %s1754_s27, %s2169_s29  ;;  %p4672_p1 = scmp.ne.s32.totalorder %s4448_s20, 0 }
  0x5a   : > { %v233_v17 = vmax.f32 %v226_v8, %v2455_v11  ;;  %v2476_v20 = vld [vmem:[%s2410_s17 + $0x70] sm:$0xff]  ;;  %v2482_v24 = vld [vmem:[%s2410_s17 + $0x78] sm:$0xff]  ;;  %v2485_v25 = vld [vmem:[%s2410_s17 + $0x80] sm:$0xff]  ;;  %s2246_s6 = smov [#allocation7]  }
  0x5b   : > { %v238_v21 = vmax.f32 %v231_v15, %v2458_v12  ;;  %v239_v22 = vmax.f32 %v232_v16, %v2461_v13  ;;  %v2488_v26 = vld [vmem:[%s2410_s17 + $0x88] sm:$0xff]  ;;  %v2494_v30 = vld [vmem:[%s2410_s17 + $0x90] sm:$0xff]  ;;  %v2497_v31 = vld [vmem:[%s2410_s17 + $0x98] sm:$0xff]  ;;  %p2171_p12 = pnand %p2170_p13, %p4672_p1  ;;  %s2173_s7 = sshll.u32 %s2246_s6, 4  ;;  %s2174_s7 = int_to_ptr.vmem [resolvable:$false] %s2173_s7 }
  0x5c   : > { %v240_v23 = vmax.f32 %v233_v17, %v2464_v14  ;;  %v2500_v32 = vld [vmem:[%s2410_s17 + $0xa0] sm:$0xff]  ;;  %v2506_v36 = vld [vmem:[%s2410_s17 + $0xa8] sm:$0xff]  ;;  %v2509_v37 = vld [vmem:[%s2410_s17 + $0xb0] sm:$0xff]  ;;  %s2175_s13 = scalar_lea.vmem %s2174_s7, 32  ;;  %p2176_p10 = scmp.lt.s32.totalorder %s1754_s27, %s2174_s7 }
  0x5d   : > { %v245_v27 = vmax.f32 %v238_v21, %v2470_v18  ;;  %v246_v28 = vmax.f32 %v239_v22, %v2473_v19  ;;  %v2512_v38 = vld [vmem:[%s2410_s17 + $0xb8] sm:$0xff]  ;;  %v2518_v42 = vld [vmem:[%s2410_s17 + $0xc0] sm:$0xff]  ;;  %v2521_v43 = vld [vmem:[%s2410_s17 + $0xc8] sm:$0xff]  ;;  %p2172_p7 = pneg %p2171_p12  ;;  %p2177_p0 = scmp.lt.s32.totalorder %s2175_s13, %s2169_s29 }
  0x5e   : > { %v247_v29 = vmax.f32 %v240_v23, %v2476_v20  ;;  %v2524_v44 = vld [vmem:[%s2410_s17 + $0xd0] sm:$0xff]  ;;  %v2530_v48 = vld [vmem:[%s2410_s17 + $0xd8] sm:$0xff]  ;;  %v2533_v49 = vld [vmem:[%s2410_s17 + $0xe0] sm:$0xff] }
  0x5f   : > { %v252_v33 = vmax.f32 %v245_v27, %v2482_v24  ;;  %v253_v34 = vmax.f32 %v246_v28, %v2485_v25  ;;  %v2536_v50 = vld [vmem:[%s2410_s17 + $0xe8] sm:$0xff]  ;;  %v2542_v54 = vld [vmem:[%s2410_s17 + $0xf0] sm:$0xff]  ;;  %v2545_v55 = vld [vmem:[%s2410_s17 + $0xf8] sm:$0xff]  ;;  %p2178_p2 = por %p2177_p0, %p2176_p10 }
  0x60   : > { %v254_v35 = vmax.f32 %v247_v29, %v2488_v26  ;;  %v2548_v56 = vld [vmem:[%s2410_s17 + $0x100] sm:$0xff]  ;;  %v2554_v60 = vld [vmem:[%s2410_s17 + $0x108] sm:$0xff]  ;;  %v2557_v61 = vld [vmem:[%s2410_s17 + $0x110] sm:$0xff] }
  0x61   : > { %v259_v39 = vmax.f32 %v252_v33, %v2494_v30  ;;  %v260_v40 = vmax.f32 %v253_v34, %v2497_v31  ;;  %v2560_v62 = vld [vmem:[%s2410_s17 + $0x118] sm:$0xff]  ;;  %v2566_v8 = vld [vmem:[%s2410_s17 + $0x120] sm:$0xff]  ;;  %v2569_v15 = vld [vmem:[%s2410_s17 + $0x128] sm:$0xff]  ;;  %p2179_p4 = pnand %p2178_p2, %p2172_p7 }
  0x62   : > { %v261_v41 = vmax.f32 %v254_v35, %v2500_v32  ;;  %v2572_v16 = vld [vmem:[%s2410_s17 + $0x130] sm:$0xff]  ;;  %v2578_v23 = vld [vmem:[%s2410_s17 + $0x138] sm:$0xff]  ;;  %v2581_v27 = vld [vmem:[%s2410_s17 + $0x140] sm:$0xff] }
  0x63   : > { %v266_v45 = vmax.f32 %v259_v39, %v2506_v36  ;;  %v267_v46 = vmax.f32 %v260_v40, %v2509_v37  ;;  %v2584_v28 = vld [vmem:[%s2410_s17 + $0x148] sm:$0xff]  ;;  %v2590_v35 = vld [vmem:[%s2410_s17 + $0x150] sm:$0xff]  ;;  %v2593_v39 = vld [vmem:[%s2410_s17 + $0x158] sm:$0xff] }
  0x64   : > { %v268_v47 = vmax.f32 %v261_v41, %v2512_v38  ;;  %v2596_v40 = vld [vmem:[%s2410_s17 + $0x160] sm:$0xff] }
  0x65   : > { %v273_v51 = vmax.f32 %v266_v45, %v2518_v42  ;;  %v274_v52 = vmax.f32 %v267_v46, %v2521_v43  ;;  %4453 = vst [vmem:[#allocation11_spill] sm:$0xff] %v2596_v40 }
  0x66   : > { %v275_v53 = vmax.f32 %v268_v47, %v2524_v44  ;;  %v2602_v47 = vld [vmem:[%s2410_s17 + $0x168] sm:$0xff] }
  0x67   : > { %v280_v57 = vmax.f32 %v273_v51, %v2530_v48  ;;  %v281_v58 = vmax.f32 %v274_v52, %v2533_v49  ;;  %4454 = vst [vmem:[#allocation12_spill] sm:$0xff] %v2602_v47  ;;  %v2605_v51 = vld [vmem:[%s2410_s17 + $0x170] sm:$0xff]  ;;  %v2608_v52 = vld [vmem:[%s2410_s17 + $0x178] sm:$0xff] }
  0x68   : > { %v282_v59 = vmax.f32 %v275_v53, %v2536_v50  ;;  %4455 = vst [vmem:[#allocation13_spill] sm:$0xff] %v2605_v51  ;;  %4456 = vst [vmem:[#allocation14_spill] sm:$0xff] %v2608_v52 }
  0x69   : > { %v287_v63 = vmax.f32 %v280_v57, %v2542_v54  ;;  %v288_v6 = vmax.f32 %v281_v58, %v2545_v55 }
  0x6a   : > { %v289_v7 = vmax.f32 %v282_v59, %v2548_v56  ;;  %v2614_v59 = vld [vmem:[%s2410_s17 + $0x180] sm:$0xff] }
  0x6b   : > { %v294_v17 = vmax.f32 %v287_v63, %v2554_v60  ;;  %v295_v21 = vmax.f32 %v288_v6, %v2557_v61  ;;  %4457 = vst [vmem:[#allocation15_spill] sm:$0xff] %v2614_v59  ;;  %v2617_v63 = vld [vmem:[%s2410_s17 + $0x188] sm:$0xff]  ;;  %v2620_v6 = vld [vmem:[%s2410_s17 + $0x190] sm:$0xff] }
  0x6c   : > { %v296_v22 = vmax.f32 %v289_v7, %v2560_v62  ;;  %4458 = vst [vmem:[#allocation16_spill] sm:$0xff] %v2617_v63  ;;  %4459 = vst [vmem:[#allocation17_spill] sm:$0xff] %v2620_v6 }
  0x6d   : > { %v301_v29 = vmax.f32 %v294_v17, %v2566_v8  ;;  %v302_v33 = vmax.f32 %v295_v21, %v2569_v15 }
  0x6e   : > { %v303_v34 = vmax.f32 %v296_v22, %v2572_v16  ;;  %v2626_v22 = vld [vmem:[%s2410_s17 + $0x198] sm:$0xff] }
  0x6f   : > { %v308_v41 = vmax.f32 %v301_v29, %v2578_v23  ;;  %v309_v45 = vmax.f32 %v302_v33, %v2581_v27  ;;  %v2629_v29 = vld [vmem:[%s2410_s17 + $0x1a0] sm:$0xff]  ;;  %v2632_v33 = vld [vmem:[%s2410_s17 + $0x1a8] sm:$0xff] }
  0x70   : > { %v310_v46 = vmax.f32 %v303_v34, %v2584_v28  ;;  %4460 = vst [vmem:[#allocation18_spill] sm:$0xff] %v2629_v29  ;;  %4461 = vst [vmem:[#allocation19_spill] sm:$0xff] %v2632_v33 }
  0x71   : > { %v315_v53 = vmax.f32 %v308_v41, %v2590_v35  ;;  %v316_v57 = vmax.f32 %v309_v45, %v2593_v39 }
  0x72   : > { %v317_v58 = vmax.f32 %v310_v46, %v2596_v40  ;;  %v2638_v46 = vld [vmem:[%s2410_s17 + $0x1b0] sm:$0xff]  ;;  %v2665_v40 = vld [vmem:[%s2410_s17 + $0x1e8] sm:$0xff] }
  0x73   : > { %v322_v7 = vmax.f32 %v315_v53, %v2602_v47  ;;  %v323_v17 = vmax.f32 %v316_v57, %v2605_v51  ;;  %v2641_v53 = vld [vmem:[%s2410_s17 + $0x1b8] sm:$0xff]  ;;  %v2644_v57 = vld [vmem:[%s2410_s17 + $0x1c0] sm:$0xff]  ;;  %v2650_v47 = vld [vmem:[%s2410_s17 + $0x1c8] sm:$0xff]  ;;  %4463 = vst [vmem:[#allocation21_spill] sm:$0xff] %v2665_v40 }
  0x74   : > { %v324_v21 = vmax.f32 %v317_v58, %v2608_v52  ;;  %4462 = vst [vmem:[#allocation20_spill] sm:$0xff] %v2644_v57 }
  0x75   : > { %v329_v34 = vmax.f32 %v322_v7, %v2614_v59  ;;  %v330_v41 = vmax.f32 %v323_v17, %v2617_v63  ;;  %v2653_v7 = vld [vmem:[%s2410_s17 + $0x1d0] sm:$0xff]  ;;  %v2656_v17 = vld [vmem:[%s2410_s17 + $0x1d8] sm:$0xff]  ;;  %v2662_v59 = vld [vmem:[%s2410_s17 + $0x1e0] sm:$0xff] }
  0x76   : > { %v331_v45 = vmax.f32 %v324_v21, %v2620_v6 }
  0x77   : > { %v336_v58 = vmax.f32 %v329_v34, %v2626_v22  ;;  %v337_v52 = vmax.f32 %v330_v41, %v2629_v29  ;;  %v2668_v34 = vld [vmem:[%s2410_s17 + $0x1f0] sm:$0xff] }
  0x78   : > { %v338_v51 = vmax.f32 %v331_v45, %v2632_v33  ;;  %4464 = vst [vmem:[#allocation22_spill] sm:$0xff] %v2668_v34 }
  0x79   : > { %v343_v21 = vmax.f32 %v336_v58, %v2638_v46  ;;  %v344_v6 = vmax.f32 %v337_v52, %v2641_v53 }
  0x7a   : > { %v345_v63 = vmax.f32 %v338_v51, %v2644_v57 }
  0x7b   : > { %v350_v41 = vmax.f32 %v343_v21, %v2650_v47  ;;  %v351_v45 = vmax.f32 %v344_v6, %v2653_v7 }
  0x7c   : > { %v352_v33 = vmax.f32 %v345_v63, %v2656_v17 }
  0x7d   : > { %v2674_v29 = vmax.f32 %v350_v41, %v2662_v59  ;;  %v2677_v58 = vmax.f32 %v351_v45, %v2665_v40 }
  0x7e   : > { %v2680_v51 = vmax.f32 %v352_v33, %v2668_v34 }
  0x7f   : > { %v360_v52 = vsub.f32 %v2425_v0, %v2674_v29  ;;  %v361_v57 = vsub.f32 %v2428_v1, %v2677_v58  ;;  %v372_v63 = vsub.f32 %v2434_v3, %v2674_v29  ;;  %v373_v21 = vsub.f32 %v2437_v4, %v2677_v58 }
  0x80   : > { %v362_v6 = vsub.f32 %v2431_v2, %v2680_v51  ;;  %v374_v41 = vsub.f32 %v2440_v5, %v2680_v51  ;;  %v384_v0 = vsub.f32 %v2449_v9, %v2674_v29  ;;  %v385_v1 = vsub.f32 %v2452_v10, %v2677_v58 }
  0x81   : > { %v363_v33 = vmul.f32 1.442695, %v360_v52  ;;  %v365_v45 = vmul.f32 1.442695, %v361_v57  ;;  %v375_v40 = vmul.f32 1.442695, %v372_v63  ;;  %v386_v3 = vsub.f32 %v2455_v11, %v2680_v51 }
  0x82   : > { %v367_v34 = vmul.f32 1.442695, %v362_v6  ;;  %v377_v2 = vmul.f32 1.442695, %v373_v21  ;;  %v379_v4 = vmul.f32 1.442695, %v374_v41  ;;  %v396_v5 = vsub.f32 %v2458_v12, %v2674_v29 }
  0x83   : > { %1973 = vpow2.f32 %v363_v33  ;;  %v387_v57 = vmul.f32 1.442695, %v384_v0  ;;  %v397_v52 = vsub.f32 %v2461_v13, %v2677_v58  ;;  %v389_v9 = vmul.f32 1.442695, %v385_v1 }
  0x84   : > { %1975 = vpow2.f32 %v365_v45  ;;  %v398_v10 = vsub.f32 %v2464_v14, %v2680_v51  ;;  %v391_v6 = vmul.f32 1.442695, %v386_v3  ;;  %v408_v11 = vsub.f32 %v2470_v18, %v2674_v29 }
  0x85   : > { %1977 = vpow2.f32 %v367_v34  ;;  %v399_v63 = vmul.f32 1.442695, %v396_v5  ;;  %v409_v12 = vsub.f32 %v2473_v19, %v2677_v58  ;;  %v401_v34 = vmul.f32 1.442695, %v397_v52 }
  0x86   : > { %1979 = vpow2.f32 %v375_v40  ;;  %v410_v13 = vsub.f32 %v2476_v20, %v2680_v51  ;;  %v403_v40 = vmul.f32 1.442695, %v398_v10  ;;  %v420_v14 = vsub.f32 %v2482_v24, %v2674_v29 }
  0x87   : > { %1981 = vpow2.f32 %v377_v2  ;;  %v411_v21 = vmul.f32 1.442695, %v408_v11  ;;  %v421_v18 = vsub.f32 %v2485_v25, %v2677_v58  ;;  %v413_v41 = vmul.f32 1.442695, %v409_v12 }
  0x88   : > { %1983 = vpow2.f32 %v379_v4  ;;  %v422_v19 = vsub.f32 %v2488_v26, %v2680_v51  ;;  %v415_v33 = vmul.f32 1.442695, %v410_v13  ;;  %v432_v20 = vsub.f32 %v2494_v30, %v2674_v29 }
  0x89   : > { %1985 = vpow2.f32 %v387_v57  ;;  %v423_v45 = vmul.f32 1.442695, %v420_v14  ;;  %v433_v24 = vsub.f32 %v2497_v31, %v2677_v58  ;;  %v425_v0 = vmul.f32 1.442695, %v421_v18 }
  0x8a   : > { %1987 = vpow2.f32 %v389_v9  ;;  %v434_v25 = vsub.f32 %v2500_v32, %v2680_v51  ;;  %v427_v2 = vmul.f32 1.442695, %v422_v19  ;;  %v444_v26 = vsub.f32 %v2506_v36, %v2674_v29 }
  0x8b   : > { %1989 = vpow2.f32 %v391_v6  ;;  %v435_v30 = vmul.f32 1.442695, %v432_v20  ;;  %v445_v4 = vsub.f32 %v2509_v37, %v2677_v58  ;;  %v437_v5 = vmul.f32 1.442695, %v433_v24 }
  0x8c   : > { %1991 = vpow2.f32 %v399_v63  ;;  %v446_v32 = vsub.f32 %v2512_v38, %v2680_v51  ;;  %v439_v52 = vmul.f32 1.442695, %v434_v25  ;;  %v456_v36 = vsub.f32 %v2518_v42, %v2674_v29 }
  0x8d   : > { %1993 = vpow2.f32 %v401_v34  ;;  %v447_v37 = vmul.f32 1.442695, %v444_v26  ;;  %v457_v6 = vsub.f32 %v2521_v43, %v2677_v58  ;;  %v449_v63 = vmul.f32 1.442695, %v445_v4 }
  0x8e   : > { %1995 = vpow2.f32 %v403_v40  ;;  %v458_v42 = vsub.f32 %v2524_v44, %v2680_v51  ;;  %v451_v13 = vmul.f32 1.442695, %v446_v32  ;;  %v468_v43 = vsub.f32 %v2530_v48, %v2674_v29 }
  0x8f   : > { %1997 = vpow2.f32 %v411_v21  ;;  %v459_v21 = vmul.f32 1.442695, %v456_v36  ;;  %v469_v18 = vsub.f32 %v2533_v49, %v2677_v58  ;;  %v461_v19 = vmul.f32 1.442695, %v457_v6 }
  0x90   : > { %v2724_v1 = vpop.eup %1973  ;;  %1999 = vpow2.f32 %v413_v41  ;;  %v480_v24 = vsub.f32 %v2542_v54, %v2674_v29  ;;  %v471_v25 = vmul.f32 1.442695, %v468_v43  ;;  %v482_v4 = vsub.f32 %v2548_v56, %v2680_v51 }
  0x91   : > { %v2728_v3 = vpop.eup %1975  ;;  %2001 = vpow2.f32 %v415_v33  ;;  %v470_v33 = vsub.f32 %v2536_v50, %v2680_v51 }
  0x92   : > { %v2732_v31 = vpop.eup %1977  ;;  %2003 = vpow2.f32 %v423_v45  ;;  %v463_v45 = vmul.f32 1.442695, %v458_v42 }
  0x93   : > { %v2736_v57 = vpop.eup %1979  ;;  %2005 = vpow2.f32 %v425_v0  ;;  %v475_v32 = vmul.f32 1.442695, %v470_v33 }
  0x94   : > { %v2740_v9 = vpop.eup %1981  ;;  %v381_v10 = vadd.f32 %v2736_v57, %v2724_v1  ;;  %2007 = vpow2.f32 %v427_v2  ;;  %v481_v2 = vsub.f32 %v2545_v55, %v2677_v58 }
  0x95   : > { %v2746_v11 = vpop.eup %1983  ;;  %v382_v38 = vadd.f32 %v2740_v9, %v2728_v3  ;;  %2009 = vpow2.f32 %v435_v30  ;;  %v473_v30 = vmul.f32 1.442695, %v469_v18 }
  0x96   : > { %v2752_v12 = vpop.eup %1985  ;;  %v383_v34 = vadd.f32 %v2746_v11, %v2732_v31  ;;  %2011 = vpow2.f32 %v437_v5 }
  0x97   : > { %v2758_v40 = vpop.eup %1987  ;;  %v393_v14 = vadd.f32 %v2752_v12, %v381_v10  ;;  %2013 = vpow2.f32 %v439_v52  ;;  %v492_v52 = vsub.f32 %v2554_v60, %v2674_v29  ;;  %v483_v10 = vmul.f32 1.442695, %v480_v24 }
  0x98   : > { %v2763_v44 = vpop.eup %1989  ;;  %v394_v41 = vadd.f32 %v2758_v40, %v382_v38  ;;  %2015 = vpow2.f32 %v447_v37  ;;  %v493_v37 = vsub.f32 %v2557_v61, %v2677_v58  ;;  %v485_v38 = vmul.f32 1.442695, %v481_v2 }
  0x99   : > { %v2768_v20 = vpop.eup %1991  ;;  %v395_v48 = vadd.f32 %v2763_v44, %v383_v34  ;;  %2017 = vpow2.f32 %v449_v63  ;;  %v494_v63 = vsub.f32 %v2560_v62, %v2680_v51  ;;  %v487_v34 = vmul.f32 1.442695, %v482_v4 }
  0x9a   : > { %v2773_v0 = vpop.eup %1993  ;;  %v405_v49 = vadd.f32 %v2768_v20, %v393_v14  ;;  %2019 = vpow2.f32 %v451_v13  ;;  %v504_v13 = vsub.f32 %v2566_v8, %v2674_v29  ;;  %v495_v14 = vmul.f32 1.442695, %v492_v52 }
  0x9b   : > { %v2778_v26 = vpop.eup %1995  ;;  %v406_v50 = vadd.f32 %v2773_v0, %v394_v41  ;;  %2021 = vpow2.f32 %v459_v21  ;;  %v505_v21 = vsub.f32 %v2569_v15, %v2677_v58  ;;  %v497_v41 = vmul.f32 1.442695, %v493_v37 }
  0x9c   : > { %v2783_v5 = vpop.eup %1997  ;;  %v407_v54 = vadd.f32 %v2778_v26, %v395_v48  ;;  %2023 = vpow2.f32 %v461_v19  ;;  %v506_v19 = vsub.f32 %v2572_v16, %v2680_v51  ;;  %v499_v48 = vmul.f32 1.442695, %v494_v63 }
  0x9d   : > { %v2788_v36 = vpop.eup %1999  ;;  %v417_v55 = vadd.f32 %v2783_v5, %v405_v49  ;;  %2025 = vpow2.f32 %v463_v45  ;;  %v516_v45 = vsub.f32 %v2578_v23, %v2674_v29  ;;  %v507_v49 = vmul.f32 1.442695, %v504_v13  ;;  %v4466_v13 = vld [vmem:[#allocation12_spill] sm:$0xff] }
  0x9e   : > { %v2793_v6 = vpop.eup %2001  ;;  %v418_v56 = vadd.f32 %v2788_v36, %v406_v50  ;;  %2027 = vpow2.f32 %v471_v25  ;;  %v517_v25 = vsub.f32 %v2581_v27, %v2677_v58  ;;  %v509_v50 = vmul.f32 1.442695, %v505_v21 }
  0x9f   : > { %v2798_v42 = vpop.eup %2003  ;;  %v419_v60 = vadd.f32 %v2793_v6, %v407_v54  ;;  %2029 = vpow2.f32 %v473_v30  ;;  %v518_v30 = vsub.f32 %v2584_v28, %v2680_v51  ;;  %v511_v54 = vmul.f32 1.442695, %v506_v19 }
  0xa0   : > { %v2803_v43 = vpop.eup %2005  ;;  %v429_v61 = vadd.f32 %v2798_v42, %v417_v55  ;;  %2031 = vpow2.f32 %v475_v32  ;;  %v528_v32 = vsub.f32 %v2590_v35, %v2674_v29  ;;  %v519_v55 = vmul.f32 1.442695, %v516_v45  ;;  %v4468_v45 = vld [vmem:[#allocation14_spill] sm:$0xff] }
  0xa1   : > { %v2808_v18 = vpop.eup %2007  ;;  %v430_v62 = vadd.f32 %v2803_v43, %v418_v56  ;;  %2033 = vpow2.f32 %v483_v10  ;;  %v529_v10 = vsub.f32 %v2593_v39, %v2677_v58  ;;  %v521_v56 = vmul.f32 1.442695, %v517_v25 }
  0xa2   : > { %v2813_v33 = vpop.eup %2009  ;;  %v431_v8 = vadd.f32 %v2808_v18, %v419_v60  ;;  %2035 = vpow2.f32 %v485_v38  ;;  %v4465_v38 = vld [vmem:[#allocation11_spill] sm:$0xff]  ;;  %v531_v21 = vmul.f32 1.442695, %v528_v32 }
  0xa3   : > { %v2818_v24 = vpop.eup %2011  ;;  %v441_v15 = vadd.f32 %v2813_v33, %v429_v61  ;;  %2037 = vpow2.f32 %v487_v34  ;;  %v530_v63 = vsub.f32 %v4465_v38, %v2680_v51  ;;  %v523_v34 = vmul.f32 1.442695, %v518_v30 }
  0xa4   : > { %v2823_v2 = vpop.eup %2013  ;;  %v442_v16 = vadd.f32 %v2818_v24, %v430_v62  ;;  %2039 = vpow2.f32 %v495_v14  ;;  %v540_v61 = vsub.f32 %v4466_v13, %v2674_v29  ;;  %v4467_v62 = vld [vmem:[#allocation13_spill] sm:$0xff] }
  0xa5   : > { %v2828_v4 = vpop.eup %2015  ;;  %v443_v23 = vadd.f32 %v2823_v2, %v431_v8  ;;  %2041 = vpow2.f32 %v497_v41  ;;  %v541_v41 = vsub.f32 %v4467_v62, %v2677_v58 }
  0xa6   : > { %v2833_v52 = vpop.eup %2017  ;;  %v453_v27 = vadd.f32 %v2828_v4, %v441_v15  ;;  %2043 = vpow2.f32 %v499_v48  ;;  %v533_v48 = vmul.f32 1.442695, %v529_v10  ;;  %v542_v15 = vsub.f32 %v4468_v45, %v2680_v51 }
  0xa7   : > { %v2838_v37 = vpop.eup %2019  ;;  %v454_v28 = vadd.f32 %v2833_v52, %v442_v16  ;;  %2045 = vpow2.f32 %v507_v49  ;;  %v535_v16 = vmul.f32 1.442695, %v530_v63  ;;  %v543_v32 = vmul.f32 1.442695, %v540_v61 }
  0xa8   : > { %v2843_v60 = vpop.eup %2021  ;;  %v455_v35 = vadd.f32 %v2838_v37, %v443_v23  ;;  %2047 = vpow2.f32 %v509_v50  ;;  %v4469_v50 = vld [vmem:[#allocation15_spill] sm:$0xff]  ;;  %v545_v38 = vmul.f32 1.442695, %v541_v41 }
  0xa9   : > { %v2848_v14 = vpop.eup %2023  ;;  %v465_v39 = vadd.f32 %v2843_v60, %v453_v27  ;;  %2049 = vpow2.f32 %v511_v54  ;;  %v552_v30 = vsub.f32 %v4469_v50, %v2674_v29  ;;  %v4470_v27 = vld [vmem:[#allocation16_spill] sm:$0xff] }
  0xaa   : > { %v2853_v19 = vpop.eup %2025  ;;  %v466_v8 = vadd.f32 %v2848_v14, %v454_v28  ;;  %2051 = vpow2.f32 %v519_v55  ;;  %v553_v55 = vsub.f32 %v4470_v27, %v2677_v58 }
  0xab   : > { %v2858_v49 = vpop.eup %2027  ;;  %v467_v25 = vadd.f32 %v2853_v19, %v455_v35  ;;  %2053 = vpow2.f32 %v521_v56  ;;  %v4471_v56 = vld [vmem:[#allocation17_spill] sm:$0xff] }
  0xac   : > { %v2863_v23 = vpop.eup %2029  ;;  %v477_v54 = vadd.f32 %v2858_v49, %v465_v39  ;;  %2055 = vpow2.f32 %v523_v34  ;;  %v554_v63 = vsub.f32 %v4471_v56, %v2680_v51  ;;  %v547_v39 = vmul.f32 1.442695, %v542_v15 }
  0xad   : > { %v2868_v10 = vpop.eup %2031  ;;  %v478_v28 = vadd.f32 %v2863_v23, %v466_v8  ;;  %2057 = vpow2.f32 %v531_v21  ;;  %v564_v34 = vsub.f32 %v2626_v22, %v2674_v29  ;;  %v555_v8 = vmul.f32 1.442695, %v552_v30  ;;  %v4472_v21 = vld [vmem:[#allocation18_spill] sm:$0xff] }
  0xae   : > { %v2873_v35 = vpop.eup %2033  ;;  %v479_v13 = vadd.f32 %v2868_v10, %v467_v25  ;;  %2059 = vpow2.f32 %v533_v48  ;;  %v565_v41 = vsub.f32 %v4472_v21, %v2677_v58  ;;  %v557_v25 = vmul.f32 1.442695, %v553_v55  ;;  %v4473_v48 = vld [vmem:[#allocation19_spill] sm:$0xff] }
  0xaf   : > { %v2878_v61 = vpop.eup %2035  ;;  %v489_v62 = vadd.f32 %v2873_v35, %v477_v54  ;;  %2061 = vpow2.f32 %v535_v16  ;;  %v566_v15 = vsub.f32 %v4473_v48, %v2680_v51  ;;  %v559_v54 = vmul.f32 1.442695, %v554_v63 }
  0xb0   : > { %v2883_v45 = vpop.eup %2037  ;;  %v490_v50 = vadd.f32 %v2878_v61, %v478_v28  ;;  %2063 = vpow2.f32 %v543_v32  ;;  %v576_v16 = vsub.f32 %v2638_v46, %v2674_v29  ;;  %v567_v28 = vmul.f32 1.442695, %v564_v34 }
  0xb1   : > { %v2888_v27 = vpop.eup %2039  ;;  %v491_v22 = vadd.f32 %v2883_v45, %v479_v13  ;;  %2065 = vpow2.f32 %v545_v38  ;;  %v577_v32 = vsub.f32 %v2641_v53, %v2677_v58  ;;  %v569_v13 = vmul.f32 1.442695, %v565_v41  ;;  %v4474_v38 = vld [vmem:[#allocation20_spill] sm:$0xff] }
  0xb2   : > { %v2893_v30 = vpop.eup %2041  ;;  %v501_v56 = vadd.f32 %v2888_v27, %v489_v62  ;;  %2067 = vpow2.f32 %v547_v39  ;;  %v578_v63 = vsub.f32 %v4474_v38, %v2680_v51  ;;  %v571_v62 = vmul.f32 1.442695, %v566_v15 }
  0xb3   : > { %v2898_v55 = vpop.eup %2043  ;;  %v502_v21 = vadd.f32 %v2893_v30, %v490_v50  ;;  %2069 = vpow2.f32 %v555_v8  ;;  %v588_v39 = vsub.f32 %v2650_v47, %v2674_v29  ;;  %v579_v50 = vmul.f32 1.442695, %v576_v16 }
  0xb4   : > { %v2903_v48 = vpop.eup %2045  ;;  %v503_v46 = vadd.f32 %v2898_v55, %v491_v22  ;;  %2071 = vpow2.f32 %v557_v25  ;;  %v589_v8 = vsub.f32 %v2653_v7, %v2677_v58  ;;  %v581_v22 = vmul.f32 1.442695, %v577_v32 }
  0xb5   : > { %v2908_v34 = vpop.eup %2047  ;;  %v513_v53 = vadd.f32 %v2903_v48, %v501_v56  ;;  %2073 = vpow2.f32 %v559_v54  ;;  %v590_v25 = vsub.f32 %v2656_v17, %v2680_v51  ;;  %v583_v56 = vmul.f32 1.442695, %v578_v63 }
  0xb6   : > { %4475 = vst [vmem:[#allocation11_spill] sm:$0xff] %v2908_v34  ;;  %v2913_v41 = vpop.eup %2049  ;;  %v514_v38 = vadd.f32 %v2908_v34, %v502_v21  ;;  %2075 = vpow2.f32 %v567_v28  ;;  %v600_v54 = vsub.f32 %v2662_v59, %v2674_v29  ;;  %v591_v21 = vmul.f32 1.442695, %v588_v39  ;;  %v4477_v28 = vld [vmem:[#allocation21_spill] sm:$0xff] }
  0xb7   : > { %4476 = vst [vmem:[#allocation12_spill] sm:$0xff] %v2913_v41  ;;  %v2918_v15 = vpop.eup %2051  ;;  %v515_v47 = vadd.f32 %v2913_v41, %v503_v46  ;;  %2077 = vpow2.f32 %v569_v13  ;;  %v601_v32 = vsub.f32 %v4477_v28, %v2677_v58  ;;  %v593_v46 = vmul.f32 1.442695, %v589_v8  ;;  %v4478_v13 = vld [vmem:[#allocation22_spill] sm:$0xff] }
  0xb8   : > { %v2923_v16 = vpop.eup %2053  ;;  %v525_v7 = vadd.f32 %v2918_v15, %v513_v53  ;;  %2079 = vpow2.f32 %v571_v62  ;;  %v602_v63 = vsub.f32 %v4478_v13, %v2680_v51  ;;  %v595_v29 = vmul.f32 1.442695, %v590_v25 }
  0xb9   : > { %v2928_v34 = vpop.eup %2055  ;;  %v526_v17 = vadd.f32 %v2923_v16, %v514_v38  ;;  %2081 = vpow2.f32 %v579_v50  ;;  %v603_v58 = vmul.f32 1.442695, %v600_v54  ;;  %v605_v8 = vmul.f32 1.442695, %v601_v32 }
  0xba   : > { %v2933_v41 = vpop.eup %2057  ;;  %v527_v59 = vadd.f32 %v2928_v34, %v515_v47  ;;  %2083 = vpow2.f32 %v581_v22  ;;  %v607_v47 = vmul.f32 1.442695, %v602_v63 }
  0xbb   : > { %4479 = vst [vmem:[#allocation13_spill] sm:$0xff] %v2933_v41  ;;  %v2936_v62 = vpop.eup %2059  ;;  %v537_v39 = vadd.f32 %v2933_v41, %v525_v7  ;;  %2085 = vpow2.f32 %v583_v56 }
  0xbc   : > { %4480 = vst [vmem:[#allocation14_spill] sm:$0xff] %v2936_v62  ;;  %v2939_v53 = vpop.eup %2061  ;;  %v538_v50 = vadd.f32 %v2936_v62, %v526_v17  ;;  %2087 = vpow2.f32 %v591_v21 }
  0xbd   : > { %4481 = vst [vmem:[#allocation15_spill] sm:$0xff] %v2939_v53  ;;  %v2942_v38 = vpop.eup %2063  ;;  %v539_v51 = vadd.f32 %v2939_v53, %v527_v59  ;;  %2089 = vpow2.f32 %v593_v46 }
  0xbe   : > { %4482 = vst [vmem:[#allocation16_spill] sm:$0xff] %v2942_v38  ;;  %v2945_v22 = vpop.eup %2065  ;;  %v549_v25 = vadd.f32 %v2942_v38, %v537_v39  ;;  %2091 = vpow2.f32 %v595_v29 }
  0xbf   : > { %4483 = vst [vmem:[#allocation17_spill] sm:$0xff] %v2945_v22  ;;  %v2948_v7 = vpop.eup %2067  ;;  %v550_v56 = vadd.f32 %v2945_v22, %v538_v50  ;;  %2093 = vpow2.f32 %v603_v58 }
  0xc0   : > { %4484 = vst [vmem:[#allocation18_spill] sm:$0xff] %v2948_v7  ;;  %v2951_v54 = vpop.eup %2069  ;;  %v551_v21 = vadd.f32 %v2948_v7, %v539_v51  ;;  %2095 = vpow2.f32 %v605_v8 }
  0xc1   : > { %4485 = vst [vmem:[#allocation19_spill] sm:$0xff] %v2951_v54  ;;  %v2954_v28 = vpop.eup %2071  ;;  %v561_v32 = vadd.f32 %v2951_v54, %v549_v25  ;;  %2097 = vpow2.f32 %v607_v47 }
  0xc2   : > { %4486 = vst [vmem:[#allocation20_spill] sm:$0xff] %v2954_v28  ;;  %v2957_v17 = vpop.eup %2073  ;;  %v562_v46 = vadd.f32 %v2954_v28, %v550_v56 }
  0xc3   : > { %4487 = vst [vmem:[#allocation21_spill] sm:$0xff] %v2957_v17  ;;  %v2960_v13 = vpop.eup %2075  ;;  %v563_v63 = vadd.f32 %v2957_v17, %v551_v21 }
  0xc4   : > { %4488 = vst [vmem:[#allocation22_spill] sm:$0xff] %v2960_v13  ;;  %v2963_v59 = vpop.eup %2077  ;;  %v573_v29 = vadd.f32 %v2960_v13, %v561_v32 }
  0xc5   : > { %4489 = vst [vmem:[#allocation23_spill] sm:$0xff] %v2963_v59  ;;  %v2966_v39 = vpop.eup %2079  ;;  %v574_v58 = vadd.f32 %v2963_v59, %v562_v46 }
  0xc6   : > { %4490 = vst [vmem:[#allocation24_spill] sm:$0xff] %v2966_v39  ;;  %v2969_v50 = vpop.eup %2081  ;;  %v575_v8 = vadd.f32 %v2966_v39, %v563_v63 }
  0xc7   : > { %4491 = vst [vmem:[#allocation25_spill] sm:$0xff] %v2969_v50  ;;  %v2972_v51 = vpop.eup %2083  ;;  %v585_v47 = vadd.f32 %v2969_v50, %v573_v29 }
  0xc8   : > { %4492 = vst [vmem:[#allocation26_spill] sm:$0xff] %v2972_v51  ;;  %v2975_v25 = vpop.eup %2085  ;;  %v586_v56 = vadd.f32 %v2972_v51, %v574_v58 }
  0xc9   : > { %4493 = vst [vmem:[#allocation27_spill] sm:$0xff] %v2975_v25  ;;  %v2978_v21 = vpop.eup %2087  ;;  %v587_v32 = vadd.f32 %v2975_v25, %v575_v8 }
  0xca   : > { %4494 = vst [vmem:[#allocation28_spill] sm:$0xff] %v2978_v21  ;;  %v2981_v13 = vpop.eup %2089  ;;  %v597_v46 = vadd.f32 %v2978_v21, %v585_v47  ;;  %v201_v47 = vlaneseq }
  0xcb   : > { %4495 = vst [vmem:[#allocation29_spill] sm:$0xff] %v2981_v13  ;;  %v2984_v59 = vpop.eup %2091  ;;  %v598_v63 = vadd.f32 %v2981_v13, %v586_v56 }
  0xcc   : > { %4496 = vst [vmem:[#allocation30_spill] sm:$0xff] %v2984_v59  ;;  %v2987_v39 = vpop.eup %2093  ;;  %v599_v29 = vadd.f32 %v2984_v59, %v587_v32  ;;  %v206_v21 = vand.u32 127, %v201_v47  ;;  %v3002_v38 = vshrl.u32 %v201_v47, 7 }
  0xcd   : > { %4497 = vst [vmem:[#allocation31_spill] sm:$0xff] %v2987_v39  ;;  %v2990_v50 = vpop.eup %2095  ;;  %v609_v58 = vadd.f32 %v2987_v39, %v597_v46  ;;  %v2243_v46 = vmov 0.0  }
  0xce   : > { %4498 = vst [vmem:[#allocation32_spill] sm:$0xff] %v2990_v50  ;;  %v2993_v51 = vpop.eup %2097  ;;  %v610_v8 = vadd.f32 %v2990_v50, %v598_v63  ;;  %vm210_vm0 = vcmp.lt.s32.totalorder %v206_v21, 16  ;;  %vm633_vm1 = vcmp.lt.s32.totalorder %v3002_v38, 7  ;;  %vm640_vm2 = vcmp.lt.s32.totalorder %v3002_v38, 1 }
  0xcf   : > { %4499 = vst [vmem:[#allocation33_spill] sm:$0xff] %v2993_v51  ;;  %v611_v25 = vadd.f32 %v2993_v51, %v599_v29  ;;  %2099 = vrcp.f32 %v609_v58  ;;  %v2997_v39 = vsel %vm210_vm0, 1.0, %v2243_v46 }
  0xd0   : > { %2101 = vrcp.f32 %v610_v8  ;;  %4500 = vst [vmem:[#allocation34_spill] sm:$0xff] %v2997_v39 }
  0xd1   : > { %2103 = vrcp.f32 %v611_v25 }
  0xdc   : > { %v2100_v56 = vpop.eup %2099 }
  0xdd   : > { %v2102_v13 = vpop.eup %2101  ;;  %v615_v28 = vmul.f32 %v2100_v56, %v609_v58 }
  0xde   : > { %v2104_v32 = vpop.eup %2103  ;;  %v616_v59 = vmul.f32 %v2102_v13, %v610_v8 }
  0xdf   : > { %v617_v17 = vmul.f32 %v2104_v32, %v611_v25  ;;  %v618_v54 = vsub.f32 2.0, %v615_v28 }
  0xe0   : > { %v619_v22 = vsub.f32 2.0, %v616_v59 }
  0xe1   : > { %v620_v63 = vsub.f32 2.0, %v617_v17  ;;  %v621_v50 = vmul.f32 %v2100_v56, %v618_v54 }
  0xe2   : > { %v622_v29 = vmul.f32 %v2102_v13, %v619_v22 }
  0xe3   : > { %v623_v51 = vmul.f32 %v2104_v32, %v620_v63  ;;  %v3000_v7 = vmul.f32 %v621_v50, %v2997_v39 }
  0xe4   : > { %v3005_v21 = vmul.f32 %v622_v29, %v2997_v39 }
  0xe5   : > { %v3007_v58 = vmul.f32 0.0, %v623_v51  ;;  %v3011_v28 = vmul.f32 %v2724_v1, %v3000_v7 }
  0xe6   : > { %v3015_v17 = vmul.f32 %v2728_v3, %v3005_v21  ;;  %v3029_v3 = vmul.f32 %v2736_v57, %v3000_v7  ;;  %v3035_v51 = vmul.f32 %v2740_v9, %v3005_v21 }
  0xe7   : > { %v3019_v22 = vmul.f32 %v2732_v31, %v3007_v58  ;;  %v630_v54 = vrot.slane %v3011_v28, 1  ;;  %v637_v13 = vrot.slane %v3011_v28, 7  ;;  %v3039_v25 = vmul.f32 %v2746_v11, %v3007_v58 }
  0xe8   : > { %v638_v59 = vrot.slane %v3015_v17, 7  ;;  %v631_v1 = vrot.slane %v3015_v17, 1  ;;  %v689_v29 = vrot.slane %v3029_v3, 7  ;;  %v690_v39 = vrot.slane %v3035_v51, 7 }
  0xe9   : > { %v632_v50 = vrot.slane %v3019_v22, 1  ;;  %v639_v31 = vrot.slane %v3019_v22, 7  ;;  %v3149_v41 = vmul.f32 %v2778_v26, %v3007_v58 }
  0xea   : > { %v635_v8 = vsel %vm633_vm1, %v630_v54, %v631_v1  ;;  %v642_v47 = vsel %vm640_vm2, %v637_v13, %v638_v59 }
  0xeb   : > { %v636_v57 = vsel %vm633_vm1, %v632_v50, %v630_v54  ;;  %v641_v56 = vsel %vm640_vm2, %v638_v59, %v639_v31  ;;  %v643_v9 = vsel %vm640_vm2, %v639_v31, %v637_v13  ;;  %v634_v32 = vsel %vm633_vm1, %v631_v1, %v632_v50  ;;  %4505 = vst [vmem:[#allocation39_spill] sm:$0xff] %v3149_v41 }
  0xec   : > { %v646_v11 = vadd.f32 %v641_v56, %v3019_v22  ;;  %v644_v46 = vadd.f32 %v643_v9, %v3011_v28  ;;  %v645_v63 = vadd.f32 %v642_v47, %v3015_v17  ;;  %v691_v54 = vrot.slane %v3039_v25, 7 }
  0xed   : > { %v684_v1 = vrot.slane %v3035_v51, 1  ;;  %v685_v50 = vrot.slane %v3039_v25, 1  ;;  %v693_v31 = vsel %vm640_vm2, %v689_v29, %v690_v39  ;;  %v683_v47 = vrot.slane %v3029_v3, 1 }
  0xee   : > { %v3059_v62 = vadd.f32 %v646_v11, %v636_v57  ;;  %v3061_v59 = vadd.f32 %v644_v46, %v635_v8  ;;  %v3063_v13 = vadd.f32 %v645_v63, %v634_v32  ;;  %v694_v8 = vsel %vm640_vm2, %v691_v54, %v689_v29 }
  0xef   : > { %v3078_v57 = vmul.f32 %v2752_v12, %v3000_v7  ;;  %v696_v56 = vadd.f32 %v693_v31, %v3035_v51  ;;  %v695_v9 = vadd.f32 %v694_v8, %v3029_v3  ;;  %v3088_v32 = vmul.f32 %v2758_v40, %v3005_v21 }
  0xf0   : > { %654 = vrot.lane.b32.xlu1 %v3059_v62, %s2244_s19  ;;  %650 = vrot.lane.b32.xlu0 %v3061_v59, %s2244_s19  ;;  %v686_v11 = vsel %vm633_vm1, %v684_v1, %v685_v50  ;;  %v687_v12 = vsel %vm633_vm1, %v683_v47, %v684_v1  ;;  %v692_v46 = vsel %vm640_vm2, %v690_v39, %v691_v54 }
  0xf1   : > { %4501 = vst [vmem:[#allocation35_spill] sm:$0xff] %v3078_v57  ;;  %4502 = vst [vmem:[#allocation36_spill] sm:$0xff] %v3088_v32  ;;  %v3098_v63 = vmul.f32 %v2763_v44, %v3007_v58  ;;  %v3104_v40 = vadd.f32 %v696_v56, %v686_v11  ;;  %v3106_v29 = vadd.f32 %v695_v9, %v687_v12  ;;  %v740_v39 = vrot.slane %v3078_v57, 7 }
  0xf2   : > { %v697_v31 = vadd.f32 %v692_v46, %v3039_v25  ;;  %v688_v1 = vsel %vm633_vm1, %v685_v50, %v683_v47  ;;  %v741_v44 = vrot.slane %v3088_v32, 7  ;;  %v735_v56 = vrot.slane %v3088_v32, 1 }
  0xf3   : > { %4503 = vst [vmem:[#allocation37_spill] sm:$0xff] %v3098_v63  ;;  %v742_v54 = vrot.slane %v3098_v63, 7  ;;  %v736_v9 = vrot.slane %v3098_v63, 1  ;;  %v734_v47 = vrot.slane %v3078_v57, 1  ;;  %v3129_v12 = vmul.f32 %v2768_v20, %v3000_v7 }
  0xf4   : > { %656 = vrot.lane.b32.xlu1 %v3061_v59, %s2245_s4  ;;  %652 = vrot.lane.b32.xlu0 %v3063_v13, %s2244_s19  ;;  %v3118_v8 = vadd.f32 %v697_v31, %v688_v1  ;;  %v744_v50 = vsel %vm640_vm2, %v740_v39, %v741_v44  ;;  %v3139_v1 = vmul.f32 %v2773_v0, %v3005_v21 }
  0xf5   : > { %v745_v11 = vsel %vm640_vm2, %v742_v54, %v740_v39  ;;  %v747_v46 = vadd.f32 %v744_v50, %v3088_v32  ;;  %v737_v39 = vsel %vm633_vm1, %v735_v56, %v736_v9  ;;  %v738_v20 = vsel %vm633_vm1, %v734_v47, %v735_v56 }
  0xf6   : > { %v746_v31 = vadd.f32 %v745_v11, %v3078_v57  ;;  %4504 = vst [vmem:[#allocation38_spill] sm:$0xff] %v3139_v1  ;;  %v743_v53 = vsel %vm640_vm2, %v741_v44, %v742_v54  ;;  %v739_v56 = vsel %vm633_vm1, %v736_v9, %v734_v47  ;;  %v791_v44 = vrot.slane %v3129_v12, 7 }
  0xf7   : > { %v3155_v0 = vadd.f32 %v747_v46, %v737_v39  ;;  %v748_v11 = vadd.f32 %v743_v53, %v3098_v63  ;;  %v792_v26 = vrot.slane %v3139_v1, 7  ;;  %v793_v54 = vrot.slane %v3149_v41, 7 }
  0xf8   : > { %660 = vrot.lane.b32.xlu1 %v3059_v62, %s2245_s4  ;;  %658 = vrot.lane.b32.xlu0 %v3063_v13, %s2245_s4  ;;  %v3157_v50 = vadd.f32 %v746_v31, %v738_v20  ;;  %v786_v32 = vrot.slane %v3139_v1, 1  ;;  %v787_v57 = vrot.slane %v3149_v41, 1  ;;  %v785_v47 = vrot.slane %v3129_v12, 1 }
  0xf9   : > { %v3171_v53 = vadd.f32 %v748_v11, %v739_v56  ;;  %v795_v9 = vsel %vm640_vm2, %v791_v44, %v792_v26  ;;  %v796_v46 = vsel %vm640_vm2, %v793_v54, %v791_v44  ;;  %v3188_v11 = vmul.f32 %v2783_v5, %v3000_v7 }
  0xfa   : > { %4506 = vst [vmem:[#allocation40_spill] sm:$0xff] %v3157_v50  ;;  %v788_v31 = vsel %vm633_vm1, %v786_v32, %v787_v57  ;;  %v798_v39 = vadd.f32 %v795_v9, %v3139_v1  ;;  %v797_v20 = vadd.f32 %v796_v46, %v3129_v12  ;;  %v789_v56 = vsel %vm633_vm1, %v785_v47, %v786_v32 }
  0xfb   : > { %4507 = vst [vmem:[#allocation41_spill] sm:$0xff] %v3188_v11  ;;  %v794_v44 = vsel %vm640_vm2, %v792_v26, %v793_v54  ;;  %v3196_v63 = vmul.f32 %v2788_v36, %v3005_v21  ;;  %v790_v36 = vsel %vm633_vm1, %v787_v57, %v785_v47  ;;  %v842_v54 = vrot.slane %v3188_v11, 7 }
  0xfc   : > { %703 = vrot.lane.b32.xlu1 %v3104_v40, %s2244_s19  ;;  %701 = vrot.lane.b32.xlu0 %v3106_v29, %s2244_s19  ;;  %v3206_v5 = vadd.f32 %v798_v39, %v788_v31  ;;  %v3208_v32 = vadd.f32 %v797_v20, %v789_v56  ;;  %v799_v26 = vadd.f32 %v794_v44, %v3149_v41  ;;  %v836_v39 = vrot.slane %v3188_v11, 1 }
  0xfd   : > { %4508 = vst [vmem:[#allocation42_spill] sm:$0xff] %v3196_v63  ;;  %v837_v31 = vrot.slane %v3196_v63, 1  ;;  %v3231_v56 = vmul.f32 %v2798_v42, %v3000_v7  ;;  %v3247_v1 = vmul.f32 %v2803_v43, %v3005_v21  ;;  %v3251_v41 = vmul.f32 %v2808_v18, %v3007_v58 }
  0xfe   : > { %v3220_v46 = vadd.f32 %v799_v26, %v790_v36 }
  0xff   : > { %v840_v26 = vsel %vm633_vm1, %v836_v39, %v837_v31  ;;  %4510 = vst [vmem:[#allocation44_spill] sm:$0xff] %v3247_v1  ;;  %4511 = vst [vmem:[#allocation45_spill] sm:$0xff] %v3251_v41  ;;  %v894_v18 = vrot.slane %v3247_v1, 7 }
 0x100   : > { %707 = vrot.lane.b32.xlu1 %v3106_v29, %s2245_s4  ;;  %705 = vrot.lane.b32.xlu0 %v3118_v8, %s2244_s19 }
 0x104   : > { %711 = vrot.lane.b32.xlu1 %v3118_v8, %s2245_s4  ;;  %709 = vrot.lane.b32.xlu0 %v3104_v40, %s2245_s4 }
 0x108   : > { %754 = vrot.lane.b32.xlu1 %v3155_v0, %s2244_s19  ;;  %752 = vrot.lane.b32.xlu0 %v3157_v50, %s2244_s19 }
 0x10c   : > { %758 = vrot.lane.b32.xlu1 %v3157_v50, %s2245_s4  ;;  %756 = vrot.lane.b32.xlu0 %v3171_v53, %s2244_s19  ;;  %v3200_v50 = vmul.f32 %v2793_v6, %v3007_v58  ;;  %v843_v6 = vrot.slane %v3196_v63, 7 }
 0x10e   : > { %4509 = vst [vmem:[#allocation43_spill] sm:$0xff] %v3200_v50  ;;  %v844_v9 = vrot.slane %v3200_v50, 7  ;;  %v838_v57 = vrot.slane %v3200_v50, 1  ;;  %v846_v47 = vsel %vm640_vm2, %v842_v54, %v843_v6 }
 0x10f   : > { %v849_v44 = vadd.f32 %v846_v47, %v3196_v63  ;;  %v888_v63 = vrot.slane %v3247_v1, 1 }
 0x110   : > { %762 = vrot.lane.b32.xlu1 %v3171_v53, %s2245_s4  ;;  %760 = vrot.lane.b32.xlu0 %v3155_v0, %s2245_s4  ;;  %v847_v20 = vsel %vm640_vm2, %v844_v9, %v842_v54  ;;  %v839_v54 = vsel %vm633_vm1, %v837_v31, %v838_v57  ;;  %v845_v42 = vsel %vm640_vm2, %v843_v6, %v844_v9  ;;  %v893_v9 = vrot.slane %v3231_v56, 7 }
 0x111   : > { %v848_v36 = vadd.f32 %v847_v20, %v3188_v11  ;;  %v3257_v47 = vadd.f32 %v849_v44, %v839_v54  ;;  %v850_v6 = vadd.f32 %v845_v42, %v3200_v50  ;;  %v841_v43 = vsel %vm633_vm1, %v838_v57, %v836_v39 }
 0x112   : > { %v895_v20 = vrot.slane %v3251_v41, 7  ;;  %v889_v11 = vrot.slane %v3251_v41, 1  ;;  %v897_v39 = vsel %vm640_vm2, %v893_v9, %v894_v18  ;;  %v887_v57 = vrot.slane %v3231_v56, 1 }
 0x113   : > { %v3259_v31 = vadd.f32 %v848_v36, %v840_v26  ;;  %v3273_v44 = vadd.f32 %v850_v6, %v841_v43  ;;  %v900_v54 = vadd.f32 %v897_v39, %v3247_v1  ;;  %v3290_v6 = vmul.f32 %v2813_v33, %v3000_v7 }
 0x114   : > { %805 = vrot.lane.b32.xlu1 %v3206_v5, %s2244_s19  ;;  %803 = vrot.lane.b32.xlu0 %v3208_v32, %s2244_s19  ;;  %v898_v26 = vsel %vm640_vm2, %v895_v20, %v893_v9  ;;  %v890_v36 = vsel %vm633_vm1, %v888_v63, %v889_v11  ;;  %v891_v43 = vsel %vm633_vm1, %v887_v57, %v888_v63 }
 0x115   : > { %4512 = vst [vmem:[#allocation46_spill] sm:$0xff] %v3259_v31  ;;  %v899_v42 = vadd.f32 %v898_v26, %v3231_v56  ;;  %v896_v9 = vsel %vm640_vm2, %v894_v18, %v895_v20  ;;  %v3298_v50 = vmul.f32 %v2818_v24, %v3005_v21  ;;  %v3308_v33 = vadd.f32 %v900_v54, %v890_v36 }
 0x116   : > { %v901_v18 = vadd.f32 %v896_v9, %v3251_v41  ;;  %v892_v24 = vsel %vm633_vm1, %v889_v11, %v887_v57  ;;  %v944_v20 = vrot.slane %v3290_v6, 7  ;;  %v938_v57 = vrot.slane %v3290_v6, 1 }
 0x117   : > { %4513 = vst [vmem:[#allocation47_spill] sm:$0xff] %v3298_v50  ;;  %v3310_v63 = vadd.f32 %v899_v42, %v891_v43  ;;  %v939_v36 = vrot.slane %v3298_v50, 1  ;;  %v3333_v43 = vmul.f32 %v2828_v4, %v3000_v7  ;;  %v3353_v41 = vmul.f32 %v2838_v37, %v3007_v58 }
 0x118   : > { %809 = vrot.lane.b32.xlu1 %v3208_v32, %s2245_s4  ;;  %807 = vrot.lane.b32.xlu0 %v3220_v46, %s2244_s19  ;;  %v3322_v26 = vadd.f32 %v901_v18, %v892_v24  ;;  %v3343_v24 = vmul.f32 %v2833_v52, %v3005_v21 }
 0x119   : > { %4515 = vst [vmem:[#allocation49_spill] sm:$0xff] %v3333_v43  ;;  %v942_v4 = vsel %vm633_vm1, %v938_v57, %v939_v36  ;;  %4517 = vst [vmem:[#allocation51_spill] sm:$0xff] %v3353_v41 }
 0x11a   : > { %4516 = vst [vmem:[#allocation50_spill] sm:$0xff] %v3343_v24  ;;  %v996_v37 = vrot.slane %v3343_v24, 7 }
 0x11c   : > { %813 = vrot.lane.b32.xlu1 %v3220_v46, %s2245_s4  ;;  %811 = vrot.lane.b32.xlu0 %v3206_v5, %s2245_s4 }
 0x120   : > { %856 = vrot.lane.b32.xlu1 %v3257_v47, %s2244_s19  ;;  %854 = vrot.lane.b32.xlu0 %v3259_v31, %s2244_s19 }
 0x124   : > { %860 = vrot.lane.b32.xlu1 %v3259_v31, %s2245_s4  ;;  %858 = vrot.lane.b32.xlu0 %v3273_v44, %s2244_s19  ;;  %v3302_v31 = vmul.f32 %v2823_v2, %v3007_v58  ;;  %v945_v2 = vrot.slane %v3298_v50, 7 }
 0x126   : > { %4514 = vst [vmem:[#allocation48_spill] sm:$0xff] %v3302_v31  ;;  %v946_v39 = vrot.slane %v3302_v31, 7  ;;  %v940_v54 = vrot.slane %v3302_v31, 1  ;;  %v948_v11 = vsel %vm640_vm2, %v944_v20, %v945_v2 }
 0x127   : > { %v951_v9 = vadd.f32 %v948_v11, %v3298_v50 }
 0x128   : > { %864 = vrot.lane.b32.xlu1 %v3273_v44, %s2245_s4  ;;  %862 = vrot.lane.b32.xlu0 %v3257_v47, %s2245_s4  ;;  %v949_v42 = vsel %vm640_vm2, %v946_v39, %v944_v20  ;;  %v941_v20 = vsel %vm633_vm1, %v939_v36, %v940_v54  ;;  %v947_v1 = vsel %vm640_vm2, %v945_v2, %v946_v39  ;;  %v995_v2 = vrot.slane %v3333_v43, 7 }
 0x129   : > { %v950_v18 = vadd.f32 %v949_v42, %v3290_v6  ;;  %v3359_v52 = vadd.f32 %v951_v9, %v941_v20  ;;  %v952_v42 = vadd.f32 %v947_v1, %v3302_v31  ;;  %v943_v36 = vsel %vm633_vm1, %v940_v54, %v938_v57 }
 0x12a   : > { %v997_v39 = vrot.slane %v3353_v41, 7  ;;  %v991_v1 = vrot.slane %v3353_v41, 1  ;;  %v999_v54 = vsel %vm640_vm2, %v995_v2, %v996_v37  ;;  %v989_v57 = vrot.slane %v3333_v43, 1 }
 0x12b   : > { %4518 = vst [vmem:[#allocation52_spill] sm:$0xff] %v3359_v52  ;;  %v3361_v11 = vadd.f32 %v950_v18, %v942_v4  ;;  %v3373_v9 = vadd.f32 %v952_v42, %v943_v36  ;;  %v990_v18 = vrot.slane %v3343_v24, 1  ;;  %v3384_v4 = vmul.f32 %v2843_v60, %v3000_v7 }
 0x12c   : > { %907 = vrot.lane.b32.xlu1 %v3308_v33, %s2244_s19  ;;  %905 = vrot.lane.b32.xlu0 %v3310_v63, %s2244_s19  ;;  %v1000_v20 = vsel %vm640_vm2, %v997_v39, %v995_v2  ;;  %v1002_v36 = vadd.f32 %v999_v54, %v3343_v24  ;;  %v998_v60 = vsel %vm640_vm2, %v996_v37, %v997_v39 }
 0x12d   : > { %4519 = vst [vmem:[#allocation53_spill] sm:$0xff] %v3361_v11  ;;  %4520 = vst [vmem:[#allocation54_spill] sm:$0xff] %v3373_v9  ;;  %v992_v42 = vsel %vm633_vm1, %v990_v18, %v991_v1  ;;  %v1001_v50 = vadd.f32 %v1000_v20, %v3333_v43  ;;  %v993_v2 = vsel %vm633_vm1, %v989_v57, %v990_v18  ;;  %v1046_v39 = vrot.slane %v3384_v4, 7 }
 0x12e   : > { %4521 = vst [vmem:[#allocation55_spill] sm:$0xff] %v3384_v4  ;;  %v3400_v31 = vmul.f32 %v2848_v14, %v3005_v21  ;;  %v3410_v54 = vadd.f32 %v1002_v36, %v992_v42  ;;  %v1003_v37 = vadd.f32 %v998_v60, %v3353_v41  ;;  %v994_v14 = vsel %vm633_vm1, %v991_v1, %v989_v57 }
 0x12f   : > { %v3412_v18 = vadd.f32 %v1001_v50, %v993_v2  ;;  %v1040_v43 = vrot.slane %v3384_v4, 1  ;;  %v3451_v41 = vmul.f32 %v2863_v23, %v3005_v21 }
 0x130   : > { %911 = vrot.lane.b32.xlu1 %v3310_v63, %s2245_s4  ;;  %909 = vrot.lane.b32.xlu0 %v3322_v26, %s2244_s19  ;;  %4522 = vst [vmem:[#allocation56_spill] sm:$0xff] %v3400_v31  ;;  %4524 = vst [vmem:[#allocation58_spill] sm:$0xff] %v3410_v54  ;;  %v1041_v24 = vrot.slane %v3400_v31, 1  ;;  %v3426_v50 = vadd.f32 %v1003_v37, %v994_v14  ;;  %v3443_v37 = vmul.f32 %v2858_v49, %v3000_v7 }
 0x131   : > { %4525 = vst [vmem:[#allocation59_spill] sm:$0xff] %v3412_v18  ;;  %4528 = vst [vmem:[#allocation62_spill] sm:$0xff] %v3451_v41 }
 0x132   : > { %4526 = vst [vmem:[#allocation60_spill] sm:$0xff] %v3426_v50  ;;  %v1044_v36 = vsel %vm633_vm1, %v1040_v43, %v1041_v24  ;;  %4527 = vst [vmem:[#allocation61_spill] sm:$0xff] %v3443_v37 }
 0x134   : > { %915 = vrot.lane.b32.xlu1 %v3322_v26, %s2245_s4  ;;  %913 = vrot.lane.b32.xlu0 %v3308_v33, %s2245_s4 }
 0x138   : > { %958 = vrot.lane.b32.xlu1 %v3359_v52, %s2244_s19  ;;  %956 = vrot.lane.b32.xlu0 %v3361_v11, %s2244_s19 }
 0x13c   : > { %962 = vrot.lane.b32.xlu1 %v3361_v11, %s2245_s4  ;;  %960 = vrot.lane.b32.xlu0 %v3373_v9, %s2244_s19  ;;  %v3404_v11 = vmul.f32 %v2853_v19, %v3007_v58  ;;  %v1047_v19 = vrot.slane %v3400_v31, 7 }
 0x13e   : > { %4523 = vst [vmem:[#allocation57_spill] sm:$0xff] %v3404_v11  ;;  %v1048_v20 = vrot.slane %v3404_v11, 7  ;;  %v1042_v1 = vrot.slane %v3404_v11, 1  ;;  %v1050_v57 = vsel %vm640_vm2, %v1046_v39, %v1047_v19 }
 0x13f   : > { %v1053_v2 = vadd.f32 %v1050_v57, %v3400_v31  ;;  %v3506_v31 = vmul.f32 %v2883_v45, %v3007_v58 }
 0x140   : > { %966 = vrot.lane.b32.xlu1 %v3373_v9, %s2245_s4  ;;  %964 = vrot.lane.b32.xlu0 %v3359_v52, %s2245_s4  ;;  %v1051_v42 = vsel %vm640_vm2, %v1048_v20, %v1046_v39  ;;  %v1043_v14 = vsel %vm633_vm1, %v1041_v24, %v1042_v1  ;;  %v1049_v39 = vsel %vm640_vm2, %v1047_v19, %v1048_v20  ;;  %v1097_v20 = vrot.slane %v3443_v37, 7 }
 0x141   : > { %v1052_v60 = vadd.f32 %v1051_v42, %v3384_v4  ;;  %v3461_v49 = vadd.f32 %v1053_v2, %v1043_v14  ;;  %v1054_v19 = vadd.f32 %v1049_v39, %v3404_v11  ;;  %v1045_v23 = vsel %vm633_vm1, %v1042_v1, %v1040_v43  ;;  %4535 = vst [vmem:[#allocation69_spill] sm:$0xff] %v3506_v31 }
 0x142   : > { %v1091_v1 = vrot.slane %v3443_v37, 1  ;;  %v3486_v14 = vmul.f32 %v2873_v35, %v3000_v7  ;;  %v3490_v39 = vmul.f32 %v2878_v61, %v3005_v21  ;;  %v663_v9 = vmul.f32 9.0, %v3015_v17 }
 0x143   : > { %4530 = vst [vmem:[#allocation64_spill] sm:$0xff] %v3461_v49  ;;  %v3463_v24 = vadd.f32 %v1052_v60, %v1044_v36  ;;  %v3475_v42 = vadd.f32 %v1054_v19, %v1045_v23  ;;  %v1092_v36 = vrot.slane %v3451_v41, 1 }
 0x144   : > { %1009 = vrot.lane.b32.xlu1 %v3410_v54, %s2244_s19  ;;  %1007 = vrot.lane.b32.xlu0 %v3412_v18, %s2244_s19  ;;  %4533 = vst [vmem:[#allocation67_spill] sm:$0xff] %v3486_v14  ;;  %4534 = vst [vmem:[#allocation68_spill] sm:$0xff] %v3490_v39  ;;  %v1149_v45 = vrot.slane %v3490_v39, 7 }
 0x145   : > { %4531 = vst [vmem:[#allocation65_spill] sm:$0xff] %v3463_v24  ;;  %4532 = vst [vmem:[#allocation66_spill] sm:$0xff] %v3475_v42  ;;  %v1095_v61 = vsel %vm633_vm1, %v1091_v1, %v1092_v36 }
 0x148   : > { %1013 = vrot.lane.b32.xlu1 %v3412_v18, %s2245_s4  ;;  %1011 = vrot.lane.b32.xlu0 %v3426_v50, %s2244_s19  ;;  %v3455_v18 = vmul.f32 %v2868_v10, %v3007_v58  ;;  %v1098_v10 = vrot.slane %v3451_v41, 7 }
 0x14a   : > { %4529 = vst [vmem:[#allocation63_spill] sm:$0xff] %v3455_v18  ;;  %v1099_v57 = vrot.slane %v3455_v18, 7  ;;  %v1093_v2 = vrot.slane %v3455_v18, 1  ;;  %v1101_v43 = vsel %vm640_vm2, %v1097_v20, %v1098_v10 }
 0x14b   : > { %v1104_v19 = vadd.f32 %v1101_v43, %v3451_v41 }
 0x14c   : > { %1017 = vrot.lane.b32.xlu1 %v3426_v50, %s2245_s4  ;;  %1015 = vrot.lane.b32.xlu0 %v3410_v54, %s2245_s4  ;;  %v1102_v60 = vsel %vm640_vm2, %v1099_v57, %v1097_v20  ;;  %v1100_v20 = vsel %vm640_vm2, %v1098_v10, %v1099_v57  ;;  %v1094_v35 = vsel %vm633_vm1, %v1092_v36, %v1093_v2  ;;  %v1148_v36 = vrot.slane %v3486_v14, 7 }
 0x14d   : > { %v1103_v23 = vadd.f32 %v1102_v60, %v3443_v37  ;;  %v1096_v11 = vsel %vm633_vm1, %v1093_v2, %v1091_v1  ;;  %v1105_v43 = vadd.f32 %v1100_v20, %v3455_v18  ;;  %v3515_v10 = vadd.f32 %v1104_v19, %v1094_v35 }
 0x14e   : > { %v1150_v60 = vrot.slane %v3506_v31, 7  ;;  %v1143_v2 = vrot.slane %v3490_v39, 1  ;;  %v1144_v1 = vrot.slane %v3506_v31, 1  ;;  %v1152_v19 = vsel %vm640_vm2, %v1148_v36, %v1149_v45 }
 0x14f   : > { %4536 = vst [vmem:[#allocation70_spill] sm:$0xff] %v3515_v10  ;;  %v3517_v57 = vadd.f32 %v1103_v23, %v1095_v61  ;;  %v3522_v41 = vadd.f32 %v1105_v43, %v1096_v11  ;;  %v3534_v23 = vmul.f32 %v2888_v27, %v3000_v7  ;;  %v3538_v11 = vmul.f32 %v2898_v55, %v3007_v58 }
 0x150   : > { %1060 = vrot.lane.b32.xlu1 %v3461_v49, %s2244_s19  ;;  %1058 = vrot.lane.b32.xlu0 %v3463_v24, %s2244_s19  ;;  %v1142_v20 = vrot.slane %v3486_v14, 1  ;;  %v1153_v35 = vsel %vm640_vm2, %v1150_v60, %v1148_v36  ;;  %v1155_v61 = vadd.f32 %v1152_v19, %v3490_v39  ;;  %v1145_v27 = vsel %vm633_vm1, %v1143_v2, %v1144_v1 }
 0x151   : > { %4537 = vst [vmem:[#allocation71_spill] sm:$0xff] %v3517_v57  ;;  %4538 = vst [vmem:[#allocation72_spill] sm:$0xff] %v3522_v41  ;;  %v1154_v43 = vadd.f32 %v1153_v35, %v3486_v14  ;;  %v1199_v55 = vrot.slane %v3534_v23, 7  ;;  %v1201_v18 = vrot.slane %v3538_v11, 7  ;;  %v3557_v19 = vmul.f32 %v2893_v30, %v3005_v21 }
 0x152   : > { %4539 = vst [vmem:[#allocation73_spill] sm:$0xff] %v3534_v23  ;;  %v1146_v36 = vsel %vm633_vm1, %v1142_v20, %v1143_v2  ;;  %v3559_v37 = vadd.f32 %v1155_v61, %v1145_v27  ;;  %v1151_v2 = vsel %vm640_vm2, %v1149_v45, %v1150_v60  ;;  %v3587_v60 = vmul.f32 %v2903_v48, %v3000_v7 }
 0x153   : > { %4540 = vst [vmem:[#allocation74_spill] sm:$0xff] %v3557_v19  ;;  %v3565_v35 = vadd.f32 %v1154_v43, %v1146_v36  ;;  %v1204_v14 = vsel %vm640_vm2, %v1201_v18, %v1199_v55  ;;  %v1200_v30 = vrot.slane %v3557_v19, 7  ;;  %v1194_v61 = vrot.slane %v3557_v19, 1 }
 0x154   : > { %1064 = vrot.lane.b32.xlu1 %v3463_v24, %s2245_s4  ;;  %1062 = vrot.lane.b32.xlu0 %v3475_v42, %s2244_s19  ;;  %4541 = vst [vmem:[#allocation75_spill] sm:$0xff] %v3559_v37  ;;  %v1147_v43 = vsel %vm633_vm1, %v1144_v1, %v1142_v20  ;;  %v1156_v36 = vadd.f32 %v1151_v2, %v3506_v31  ;;  %v4544_v31 = vld [vmem:[#allocation11_spill] sm:$0xff] }
 0x155   : > { %4542 = vst [vmem:[#allocation76_spill] sm:$0xff] %v3565_v35  ;;  %v1203_v45 = vsel %vm640_vm2, %v1199_v55, %v1200_v30  ;;  %v3597_v24 = vmul.f32 %v4544_v31, %v3005_v21  ;;  %v1250_v31 = vrot.slane %v3587_v60, 7 }
 0x156   : > { %v3599_v4 = vadd.f32 %v1156_v36, %v1147_v43  ;;  %v1206_v48 = vadd.f32 %v1203_v45, %v3557_v19 }
 0x157   : > { %v1245_v45 = vrot.slane %v3597_v24, 1 }
 0x158   : > { %1068 = vrot.lane.b32.xlu1 %v3475_v42, %s2245_s4  ;;  %1066 = vrot.lane.b32.xlu0 %v3461_v49, %s2245_s4  ;;  %v1193_v49 = vrot.slane %v3534_v23, 1 }
 0x15a   : > { %v1197_v20 = vsel %vm633_vm1, %v1193_v49, %v1194_v61 }
 0x15c   : > { %1111 = vrot.lane.b32.xlu1 %v3515_v10, %s2244_s19  ;;  %1109 = vrot.lane.b32.xlu0 %v3517_v57, %s2244_s19 }
 0x160   : > { %1115 = vrot.lane.b32.xlu1 %v3517_v57, %s2245_s4  ;;  %1113 = vrot.lane.b32.xlu0 %v3522_v41, %s2244_s19 }
 0x162   : > { %v655_v39 = vpop.permute.xlu1 %654  ;;  %v651_v57 = vpop.permute.xlu0 %650 }
 0x164   : > { %1119 = vrot.lane.b32.xlu1 %v3522_v41, %s2245_s4  ;;  %1117 = vrot.lane.b32.xlu0 %v3515_v10, %s2245_s4  ;;  %v1205_v41 = vadd.f32 %v1204_v14, %v3534_v23  ;;  %v1195_v10 = vrot.slane %v3538_v11, 1  ;;  %v4543_v14 = vld [vmem:[#allocation12_spill] sm:$0xff] }
 0x165   : > { %v3591_v1 = vmul.f32 %v4543_v14, %v3007_v58 }
 0x166   : > { %v657_v27 = vpop.permute.xlu1 %656  ;;  %v653_v42 = vpop.permute.xlu0 %652  ;;  %v1196_v55 = vsel %vm633_vm1, %v1194_v61, %v1195_v10  ;;  %v3609_v14 = vadd.f32 %v1205_v41, %v1197_v20  ;;  %v662_v41 = vmul.f32 9.0, %v3011_v28 }
 0x167   : > { %v665_v54 = vadd.f32 %v657_v27, %v3061_v59  ;;  %v1252_v43 = vrot.slane %v3591_v1, 7  ;;  %v3615_v19 = vadd.f32 %v1206_v48, %v1196_v55  ;;  %v1202_v59 = vsel %vm640_vm2, %v1200_v30, %v1201_v18 }
 0x168   : > { %1168 = vrot.lane.b32.xlu1 %v3559_v37, %s2245_s4  ;;  %1166 = vrot.lane.b32.xlu0 %v3565_v35, %s2245_s4  ;;  %v1251_v27 = vrot.slane %v3597_v24, 7  ;;  %v664_v48 = vmul.f32 9.0, %v3019_v22  ;;  %v713_v30 = vmul.f32 9.0, %v3029_v3 }
 0x169   : > { %v668_v20 = vadd.f32 %v665_v54, %v651_v57  ;;  %v1255_v55 = vsel %vm640_vm2, %v1252_v43, %v1250_v31  ;;  %v4545_v54 = vrot.slane %v3587_v60, 1  ;;  %v1198_v57 = vsel %vm633_vm1, %v1195_v10, %v1193_v49 }
 0x16a   : > { %v661_v2 = vpop.permute.xlu1 %660  ;;  %v659_v23 = vpop.permute.xlu0 %658  ;;  %v1254_v3 = vsel %vm640_vm2, %v1250_v31, %v1251_v27  ;;  %v715_v31 = vmul.f32 9.0, %v3039_v25 }
 0x16b   : > { %v666_v18 = vadd.f32 %v659_v23, %v3063_v13  ;;  %v1256_v13 = vadd.f32 %v1255_v55, %v3587_v60  ;;  %v3645_v23 = vmul.f32 %v2918_v15, %v3000_v7  ;;  %v671_v52 = vsub.f32 %v662_v41, %v668_v20 }
 0x16c   : > { %1162 = vrot.lane.b32.xlu1 %v3559_v37, %s2244_s19  ;;  %1160 = vrot.lane.b32.xlu0 %v3565_v35, %s2244_s19  ;;  %v667_v35 = vadd.f32 %v661_v2, %v3059_v62  ;;  %v1248_v62 = vsel %vm633_vm1, %v4545_v54, %v1245_v45  ;;  %v1207_v2 = vadd.f32 %v1202_v59, %v3538_v11  ;;  %v1246_v37 = vrot.slane %v3591_v1, 1 }
 0x16d   : > { %v669_v49 = vadd.f32 %v666_v18, %v653_v42  ;;  %v714_v15 = vmul.f32 9.0, %v3035_v51  ;;  %v1257_v59 = vadd.f32 %v1254_v3, %v3597_v24  ;;  %v3665_v41 = vmul.f32 %v2923_v16, %v3005_v21 }
 0x16e   : > { %v704_v36 = vpop.permute.xlu1 %703  ;;  %v702_v50 = vpop.permute.xlu0 %701  ;;  %v670_v54 = vadd.f32 %v667_v35, %v655_v39  ;;  %v3658_v35 = vadd.f32 %v1207_v2, %v1198_v57  ;;  %v1247_v17 = vsel %vm633_vm1, %v1245_v45, %v1246_v37  ;;  %v3669_v42 = vadd.f32 %v1256_v13, %v1248_v62 }
 0x16f   : > { %v674_v51 = vand.u32 2147483647, %v671_v52  ;;  %v1301_v45 = vrot.slane %v3645_v23, 7  ;;  %v672_v55 = vsub.f32 %v663_v9, %v669_v49  ;;  %v1253_v52 = vsel %vm640_vm2, %v1251_v27, %v1252_v43  ;;  %v4546_v49 = vld [vmem:[#allocation35_spill] sm:$0xff] }
 0x170   : > { %1217 = vrot.lane.b32.xlu1 %v3609_v14, %s2245_s4  ;;  %1170 = vrot.lane.b32.xlu0 %v3599_v4, %s2245_s4  ;;  %v673_v20 = vsub.f32 %v664_v48, %v670_v54  ;;  %v1295_v9 = vrot.slane %v3645_v23, 1 }
 0x171   : > { %v675_v3 = vand.u32 2147483647, %v672_v55  ;;  %v4549_v55 = vld [vmem:[#allocation13_spill] sm:$0xff] }
 0x172   : > { %v708_v61 = vpop.permute.xlu1 %707  ;;  %v706_v28 = vpop.permute.xlu0 %705  ;;  %v676_v13 = vand.u32 2147483647, %v673_v20 }
 0x173   : > { %v716_v22 = vadd.f32 %v708_v61, %v3106_v29  ;;  %v3654_v29 = vmul.f32 %v2928_v34, %v3007_v58 }
 0x174   : > { %1164 = vrot.lane.b32.xlu1 %v3599_v4, %s2244_s19  ;;  %1219 = vrot.lane.b32.xlu0 %v3615_v19, %s2245_s4 }
 0x175   : > { %v719_v10 = vadd.f32 %v716_v22, %v702_v50  ;;  %v1303_v16 = vrot.slane %v3654_v29, 7  ;;  %v3679_v22 = vadd.f32 %v1257_v59, %v1247_v17  ;;  %v1258_v17 = vadd.f32 %v1253_v52, %v3591_v1  ;;  %v4551_v52 = vld [vmem:[#allocation15_spill] sm:$0xff] }
 0x176   : > { %v712_v61 = vpop.permute.xlu1 %711  ;;  %v710_v39 = vpop.permute.xlu0 %709 }
 0x177   : > { %v722_v34 = vsub.f32 %v713_v30, %v719_v10  ;;  %v718_v50 = vadd.f32 %v712_v61, %v3118_v8  ;;  %v717_v25 = vadd.f32 %v710_v39, %v3104_v40  ;;  %v1306_v54 = vsel %vm640_vm2, %v1303_v16, %v1301_v45 }
 0x178   : > { %1213 = vrot.lane.b32.xlu1 %v3615_v19, %s2244_s19  ;;  %1211 = vrot.lane.b32.xlu0 %v3609_v14, %s2244_s19  ;;  %v764_v10 = vmul.f32 9.0, %v4546_v49  ;;  %v4547_v61 = vrot.slane %v3587_v60, 1  ;;  %v1307_v20 = vadd.f32 %v1306_v54, %v3645_v23 }
 0x179   : > { %v725_v18 = vand.u32 2147483647, %v722_v34  ;;  %v721_v30 = vadd.f32 %v718_v50, %v706_v28  ;;  %v720_v8 = vadd.f32 %v717_v25, %v704_v36  ;;  %v1296_v36 = vrot.slane %v3665_v41, 1  ;;  %v4548_v50 = vld [vmem:[#allocation40_spill] sm:$0xff] }
 0x17a   : > { %v755_v57 = vpop.permute.xlu1 %754  ;;  %v753_v40 = vpop.permute.xlu0 %752  ;;  %v1302_v28 = vrot.slane %v3665_v41, 7  ;;  %v1249_v39 = vsel %vm633_vm1, %v1246_v37, %v4547_v61 }
 0x17b   : > { %v728_v48 = vadd.f32 %v725_v18, %v674_v51  ;;  %v724_v62 = vsub.f32 %v715_v31, %v721_v30  ;;  %v723_v2 = vsub.f32 %v714_v15, %v720_v8  ;;  %v1297_v51 = vrot.slane %v3654_v29, 1 }
 0x17c   : > { %1268 = vrot.lane.b32.xlu1 %v3669_v42, %s2245_s4  ;;  %1221 = vrot.lane.b32.xlu0 %v3658_v35, %s2245_s4  ;;  %v3707_v18 = vmul.f32 %v4549_v55, %v3000_v7  ;;  %v1299_v30 = vsel %vm633_vm1, %v1295_v9, %v1296_v36  ;;  %v1305_v8 = vsel %vm640_vm2, %v1301_v45, %v1302_v28 }
 0x17d   : > { %v727_v43 = vand.u32 2147483647, %v724_v62  ;;  %v726_v27 = vand.u32 2147483647, %v723_v2  ;;  %v3715_v62 = vmul.f32 %v4551_v52, %v3007_v58  ;;  %v4553_v2 = vld [vmem:[#allocation37_spill] sm:$0xff]  ;;  %v3719_v49 = vadd.f32 %v1258_v17, %v1249_v39  ;;  %v4555_v39 = vld [vmem:[#allocation14_spill] sm:$0xff] }
 0x17e   : > { %v759_v31 = vpop.permute.xlu1 %758  ;;  %v757_v15 = vpop.permute.xlu0 %756  ;;  %4550 = vst [vmem:[#allocation12_spill] sm:$0xff] %v3707_v18  ;;  %v1298_v45 = vsel %vm633_vm1, %v1296_v36, %v1297_v51 }
 0x17f   : > { %v730_v59 = vadd.f32 %v727_v43, %v676_v13  ;;  %v729_v34 = vadd.f32 %v726_v27, %v675_v3  ;;  %v767_v25 = vadd.f32 %v759_v31, %v4548_v50  ;;  %4552 = vst [vmem:[#allocation11_spill] sm:$0xff] %v3715_v62  ;;  %v766_v13 = vmul.f32 9.0, %v4553_v2  ;;  %v4554_v43 = vld [vmem:[#allocation36_spill] sm:$0xff] }
 0x180   : > { %1215 = vrot.lane.b32.xlu1 %v3658_v35, %s2244_s19  ;;  %1270 = vrot.lane.b32.xlu0 %v3679_v22, %s2245_s4  ;;  %v765_v27 = vmul.f32 9.0, %v4554_v43  ;;  %v3729_v50 = vadd.f32 %v1307_v20, %v1299_v30  ;;  %v1354_v36 = vrot.slane %v3715_v62, 7  ;;  %v1304_v20 = vsel %vm640_vm2, %v1302_v28, %v1303_v16 }
 0x181   : > { %v770_v37 = vadd.f32 %v767_v25, %v753_v40  ;;  %v1308_v25 = vadd.f32 %v1305_v8, %v3665_v41  ;;  %v815_v16 = vmul.f32 9.0, %v3129_v12 }
 0x182   : > { %v763_v3 = vpop.permute.xlu1 %762  ;;  %v761_v54 = vpop.permute.xlu0 %760 }
 0x183   : > { %v773_v31 = vsub.f32 %v764_v10, %v770_v37  ;;  %v769_v40 = vadd.f32 %v763_v3, %v3171_v53  ;;  %v768_v61 = vadd.f32 %v761_v54, %v3155_v0  ;;  %v3734_v10 = vmul.f32 %v4555_v39, %v3005_v21 }
 0x184   : > { %1264 = vrot.lane.b32.xlu1 %v3679_v22, %s2244_s19  ;;  %1262 = vrot.lane.b32.xlu0 %v3669_v42, %s2244_s19  ;;  %v1352_v53 = vrot.slane %v3707_v18, 7  ;;  %v1348_v39 = vrot.slane %v3715_v62, 1 }
 0x185   : > { %v776_v0 = vand.u32 2147483647, %v773_v31  ;;  %v772_v17 = vadd.f32 %v769_v40, %v757_v15  ;;  %v771_v55 = vadd.f32 %v768_v61, %v755_v57  ;;  %v3746_v15 = vadd.f32 %v1308_v25, %v1298_v45 }
 0x186   : > { %v806_v37 = vpop.permute.xlu1 %805  ;;  %v804_v52 = vpop.permute.xlu0 %803  ;;  %v1346_v57 = vrot.slane %v3707_v18, 1  ;;  %v1347_v30 = vrot.slane %v3734_v10, 1  ;;  %v1300_v31 = vsel %vm633_vm1, %v1297_v51, %v1295_v9  ;;  %v1309_v40 = vadd.f32 %v1304_v20, %v3654_v29  ;;  %v4561_v20 = vld [vmem:[#allocation38_spill] sm:$0xff] }
 0x187   : > { %v779_v2 = vadd.f32 %v776_v0, %v728_v48  ;;  %v775_v3 = vsub.f32 %v766_v13, %v772_v17  ;;  %v774_v43 = vsub.f32 %v765_v27, %v771_v55  ;;  %v1357_v13 = vsel %vm640_vm2, %v1354_v36, %v1352_v53  ;;  %v4556_v0 = vld [vmem:[#allocation16_spill] sm:$0xff]  ;;  %v4560_v55 = vld [vmem:[#allocation39_spill] sm:$0xff] }
 0x188   : > { %1319 = vrot.lane.b32.xlu1 %v3729_v50, %s2245_s4  ;;  %1272 = vrot.lane.b32.xlu0 %v3719_v49, %s2245_s4  ;;  %v1353_v27 = vrot.slane %v3734_v10, 7  ;;  %v1358_v12 = vadd.f32 %v1357_v13, %v3707_v18  ;;  %v3766_v17 = vmul.f32 %v4556_v0, %v3000_v7  ;;  %v3778_v13 = vadd.f32 %v1309_v40, %v1300_v31  ;;  %v4563_v31 = vld [vmem:[#allocation17_spill] sm:$0xff] }
 0x189   : > { %v778_v48 = vand.u32 2147483647, %v775_v3  ;;  %v777_v8 = vand.u32 2147483647, %v774_v43  ;;  %v817_v3 = vmul.f32 9.0, %v4560_v55 }
 0x18a   : > { %v810_v28 = vpop.permute.xlu1 %809  ;;  %v808_v54 = vpop.permute.xlu0 %807  ;;  %4557 = vst [vmem:[#allocation35_spill] sm:$0xff] %v3766_v17 }
 0x18b   : > { %v781_v61 = vadd.f32 %v778_v48, %v730_v59  ;;  %v780_v45 = vadd.f32 %v777_v8, %v729_v34  ;;  %v818_v25 = vadd.f32 %v810_v28, %v3208_v32  ;;  %v1350_v59 = vsel %vm633_vm1, %v1346_v57, %v1347_v30  ;;  %v4558_v34 = vld [vmem:[#allocation18_spill] sm:$0xff] }
 0x18c   : > { %1266 = vrot.lane.b32.xlu1 %v3719_v49, %s2244_s19  ;;  %1321 = vrot.lane.b32.xlu0 %v3746_v15, %s2245_s4  ;;  %v1356_v32 = vsel %vm640_vm2, %v1352_v53, %v1353_v27  ;;  %v3774_v51 = vmul.f32 %v4558_v34, %v3007_v58  ;;  %v816_v48 = vmul.f32 9.0, %v4561_v20  ;;  %v1349_v53 = vsel %vm633_vm1, %v1347_v30, %v1348_v39 }
 0x18d   : > { %v821_v9 = vadd.f32 %v818_v25, %v804_v52  ;;  %v3788_v0 = vadd.f32 %v1358_v12, %v1350_v59  ;;  %v1359_v34 = vadd.f32 %v1356_v32, %v3734_v10  ;;  %v1355_v12 = vsel %vm640_vm2, %v1353_v27, %v1354_v36  ;;  %v4565_v36 = vld [vmem:[#allocation41_spill] sm:$0xff] }
 0x18e   : > { %4559 = vst [vmem:[#allocation40_spill] sm:$0xff] %v3774_v51  ;;  %v814_v43 = vpop.permute.xlu1 %813  ;;  %v812_v8 = vpop.permute.xlu0 %811  ;;  %v1405_v30 = vrot.slane %v3774_v51, 7  ;;  %v866_v27 = vmul.f32 9.0, %v4565_v36 }
 0x18f   : > { %v824_v28 = vsub.f32 %v815_v16, %v821_v9  ;;  %v820_v52 = vadd.f32 %v814_v43, %v3220_v46  ;;  %v819_v25 = vadd.f32 %v812_v8, %v3206_v5  ;;  %4562 = vst [vmem:[#allocation13_spill] sm:$0xff] %v3788_v0  ;;  %v3793_v16 = vmul.f32 %v4563_v31, %v3005_v21 }
 0x190   : > { %1315 = vrot.lane.b32.xlu1 %v3746_v15, %s2244_s19  ;;  %1313 = vrot.lane.b32.xlu0 %v3729_v50, %s2244_s19  ;;  %v1403_v46 = vrot.slane %v3766_v17, 7  ;;  %v3803_v59 = vadd.f32 %v1359_v34, %v1349_v53  ;;  %v1360_v53 = vadd.f32 %v1355_v12, %v3715_v62 }
 0x191   : > { %v827_v5 = vand.u32 2147483647, %v824_v28  ;;  %v823_v40 = vadd.f32 %v820_v52, %v808_v54  ;;  %v822_v9 = vadd.f32 %v819_v25, %v806_v37  ;;  %v1397_v37 = vrot.slane %v3766_v17, 1 }
 0x192   : > { %v857_v55 = vpop.permute.xlu1 %856  ;;  %v855_v43 = vpop.permute.xlu0 %854  ;;  %4564 = vst [vmem:[#allocation15_spill] sm:$0xff] %v3803_v59  ;;  %v1398_v54 = vrot.slane %v3793_v16, 1  ;;  %v1351_v25 = vsel %vm633_vm1, %v1348_v39, %v1346_v57  ;;  %v4569_v39 = vld [vmem:[#allocation21_spill] sm:$0xff] }
 0x193   : > { %v830_v20 = vadd.f32 %v827_v5, %v779_v2  ;;  %v826_v8 = vsub.f32 %v817_v3, %v823_v40  ;;  %v825_v18 = vsub.f32 %v816_v48, %v822_v9  ;;  %v1408_v2 = vsel %vm640_vm2, %v1405_v30, %v1403_v46  ;;  %v4566_v5 = vld [vmem:[#allocation46_spill] sm:$0xff] }
 0x194   : > { %1370 = vrot.lane.b32.xlu1 %v3788_v0, %s2245_s4  ;;  %1323 = vrot.lane.b32.xlu0 %v3778_v13, %s2245_s4  ;;  %v1404_v3 = vrot.slane %v3793_v16, 7  ;;  %v1409_v9 = vadd.f32 %v1408_v2, %v3766_v17  ;;  %v3831_v12 = vmul.f32 %v4569_v39, %v3007_v58  ;;  %v3835_v62 = vadd.f32 %v1360_v53, %v1351_v25  ;;  %v4573_v25 = vld [vmem:[#allocation20_spill] sm:$0xff] }
 0x195   : > { %v829_v32 = vand.u32 2147483647, %v826_v8  ;;  %v828_v28 = vand.u32 2147483647, %v825_v18  ;;  %v1399_v18 = vrot.slane %v3774_v51, 1  ;;  %v4567_v8 = vld [vmem:[#allocation19_spill] sm:$0xff] }
 0x196   : > { %v861_v48 = vpop.permute.xlu1 %860  ;;  %v859_v52 = vpop.permute.xlu0 %858  ;;  %v3823_v36 = vmul.f32 %v4567_v8, %v3000_v7  ;;  %4570 = vst [vmem:[#allocation36_spill] sm:$0xff] %v3831_v12 }
 0x197   : > { %v832_v34 = vadd.f32 %v829_v32, %v781_v61  ;;  %v831_v31 = vadd.f32 %v828_v28, %v780_v45  ;;  %v869_v40 = vadd.f32 %v861_v48, %v4566_v5  ;;  %v1401_v61 = vsel %vm633_vm1, %v1397_v37, %v1398_v54  ;;  %v4571_v32 = vld [vmem:[#allocation43_spill] sm:$0xff]  ;;  %v4572_v5 = vld [vmem:[#allocation42_spill] sm:$0xff] }
 0x198   : > { %1317 = vrot.lane.b32.xlu1 %v3778_v13, %s2244_s19  ;;  %1372 = vrot.lane.b32.xlu0 %v3803_v59, %s2245_s4  ;;  %4568 = vst [vmem:[#allocation37_spill] sm:$0xff] %v3823_v36  ;;  %v1407_v45 = vsel %vm640_vm2, %v1403_v46, %v1404_v3  ;;  %v868_v28 = vmul.f32 9.0, %v4571_v32  ;;  %v867_v2 = vmul.f32 9.0, %v4572_v5  ;;  %v1400_v46 = vsel %vm633_vm1, %v1398_v54, %v1399_v18 }
 0x199   : > { %v872_v57 = vadd.f32 %v869_v40, %v855_v43  ;;  %v3845_v39 = vadd.f32 %v1409_v9, %v1401_v61  ;;  %v1410_v32 = vadd.f32 %v1407_v45, %v3793_v16  ;;  %v1456_v54 = vrot.slane %v3831_v12, 7 }
 0x19a   : > { %v865_v48 = vpop.permute.xlu1 %864  ;;  %v863_v17 = vpop.permute.xlu0 %862  ;;  %v1406_v9 = vsel %vm640_vm2, %v1404_v3, %v1405_v30  ;;  %v917_v30 = vmul.f32 9.0, %v3231_v56 }
 0x19b   : > { %v875_v8 = vsub.f32 %v866_v27, %v872_v57  ;;  %v871_v43 = vadd.f32 %v865_v48, %v3273_v44  ;;  %v870_v40 = vadd.f32 %v863_v17, %v3257_v47  ;;  %v3850_v27 = vmul.f32 %v4573_v25, %v3005_v21 }
 0x19c   : > { %1366 = vrot.lane.b32.xlu1 %v3803_v59, %s2244_s19  ;;  %1364 = vrot.lane.b32.xlu0 %v3788_v0, %s2244_s19  ;;  %v1454_v44 = vrot.slane %v3823_v36, 7  ;;  %v3860_v61 = vadd.f32 %v1410_v32, %v1400_v46 }
 0x19d   : > { %4574 = vst [vmem:[#allocation14_spill] sm:$0xff] %v3850_v27  ;;  %v878_v47 = vand.u32 2147483647, %v875_v8  ;;  %v874_v17 = vadd.f32 %v871_v43, %v859_v52  ;;  %v873_v53 = vadd.f32 %v870_v40, %v857_v55  ;;  %v1448_v55 = vrot.slane %v3823_v36, 1 }
 0x19e   : > { %v908_v57 = vpop.permute.xlu1 %907  ;;  %v906_v48 = vpop.permute.xlu0 %905  ;;  %v1449_v52 = vrot.slane %v3850_v27, 1  ;;  %v1402_v43 = vsel %vm633_vm1, %v1399_v18, %v1397_v37  ;;  %v1411_v40 = vadd.f32 %v1406_v9, %v3774_v51 }
 0x19f   : > { %v881_v5 = vadd.f32 %v878_v47, %v830_v20  ;;  %v877_v59 = vsub.f32 %v868_v28, %v874_v17  ;;  %v876_v0 = vsub.f32 %v867_v2, %v873_v53  ;;  %v1459_v20 = vsel %vm640_vm2, %v1456_v54, %v1454_v44  ;;  %v4579_v17 = vld [vmem:[#allocation45_spill] sm:$0xff] }
 0x1a0   : > { %1421 = vrot.lane.b32.xlu1 %v3845_v39, %s2245_s4  ;;  %1374 = vrot.lane.b32.xlu0 %v3835_v62, %s2245_s4  ;;  %v1455_v28 = vrot.slane %v3850_v27, 7  ;;  %v1460_v56 = vadd.f32 %v1459_v20, %v3823_v36  ;;  %v919_v53 = vmul.f32 9.0, %v4579_v17 }
 0x1a1   : > { %v880_v45 = vand.u32 2147483647, %v877_v59  ;;  %v879_v8 = vand.u32 2147483647, %v876_v0  ;;  %v1450_v0 = vrot.slane %v3831_v12, 1  ;;  %v4575_v59 = vld [vmem:[#allocation22_spill] sm:$0xff] }
 0x1a2   : > { %v912_v3 = vpop.permute.xlu1 %911  ;;  %v910_v2 = vpop.permute.xlu0 %909  ;;  %v3880_v47 = vmul.f32 %v4575_v59, %v3000_v7 }
 0x1a3   : > { %v883_v46 = vadd.f32 %v880_v45, %v832_v34  ;;  %v882_v32 = vadd.f32 %v879_v8, %v831_v31  ;;  %v920_v25 = vadd.f32 %v912_v3, %v3310_v63  ;;  %v1452_v34 = vsel %vm633_vm1, %v1448_v55, %v1449_v52  ;;  %v4577_v31 = vld [vmem:[#allocation24_spill] sm:$0xff] }
 0x1a4   : > { %1368 = vrot.lane.b32.xlu1 %v3835_v62, %s2244_s19  ;;  %1423 = vrot.lane.b32.xlu0 %v3860_v61, %s2245_s4  ;;  %4576 = vst [vmem:[#allocation16_spill] sm:$0xff] %v3880_v47  ;;  %v1458_v63 = vsel %vm640_vm2, %v1454_v44, %v1455_v28  ;;  %v3888_v18 = vmul.f32 %v4577_v31, %v3007_v58  ;;  %v4580_v45 = vld [vmem:[#allocation44_spill] sm:$0xff] }
 0x1a5   : > { %v923_v37 = vadd.f32 %v920_v25, %v906_v48  ;;  %v918_v8 = vmul.f32 9.0, %v4580_v45  ;;  %v3892_v3 = vadd.f32 %v1411_v40, %v1402_v43  ;;  %v1451_v44 = vsel %vm633_vm1, %v1449_v52, %v1450_v0  ;;  %v4583_v43 = vld [vmem:[#allocation23_spill] sm:$0xff] }
 0x1a6   : > { %4578 = vst [vmem:[#allocation18_spill] sm:$0xff] %v3888_v18  ;;  %v916_v9 = vpop.permute.xlu1 %915  ;;  %v914_v20 = vpop.permute.xlu0 %913  ;;  %v3902_v31 = vadd.f32 %v1460_v56, %v1452_v34  ;;  %v1461_v17 = vadd.f32 %v1458_v63, %v3850_v27  ;;  %v4423_v52 = vrot.slane %v3888_v18, 7  ;;  %v1457_v56 = vsel %vm640_vm2, %v1455_v28, %v1456_v54 }
 0x1a7   : > { %4581 = vst [vmem:[#allocation39_spill] sm:$0xff] %v3892_v3  ;;  %v926_v59 = vsub.f32 %v917_v30, %v923_v37  ;;  %v922_v48 = vadd.f32 %v916_v9, %v3322_v26  ;;  %v921_v25 = vadd.f32 %v914_v20, %v3308_v33  ;;  %v3907_v30 = vmul.f32 %v4583_v43, %v3005_v21 }
 0x1a8   : > { %1417 = vrot.lane.b32.xlu1 %v3860_v61, %s2244_s19  ;;  %1415 = vrot.lane.b32.xlu0 %v3845_v39, %s2244_s19  ;;  %4582 = vst [vmem:[#allocation38_spill] sm:$0xff] %v3902_v31  ;;  %v1505_v26 = vrot.slane %v3880_v47, 7  ;;  %v3917_v34 = vadd.f32 %v1461_v17, %v1451_v44  ;;  %v968_v28 = vmul.f32 9.0, %v3290_v6  ;;  %v1501_v43 = vrot.slane %v3888_v18, 1 }
 0x1a9   : > { %4584 = vst [vmem:[#allocation17_spill] sm:$0xff] %v3907_v30  ;;  %v929_v33 = vand.u32 2147483647, %v926_v59  ;;  %v925_v40 = vadd.f32 %v922_v48, %v910_v2  ;;  %v924_v37 = vadd.f32 %v921_v25, %v908_v57  ;;  %v4425_v57 = vrot.slane %v3880_v47, 1 }
 0x1aa   : > { %v959_v9 = vpop.permute.xlu1 %958  ;;  %v957_v45 = vpop.permute.xlu0 %956  ;;  %4585 = vst [vmem:[#allocation41_spill] sm:$0xff] %v3917_v34  ;;  %v1500_v2 = vrot.slane %v3907_v30, 1  ;;  %v1506_v54 = vrot.slane %v3907_v30, 7  ;;  %v1453_v48 = vsel %vm633_vm1, %v1450_v0, %v1448_v55  ;;  %v1462_v25 = vadd.f32 %v1457_v56, %v3831_v12  ;;  %v4588_v0 = vld [vmem:[#allocation27_spill] sm:$0xff]  ;;  %v4590_v56 = vld [vmem:[#allocation48_spill] sm:$0xff]  ;;  %v4609_v12 = vld [vmem:[#allocation58_spill] sm:$0xff] }
 0x1ab   : > { %v932_v20 = vadd.f32 %v929_v33, %v881_v5  ;;  %v928_v36 = vsub.f32 %v919_v53, %v925_v40  ;;  %v927_v51 = vsub.f32 %v918_v8, %v924_v37  ;;  %v1510_v5 = vsel %vm640_vm2, %v4423_v52, %v1505_v26  ;;  %v4587_v33 = vld [vmem:[#allocation25_spill] sm:$0xff] }
 0x1ac   : > { %1472 = vrot.lane.b32.xlu1 %v3902_v31, %s2245_s4  ;;  %1425 = vrot.lane.b32.xlu0 %v3892_v3, %s2245_s4  ;;  %v1511_v6 = vadd.f32 %v1510_v5, %v3880_v47  ;;  %v3939_v40 = vmul.f32 %v4587_v33, %v3000_v7  ;;  %v3949_v37 = vmul.f32 %v4588_v0, %v3007_v58  ;;  %v4591_v5 = vld [vmem:[#allocation47_spill] sm:$0xff] }
 0x1ad   : > { %v931_v63 = vand.u32 2147483647, %v928_v36  ;;  %v930_v59 = vand.u32 2147483647, %v927_v51  ;;  %v4586_v36 = vld [vmem:[#allocation53_spill] sm:$0xff]  ;;  %v3953_v33 = vadd.f32 %v1462_v25, %v1453_v48  ;;  %v4596_v48 = vld [vmem:[#allocation26_spill] sm:$0xff] }
 0x1ae   : > { %v963_v53 = vpop.permute.xlu1 %962  ;;  %v961_v8 = vpop.permute.xlu0 %960  ;;  %4589 = vst [vmem:[#allocation46_spill] sm:$0xff] %v3949_v37  ;;  %v1556_v25 = vrot.slane %v3939_v40, 7 }
 0x1af   : > { %v934_v44 = vadd.f32 %v931_v63, %v883_v46  ;;  %v933_v17 = vadd.f32 %v930_v59, %v882_v32  ;;  %v971_v51 = vadd.f32 %v963_v53, %v4586_v36  ;;  %v1503_v46 = vsel %vm633_vm1, %v4425_v57, %v1500_v2  ;;  %4592 = vst [vmem:[#allocation19_spill] sm:$0xff] %v3953_v33 }
 0x1b0   : > { %1419 = vrot.lane.b32.xlu1 %v3892_v3, %s2244_s19  ;;  %1474 = vrot.lane.b32.xlu0 %v3917_v34, %s2245_s4  ;;  %v1509_v32 = vsel %vm640_vm2, %v1505_v26, %v1506_v54  ;;  %v970_v63 = vmul.f32 9.0, %v4590_v56  ;;  %v969_v53 = vmul.f32 9.0, %v4591_v5  ;;  %v4594_v3 = vld [vmem:[#allocation52_spill] sm:$0xff]  ;;  %v1502_v26 = vsel %vm633_vm1, %v1500_v2, %v1501_v43 }
 0x1b1   : > { %v974_v55 = vadd.f32 %v971_v51, %v957_v45  ;;  %v4593_v51 = vld [vmem:[#allocation54_spill] sm:$0xff]  ;;  %v3963_v0 = vadd.f32 %v1511_v6, %v1503_v46  ;;  %v1512_v56 = vadd.f32 %v1509_v32, %v3907_v30  ;;  %v1558_v2 = vrot.slane %v3949_v37, 7  ;;  %v4608_v30 = vld [vmem:[#allocation60_spill] sm:$0xff] }
 0x1b2   : > { %v967_v59 = vpop.permute.xlu1 %966  ;;  %v965_v36 = vpop.permute.xlu0 %964 }
 0x1b3   : > { %v977_v45 = vsub.f32 %v968_v28, %v974_v55  ;;  %v973_v52 = vadd.f32 %v967_v59, %v4593_v51  ;;  %v972_v57 = vadd.f32 %v965_v36, %v4594_v3  ;;  %4595 = vst [vmem:[#allocation21_spill] sm:$0xff] %v3963_v0  ;;  %v3968_v28 = vmul.f32 %v4596_v48, %v3005_v21 }
 0x1b4   : > { %1468 = vrot.lane.b32.xlu1 %v3917_v34, %s2244_s19  ;;  %1466 = vrot.lane.b32.xlu0 %v3902_v31, %s2244_s19  ;;  %v3976_v6 = vadd.f32 %v1512_v56, %v1502_v26  ;;  %v1561_v32 = vsel %vm640_vm2, %v1558_v2, %v1556_v25 }
 0x1b5   : > { %v980_v3 = vand.u32 2147483647, %v977_v45  ;;  %v976_v55 = vadd.f32 %v973_v52, %v961_v8  ;;  %v975_v59 = vadd.f32 %v972_v57, %v959_v9  ;;  %v1551_v52 = vrot.slane %v3968_v28, 1 }
 0x1b6   : > { %v1010_v5 = vpop.permute.xlu1 %1009  ;;  %v1008_v36 = vpop.permute.xlu0 %1007  ;;  %4597 = vst [vmem:[#allocation43_spill] sm:$0xff] %v3976_v6  ;;  %v4598_v9 = vrot.slane %v3888_v18, 7 }
 0x1b7   : > { %v983_v51 = vadd.f32 %v980_v3, %v932_v20  ;;  %v979_v34 = vsub.f32 %v970_v63, %v976_v55  ;;  %v978_v31 = vsub.f32 %v969_v53, %v975_v59  ;;  %v1557_v63 = vrot.slane %v3968_v28, 7  ;;  %v4599_v53 = vld [vmem:[#allocation49_spill] sm:$0xff]  ;;  %v4600_v55 = vld [vmem:[#allocation59_spill] sm:$0xff] }
 0x1b8   : > { %1523 = vrot.lane.b32.xlu1 %v3963_v0, %s2245_s4  ;;  %1476 = vrot.lane.b32.xlu0 %v3953_v33, %s2245_s4  ;;  %v1508_v57 = vsel %vm640_vm2, %v1506_v54, %v4598_v9  ;;  %v1019_v45 = vmul.f32 9.0, %v4599_v53  ;;  %v4604_v53 = vld [vmem:[#allocation30_spill] sm:$0xff] }
 0x1b9   : > { %v982_v20 = vand.u32 2147483647, %v979_v34  ;;  %v981_v8 = vand.u32 2147483647, %v978_v31  ;;  %v1513_v46 = vadd.f32 %v1508_v57, %v3888_v18  ;;  %v1562_v31 = vadd.f32 %v1561_v32, %v3939_v40 }
 0x1ba   : > { %v1014_v26 = vpop.permute.xlu1 %1013  ;;  %v1012_v56 = vpop.permute.xlu0 %1011  ;;  %v4601_v34 = vrot.slane %v3880_v47, 1  ;;  %v1560_v32 = vsel %vm640_vm2, %v1556_v25, %v1557_v63 }
 0x1bb   : > { %v985_v48 = vadd.f32 %v982_v20, %v934_v44  ;;  %v984_v3 = vadd.f32 %v981_v8, %v933_v17  ;;  %v1022_v59 = vadd.f32 %v1014_v26, %v4600_v55  ;;  %v1552_v44 = vrot.slane %v3949_v37, 1  ;;  %v4602_v17 = vld [vmem:[#allocation28_spill] sm:$0xff] }
 0x1bc   : > { %1470 = vrot.lane.b32.xlu1 %v3953_v33, %s2244_s19  ;;  %1525 = vrot.lane.b32.xlu0 %v3976_v6, %s2245_s4  ;;  %v1504_v54 = vsel %vm633_vm1, %v1501_v43, %v4601_v34  ;;  %v4002_v9 = vmul.f32 %v4602_v17, %v3000_v7  ;;  %v4603_v20 = vrot.slane %v3939_v40, 1  ;;  %v4012_v26 = vmul.f32 %v4604_v53, %v3007_v58  ;;  %v4605_v43 = vld [vmem:[#allocation51_spill] sm:$0xff]  ;;  %v4606_v33 = vld [vmem:[#allocation50_spill] sm:$0xff] }
 0x1bd   : > { %v1025_v57 = vadd.f32 %v1022_v59, %v1008_v36  ;;  %v1021_v55 = vmul.f32 9.0, %v4605_v43  ;;  %v1020_v18 = vmul.f32 9.0, %v4606_v33  ;;  %v4607_v36 = vld [vmem:[#allocation29_spill] sm:$0xff]  ;;  %v4022_v25 = vadd.f32 %v1513_v46, %v1504_v54 }
 0x1be   : > { %v1554_v8 = vsel %vm633_vm1, %v4603_v20, %v1551_v52  ;;  %v1018_v34 = vpop.permute.xlu1 %1017  ;;  %v1016_v17 = vpop.permute.xlu0 %1015  ;;  %v4018_v59 = vmul.f32 %v4607_v36, %v3005_v21  ;;  %v1553_v33 = vsel %vm633_vm1, %v1551_v52, %v1552_v44  ;;  %v1563_v43 = vadd.f32 %v1560_v32, %v3968_v28 }
 0x1bf   : > { %v1028_v47 = vsub.f32 %v1019_v45, %v1025_v57  ;;  %v1024_v20 = vadd.f32 %v1018_v34, %v4608_v30  ;;  %v1023_v27 = vadd.f32 %v1016_v17, %v4609_v12  ;;  %4610 = vst [vmem:[#allocation42_spill] sm:$0xff] %v4022_v25  ;;  %v4028_v53 = vadd.f32 %v1562_v31, %v1554_v8  ;;  %v4613_v8 = vld [vmem:[#allocation55_spill] sm:$0xff] }
 0x1c0   : > { %1519 = vrot.lane.b32.xlu1 %v3976_v6, %s2244_s19  ;;  %1517 = vrot.lane.b32.xlu0 %v3963_v0, %s2244_s19  ;;  %v1607_v45 = vrot.slane %v4002_v9, 7  ;;  %v4435_v46 = vrot.slane %v4012_v26, 7  ;;  %v4039_v52 = vadd.f32 %v1563_v43, %v1553_v33  ;;  %v4436_v31 = vrot.slane %v4002_v9, 1  ;;  %v4622_v0 = vld [vmem:[#allocation64_spill] sm:$0xff] }
 0x1c1   : > { %4611 = vst [vmem:[#allocation20_spill] sm:$0xff] %v4028_v53  ;;  %v1031_v30 = vand.u32 2147483647, %v1028_v47  ;;  %v1027_v57 = vadd.f32 %v1024_v20, %v1012_v56  ;;  %v1026_v12 = vadd.f32 %v1023_v27, %v1010_v5  ;;  %v1559_v27 = vsel %vm640_vm2, %v1557_v63, %v1558_v2  ;;  %v4614_v2 = vld [vmem:[#allocation65_spill] sm:$0xff] }
 0x1c2   : > { %v1061_v54 = vpop.permute.xlu1 %1060  ;;  %v1059_v34 = vpop.permute.xlu0 %1058  ;;  %4612 = vst [vmem:[#allocation22_spill] sm:$0xff] %v4039_v52  ;;  %v1608_v47 = vrot.slane %v4018_v59, 7  ;;  %v1070_v32 = vmul.f32 9.0, %v4613_v8  ;;  %v1603_v33 = vrot.slane %v4012_v26, 1 }
 0x1c3   : > { %v1034_v17 = vadd.f32 %v1031_v30, %v983_v51  ;;  %v1030_v36 = vsub.f32 %v1021_v55, %v1027_v57  ;;  %v1029_v6 = vsub.f32 %v1020_v18, %v1026_v12  ;;  %v1602_v51 = vrot.slane %v4018_v59, 1 }
 0x1c4   : > { %1574 = vrot.lane.b32.xlu1 %v4028_v53, %s2245_s4  ;;  %1527 = vrot.lane.b32.xlu0 %v4022_v25, %s2245_s4  ;;  %v1612_v18 = vsel %vm640_vm2, %v4435_v46, %v1607_v45  ;;  %v1564_v57 = vadd.f32 %v1559_v27, %v3949_v37  ;;  %v1611_v12 = vsel %vm640_vm2, %v1607_v45, %v1608_v47  ;;  %v4616_v27 = vrot.slane %v3939_v40, 1  ;;  %v4619_v45 = vld [vmem:[#allocation57_spill] sm:$0xff] }
 0x1c5   : > { %v1033_v5 = vand.u32 2147483647, %v1030_v36  ;;  %v1032_v56 = vand.u32 2147483647, %v1029_v6  ;;  %v1613_v6 = vadd.f32 %v1612_v18, %v4002_v9  ;;  %v4615_v36 = vld [vmem:[#allocation31_spill] sm:$0xff] }
 0x1c6   : > { %v1065_v55 = vpop.permute.xlu1 %1064  ;;  %v1063_v20 = vpop.permute.xlu0 %1062  ;;  %v4063_v8 = vmul.f32 %v4615_v36, %v3000_v7  ;;  %v4620_v7 = vld [vmem:[#allocation56_spill] sm:$0xff] }
 0x1c7   : > { %v1036_v43 = vadd.f32 %v1033_v5, %v985_v48  ;;  %v1035_v30 = vadd.f32 %v1032_v56, %v984_v3  ;;  %v1073_v63 = vadd.f32 %v1065_v55, %v4614_v2  ;;  %v1605_v3 = vsel %vm633_vm1, %v4436_v31, %v1602_v51  ;;  %v4617_v56 = vld [vmem:[#allocation33_spill] sm:$0xff]  ;;  %v4621_v31 = vld [vmem:[#allocation66_spill] sm:$0xff] }
 0x1c8   : > { %1521 = vrot.lane.b32.xlu1 %v4022_v25, %s2244_s19  ;;  %1576 = vrot.lane.b32.xlu0 %v4039_v52, %s2245_s4  ;;  %v1555_v5 = vsel %vm633_vm1, %v1552_v44, %v4616_v27  ;;  %v4075_v18 = vmul.f32 %v4617_v56, %v3007_v58  ;;  %v1072_v55 = vmul.f32 9.0, %v4619_v45  ;;  %v1071_v36 = vmul.f32 9.0, %v4620_v7  ;;  %v4624_v56 = vld [vmem:[#allocation32_spill] sm:$0xff] }
 0x1c9   : > { %v1076_v48 = vadd.f32 %v1073_v63, %v1059_v34  ;;  %v1604_v63 = vsel %vm633_vm1, %v1602_v51, %v1603_v33  ;;  %v1614_v44 = vadd.f32 %v1611_v12, %v4018_v59  ;;  %v4088_v58 = vadd.f32 %v1613_v6, %v1605_v3 }
 0x1ca   : > { %4618 = vst [vmem:[#allocation24_spill] sm:$0xff] %v4075_v18  ;;  %v1069_v2 = vpop.permute.xlu1 %1068  ;;  %v1067_v34 = vpop.permute.xlu0 %1066  ;;  %v4090_v27 = vadd.f32 %v1564_v57, %v1555_v5  ;;  %v4094_v51 = vmul.f32 %v4624_v56, %v3005_v21  ;;  %v1660_v12 = vrot.slane %v4075_v18, 7  ;;  %v4441_v57 = vrot.slane %v4063_v8, 1  ;;  %v4628_v56 = vld [vmem:[#allocation71_spill] sm:$0xff] }
 0x1cb   : > { %v1079_v46 = vsub.f32 %v1070_v32, %v1076_v48  ;;  %v1075_v25 = vadd.f32 %v1069_v2, %v4621_v31  ;;  %v1074_v37 = vadd.f32 %v1067_v34, %v4622_v0  ;;  %v1658_v31 = vrot.slane %v4063_v8, 7 }
 0x1cc   : > { %1570 = vrot.lane.b32.xlu1 %v4039_v52, %s2244_s19  ;;  %1568 = vrot.lane.b32.xlu0 %v4028_v53, %s2244_s19  ;;  %4623 = vst [vmem:[#allocation45_spill] sm:$0xff] %v4090_v27  ;;  %v4102_v21 = vadd.f32 %v1614_v44, %v1604_v63  ;;  %v1659_v6 = vrot.slane %v4094_v51, 7  ;;  %v4627_v63 = vld [vmem:[#allocation61_spill] sm:$0xff] }
 0x1cd   : > { %v1082_v32 = vand.u32 2147483647, %v1079_v46  ;;  %v1078_v0 = vadd.f32 %v1075_v25, %v1063_v20  ;;  %v1077_v48 = vadd.f32 %v1074_v37, %v1061_v54  ;;  %v1653_v25 = vrot.slane %v4094_v51, 1 }
 0x1ce   : > { %v1112_v45 = vpop.permute.xlu1 %1111  ;;  %v1110_v2 = vpop.permute.xlu0 %1109  ;;  %4625 = vst [vmem:[#allocation44_spill] sm:$0xff] %v4102_v21  ;;  %v4626_v37 = vrot.slane %v4012_v26, 7  ;;  %v1663_v20 = vsel %vm640_vm2, %v1660_v12, %v1658_v31  ;;  %v1121_v44 = vmul.f32 9.0, %v4627_v63 }
 0x1cf   : > { %v1085_v7 = vadd.f32 %v1082_v32, %v1034_v17  ;;  %v1081_v34 = vsub.f32 %v1072_v55, %v1078_v0  ;;  %v1080_v53 = vsub.f32 %v1071_v36, %v1077_v48  ;;  %v4629_v0 = vrot.slane %v4002_v9, 1 }
 0x1d0   : > { %1625 = vrot.lane.b32.xlu1 %v4088_v58, %s2245_s4  ;;  %1578 = vrot.lane.b32.xlu0 %v4090_v27, %s2245_s4  ;;  %v1610_v46 = vsel %vm640_vm2, %v1608_v47, %v4626_v37  ;;  %v1664_v47 = vadd.f32 %v1663_v20, %v4063_v8  ;;  %v1662_v37 = vsel %vm640_vm2, %v1658_v31, %v1659_v6 }
 0x1d1   : > { %v1084_v54 = vand.u32 2147483647, %v1081_v34  ;;  %v1083_v17 = vand.u32 2147483647, %v1080_v53  ;;  %v1656_v53 = vsel %vm633_vm1, %v4441_v57, %v1653_v25  ;;  %v1606_v48 = vsel %vm633_vm1, %v1603_v33, %v4629_v0  ;;  %v4631_v57 = vld [vmem:[#allocation72_spill] sm:$0xff] }
 0x1d2   : > { %v1116_v3 = vpop.permute.xlu1 %1115  ;;  %v1114_v5 = vpop.permute.xlu0 %1113  ;;  %v1654_v34 = vrot.slane %v4075_v18, 1  ;;  %v4140_v33 = vadd.f32 %v1664_v47, %v1656_v53  ;;  %v1665_v0 = vadd.f32 %v1662_v37, %v4094_v51  ;;  %v4635_v53 = vld [vmem:[#allocation68_spill] sm:$0xff] }
 0x1d3   : > { %v1087_v55 = vadd.f32 %v1084_v54, %v1036_v43  ;;  %v1086_v36 = vadd.f32 %v1083_v17, %v1035_v30  ;;  %v1124_v32 = vadd.f32 %v1116_v3, %v4628_v56  ;;  %v1615_v43 = vadd.f32 %v1610_v46, %v4012_v26  ;;  %v4630_v54 = vld [vmem:[#allocation63_spill] sm:$0xff] }
 0x1d4   : > { %1572 = vrot.lane.b32.xlu1 %v4090_v27, %s2244_s19  ;;  %1627 = vrot.lane.b32.xlu0 %v4102_v21, %s2245_s4  ;;  %v1123_v17 = vmul.f32 9.0, %v4630_v54  ;;  %v4632_v27 = vld [vmem:[#allocation62_spill] sm:$0xff]  ;;  %v1173_v47 = vmul.f32 9.0, %v4635_v53 }
 0x1d5   : > { %v1127_v30 = vadd.f32 %v1124_v32, %v1110_v2  ;;  %v1122_v46 = vmul.f32 9.0, %v4632_v27  ;;  %v4633_v2 = vld [vmem:[#allocation70_spill] sm:$0xff]  ;;  %v4142_v31 = vadd.f32 %v1615_v43, %v1606_v48  ;;  %v1655_v27 = vsel %vm633_vm1, %v1653_v25, %v1654_v34 }
 0x1d6   : > { %v1120_v3 = vpop.permute.xlu1 %1119  ;;  %v1118_v63 = vpop.permute.xlu0 %1117  ;;  %v4154_v48 = vadd.f32 %v1665_v0, %v1655_v27  ;;  %v4638_v27 = vrot.slane %v4063_v8, 1 }
 0x1d7   : > { %v1130_v56 = vsub.f32 %v1121_v44, %v1127_v30  ;;  %v1126_v20 = vadd.f32 %v1120_v3, %v4631_v57  ;;  %v1125_v32 = vadd.f32 %v1118_v63, %v4633_v2 }
 0x1d8   : > { %1621 = vrot.lane.b32.xlu1 %v4102_v21, %s2244_s19  ;;  %1619 = vrot.lane.b32.xlu0 %v4088_v58, %s2244_s19  ;;  %v4634_v21 = vld [vmem:[#allocation75_spill] sm:$0xff] }
 0x1d9   : > { %v1133_v54 = vand.u32 2147483647, %v1130_v56  ;;  %v1129_v44 = vadd.f32 %v1126_v20, %v1114_v5  ;;  %v1128_v30 = vadd.f32 %v1125_v32, %v1112_v45  ;;  %v4636_v5 = vld [vmem:[#allocation67_spill] sm:$0xff]  ;;  %v4637_v56 = vld [vmem:[#allocation76_spill] sm:$0xff] }
 0x1da   : > { %v1169_v57 = vpop.permute.xlu1 %1168  ;;  %v1167_v3 = vpop.permute.xlu0 %1166  ;;  %v1172_v45 = vmul.f32 9.0, %v4636_v5 }
 0x1db   : > { %v1132_v63 = vsub.f32 %v1123_v17, %v1129_v44  ;;  %v1131_v2 = vsub.f32 %v1122_v46, %v1128_v30  ;;  %v1176_v52 = vadd.f32 %v1169_v57, %v4634_v21  ;;  %v1136_v43 = vadd.f32 %v1133_v54, %v1085_v7 }
 0x1dc   : > { %1676 = vrot.lane.b32.xlu1 %v4140_v33, %s2245_s4  ;;  %1629 = vrot.lane.b32.xlu0 %v4142_v31, %s2245_s4  ;;  %v1175_v17 = vadd.f32 %v1167_v3, %v4637_v56  ;;  %v1661_v21 = vsel %vm640_vm2, %v1659_v6, %v1660_v12  ;;  %v1657_v12 = vsel %vm633_vm1, %v1654_v34, %v4638_v27 }
 0x1dd   : > { %v1135_v25 = vand.u32 2147483647, %v1132_v63  ;;  %v1134_v37 = vand.u32 2147483647, %v1131_v2  ;;  %v1666_v7 = vadd.f32 %v1661_v21, %v4075_v18  ;;  %v4642_v21 = vld [vmem:[#allocation73_spill] sm:$0xff] }
 0x1de   : > { %v1163_v20 = vpop.permute.xlu1 %1162  ;;  %v1161_v46 = vpop.permute.xlu0 %1160 }
 0x1df   : > { %v1137_v32 = vadd.f32 %v1134_v37, %v1086_v36  ;;  %v1179_v44 = vadd.f32 %v1176_v52, %v1163_v20  ;;  %v1178_v30 = vadd.f32 %v1175_v17, %v1161_v46  ;;  %v1138_v57 = vadd.f32 %v1135_v25, %v1087_v55  ;;  %v4641_v25 = vld [vmem:[#allocation74_spill] sm:$0xff] }
 0x1e0   : > { %1623 = vrot.lane.b32.xlu1 %v4142_v31, %s2244_s19  ;;  %1678 = vrot.lane.b32.xlu0 %v4154_v48, %s2245_s4  ;;  %v4172_v55 = vadd.f32 %v1666_v7, %v1657_v12  ;;  %v1224_v37 = vmul.f32 9.0, %v4641_v25  ;;  %v1274_v25 = vmul.f32 9.0, %v3587_v60 }
 0x1e1   : > { %v1182_v0 = vsub.f32 %v1173_v47, %v1179_v44  ;;  %v1181_v54 = vsub.f32 %v1172_v45, %v1178_v30  ;;  %v4640_v47 = vld [vmem:[#allocation69_spill] sm:$0xff] }
 0x1e2   : > { %v1218_v6 = vpop.permute.xlu1 %1217  ;;  %v1171_v36 = vpop.permute.xlu0 %1170  ;;  %4639 = vst [vmem:[#allocation23_spill] sm:$0xff] %v4172_v55  ;;  %v1174_v5 = vmul.f32 9.0, %v4640_v47 }
 0x1e3   : > { %v1185_v52 = vand.u32 2147483647, %v1182_v0  ;;  %v1184_v3 = vand.u32 2147483647, %v1181_v54  ;;  %v1177_v53 = vadd.f32 %v1171_v36, %v3599_v4  ;;  %v1226_v56 = vadd.f32 %v1218_v6, %v3609_v14 }
 0x1e4   : > { %1672 = vrot.lane.b32.xlu1 %v4154_v48, %s2244_s19  ;;  %1670 = vrot.lane.b32.xlu0 %v4140_v33, %s2244_s19  ;;  %v1223_v4 = vmul.f32 9.0, %v4642_v21 }
 0x1e5   : > { %v1188_v63 = vadd.f32 %v1185_v52, %v1137_v32  ;;  %v1187_v2 = vadd.f32 %v1184_v3, %v1136_v43 }
 0x1e6   : > { %v1165_v38 = vpop.permute.xlu1 %1164  ;;  %v1220_v34 = vpop.permute.xlu0 %1219 }
 0x1e7   : > { %v1180_v45 = vadd.f32 %v1177_v53, %v1165_v38  ;;  %v1227_v43 = vadd.f32 %v1220_v34, %v3615_v19  ;;  %v1225_v19 = vmul.f32 9.0, %v3538_v11  ;;  %v1275_v38 = vmul.f32 9.0, %v3597_v24 }
 0x1e8   : > { %1680 = vrot.lane.b32.xlu0 %v4172_v55, %s2245_s4  ;;  %1674 = vrot.lane.b32.xlu1 %v4172_v55, %s2244_s19  ;;  %v4657_v55 = vld [vmem:[#allocation46_spill] sm:$0xff] }
 0x1e9   : > { %v1183_v17 = vsub.f32 %v1174_v5, %v1180_v45 }
 0x1ea   : > { %v1214_v20 = vpop.permute.xlu1 %1213  ;;  %v1212_v46 = vpop.permute.xlu0 %1211 }
 0x1eb   : > { %v1186_v32 = vand.u32 2147483647, %v1183_v17  ;;  %v1230_v44 = vadd.f32 %v1227_v43, %v1214_v20  ;;  %v1229_v30 = vadd.f32 %v1226_v56, %v1212_v46 }
 0x1ed   : > { %v1189_v7 = vadd.f32 %v1186_v32, %v1138_v57  ;;  %v1233_v0 = vsub.f32 %v1224_v37, %v1230_v44  ;;  %v1232_v54 = vsub.f32 %v1223_v4, %v1229_v30 }
 0x1ee   : > { %v1269_v27 = vpop.permute.xlu1 %1268  ;;  %v1222_v12 = vpop.permute.xlu0 %1221 }
 0x1ef   : > { %v1236_v36 = vand.u32 2147483647, %v1233_v0  ;;  %v1235_v52 = vand.u32 2147483647, %v1232_v54  ;;  %v1228_v14 = vadd.f32 %v1222_v12, %v3658_v35  ;;  %v1277_v34 = vadd.f32 %v1269_v27, %v3669_v42 }
 0x1f0   : > { %v1326_v0 = vmul.f32 9.0, %v3665_v41  ;;  %v1325_v12 = vmul.f32 9.0, %v3645_v23 }
 0x1f1   : > { %v1239_v3 = vadd.f32 %v1236_v36, %v1188_v63  ;;  %v1238_v53 = vadd.f32 %v1235_v52, %v1187_v2 }
 0x1f2   : > { %v1216_v6 = vpop.permute.xlu1 %1215  ;;  %v1271_v47 = vpop.permute.xlu0 %1270 }
 0x1f3   : > { %v1231_v5 = vadd.f32 %v1228_v14, %v1216_v6  ;;  %v1278_v45 = vadd.f32 %v1271_v47, %v3679_v22  ;;  %v1276_v22 = vmul.f32 9.0, %v3591_v1 }
 0x1f5   : > { %v1234_v57 = vsub.f32 %v1225_v19, %v1231_v5 }
 0x1f6   : > { %v1265_v37 = vpop.permute.xlu1 %1264  ;;  %v1263_v56 = vpop.permute.xlu0 %1262 }
 0x1f7   : > { %v1237_v63 = vand.u32 2147483647, %v1234_v57  ;;  %v1281_v2 = vadd.f32 %v1278_v45, %v1265_v37  ;;  %v1280_v17 = vadd.f32 %v1277_v34, %v1263_v56  ;;  %v4643_v37 = vld [vmem:[#allocation13_spill] sm:$0xff] }
 0x1f9   : > { %v1240_v35 = vadd.f32 %v1237_v63, %v1189_v7  ;;  %v1284_v43 = vsub.f32 %v1275_v38, %v1281_v2  ;;  %v1283_v11 = vsub.f32 %v1274_v25, %v1280_v17  ;;  %v1377_v25 = vmul.f32 9.0, %v3734_v10  ;;  %v4644_v2 = vld [vmem:[#allocation15_spill] sm:$0xff] }
 0x1fa   : > { %v1320_v21 = vpop.permute.xlu1 %1319  ;;  %v1273_v4 = vpop.permute.xlu0 %1272 }
 0x1fb   : > { %v1287_v20 = vand.u32 2147483647, %v1284_v43  ;;  %v1286_v46 = vand.u32 2147483647, %v1283_v11  ;;  %v1279_v42 = vadd.f32 %v1273_v4, %v3719_v49  ;;  %v1328_v54 = vadd.f32 %v1320_v21, %v3729_v50 }
 0x1fd   : > { %v1290_v24 = vadd.f32 %v1287_v20, %v1239_v3  ;;  %v1289_v32 = vadd.f32 %v1286_v46, %v1238_v53 }
 0x1fe   : > { %v1267_v44 = vpop.permute.xlu1 %1266  ;;  %v1322_v60 = vpop.permute.xlu0 %1321 }
 0x1ff   : > { %v1282_v30 = vadd.f32 %v1279_v42, %v1267_v44  ;;  %v1329_v27 = vadd.f32 %v1322_v60, %v3746_v15  ;;  %v1327_v15 = vmul.f32 9.0, %v3654_v29 }
 0x201   : > { %v1285_v7 = vsub.f32 %v1276_v22, %v1282_v30 }
 0x202   : > { %v1316_v36 = vpop.permute.xlu1 %1315  ;;  %v1314_v52 = vpop.permute.xlu0 %1313 }
 0x203   : > { %v1288_v3 = vand.u32 2147483647, %v1285_v7  ;;  %v1332_v53 = vadd.f32 %v1329_v27, %v1316_v36  ;;  %v1331_v14 = vadd.f32 %v1328_v54, %v1314_v52 }
 0x205   : > { %v1291_v49 = vadd.f32 %v1288_v3, %v1240_v35  ;;  %v1335_v19 = vsub.f32 %v1326_v0, %v1332_v53  ;;  %v1334_v1 = vsub.f32 %v1325_v12, %v1331_v14  ;;  %v4645_v35 = vld [vmem:[#allocation12_spill] sm:$0xff] }
 0x206   : > { %v1371_v6 = vpop.permute.xlu1 %1370  ;;  %v1324_v47 = vpop.permute.xlu0 %1323  ;;  %v1376_v43 = vmul.f32 9.0, %v4645_v35 }
 0x207   : > { %v1338_v5 = vand.u32 2147483647, %v1335_v19  ;;  %v1337_v38 = vand.u32 2147483647, %v1334_v1  ;;  %v1330_v50 = vadd.f32 %v1324_v47, %v3778_v13  ;;  %v1379_v56 = vadd.f32 %v1371_v6, %v4643_v37 }
 0x208   : > { %v1428_v37 = vmul.f32 9.0, %v3793_v16 }
 0x209   : > { %v1341_v41 = vadd.f32 %v1338_v5, %v1290_v24  ;;  %v1340_v34 = vadd.f32 %v1337_v38, %v1289_v32 }
 0x20a   : > { %v1318_v57 = vpop.permute.xlu1 %1317  ;;  %v1373_v23 = vpop.permute.xlu0 %1372 }
 0x20b   : > { %v1333_v45 = vadd.f32 %v1330_v50, %v1318_v57  ;;  %v1380_v17 = vadd.f32 %v1373_v23, %v4644_v2  ;;  %v4646_v23 = vld [vmem:[#allocation11_spill] sm:$0xff] }
 0x20d   : > { %v1336_v63 = vsub.f32 %v1327_v15, %v1333_v45  ;;  %v1378_v45 = vmul.f32 9.0, %v4646_v23 }
 0x20e   : > { %v1367_v11 = vpop.permute.xlu1 %1366  ;;  %v1365_v21 = vpop.permute.xlu0 %1364 }
 0x20f   : > { %v1339_v4 = vand.u32 2147483647, %v1336_v63  ;;  %v1383_v20 = vadd.f32 %v1380_v17, %v1367_v11  ;;  %v1382_v46 = vadd.f32 %v1379_v56, %v1365_v21  ;;  %v4647_v56 = vld [vmem:[#allocation35_spill] sm:$0xff]  ;;  %v4648_v11 = vld [vmem:[#allocation40_spill] sm:$0xff] }
 0x210   : > { %v1427_v63 = vmul.f32 9.0, %v4647_v56  ;;  %v4219_v21 = vmul.f32 9.0, %v4648_v11  ;;  %v4656_v56 = vld [vmem:[#allocation38_spill] sm:$0xff] }
 0x211   : > { %v4202_v13 = vadd.f32 %v1339_v4, %v1291_v49  ;;  %v1386_v29 = vsub.f32 %v1377_v25, %v1383_v20  ;;  %v1385_v24 = vsub.f32 %v1376_v43, %v1382_v46  ;;  %v4649_v4 = vld [vmem:[#allocation14_spill] sm:$0xff]  ;;  %v4650_v46 = vld [vmem:[#allocation37_spill] sm:$0xff] }
 0x212   : > { %v1422_v32 = vpop.permute.xlu1 %1421  ;;  %v1375_v42 = vpop.permute.xlu0 %1374  ;;  %v1479_v20 = vmul.f32 9.0, %v4649_v4  ;;  %v4236_v4 = vmul.f32 9.0, %v3968_v28  ;;  %v4252_v28 = vmul.f32 9.0, %v4012_v26 }
 0x213   : > { %v1389_v22 = vand.u32 2147483647, %v1386_v29  ;;  %v1388_v10 = vand.u32 2147483647, %v1385_v24  ;;  %v1381_v57 = vadd.f32 %v1375_v42, %v3835_v62  ;;  %v1430_v35 = vadd.f32 %v1422_v32, %v3845_v39  ;;  %v4651_v29 = vld [vmem:[#allocation36_spill] sm:$0xff]  ;;  %v4652_v42 = vld [vmem:[#allocation17_spill] sm:$0xff] }
 0x214   : > { %v1478_v62 = vmul.f32 9.0, %v4650_v46  ;;  %v4224_v24 = vmul.f32 9.0, %v4651_v29  ;;  %v1530_v16 = vmul.f32 9.0, %v4652_v42  ;;  %v4654_v39 = vld [vmem:[#allocation41_spill] sm:$0xff]  ;;  %v4239_v46 = vmul.f32 9.0, %v3939_v40 }
 0x215   : > { %v4204_v44 = vadd.f32 %v1389_v22, %v1341_v41  ;;  %v4206_v60 = vadd.f32 %v1388_v10, %v1340_v34  ;;  %v4653_v22 = vld [vmem:[#allocation16_spill] sm:$0xff]  ;;  %v4255_v40 = vmul.f32 9.0, %v4094_v51 }
 0x216   : > { %v1369_v30 = vpop.permute.xlu1 %1368  ;;  %v1424_v0 = vpop.permute.xlu0 %1423  ;;  %v4228_v10 = vmul.f32 9.0, %v4653_v22  ;;  %v4663_v51 = vld [vmem:[#allocation20_spill] sm:$0xff] }
 0x217   : > { %v1384_v25 = vadd.f32 %v1381_v57, %v1369_v30  ;;  %v1431_v43 = vadd.f32 %v1424_v0, %v3860_v61  ;;  %v4655_v61 = vld [vmem:[#allocation18_spill] sm:$0xff]  ;;  %4659 = vst [vmem:[#allocation53_spill] sm:$0xff] %v4255_v40 }
 0x218   : > { %v4232_v0 = vmul.f32 9.0, %v4655_v61 }
 0x219   : > { %v1387_v23 = vsub.f32 %v1378_v45, %v1384_v25 }
 0x21a   : > { %v1418_v54 = vpop.permute.xlu1 %1417  ;;  %v1416_v7 = vpop.permute.xlu0 %1415 }
 0x21b   : > { %v1434_v30 = vadd.f32 %v1431_v43, %v1418_v54  ;;  %v1433_v57 = vadd.f32 %v1430_v35, %v1416_v7  ;;  %v4242_v54 = vmul.f32 9.0, %v4657_v55  ;;  %v4245_v7 = vmul.f32 9.0, %v4018_v59  ;;  %v4660_v43 = vld [vmem:[#allocation39_spill] sm:$0xff] }
 0x21c   : > { %v1390_v59 = vand.u32 2147483647, %v1387_v23 }
 0x21d   : > { %v1437_v35 = vsub.f32 %v1428_v37, %v1434_v30 }
 0x21e   : > { %v1473_v27 = vpop.permute.xlu1 %1472  ;;  %v1426_v12 = vpop.permute.xlu0 %1425 }
 0x21f   : > { %v1481_v11 = vadd.f32 %v1473_v27, %v4656_v56  ;;  %v4658_v27 = vld [vmem:[#allocation43_spill] sm:$0xff]  ;;  %v1432_v55 = vadd.f32 %v1426_v12, %v4660_v43  ;;  %v4662_v56 = vld [vmem:[#allocation22_spill] sm:$0xff]  ;;  %v1440_v23 = vand.u32 2147483647, %v1437_v35 }
 0x222   : > { %v1420_v36 = vpop.permute.xlu1 %1419  ;;  %v1475_v52 = vpop.permute.xlu0 %1474 }
 0x223   : > { %v1482_v32 = vadd.f32 %v1475_v52, %v4654_v39  ;;  %v4248_v52 = vmul.f32 9.0, %v4002_v9  ;;  %v4661_v39 = vld [vmem:[#allocation21_spill] sm:$0xff]  ;;  %v1435_v26 = vadd.f32 %v1432_v55, %v1420_v36 }
 0x226   : > { %v1469_v3 = vpop.permute.xlu1 %1468  ;;  %v1467_v53 = vpop.permute.xlu0 %1466 }
 0x227   : > { %v1485_v22 = vadd.f32 %v1482_v32, %v1469_v3  ;;  %v1484_v45 = vadd.f32 %v1481_v11, %v1467_v53  ;;  %v1436_v3 = vsub.f32 %v1427_v63, %v1433_v57  ;;  %v4664_v63 = vld [vmem:[#allocation19_spill] sm:$0xff]  ;;  %v4665_v57 = vld [vmem:[#allocation44_spill] sm:$0xff] }
 0x229   : > { %v1488_v11 = vsub.f32 %v1479_v20, %v1485_v22  ;;  %v1487_v37 = vsub.f32 %v1478_v62, %v1484_v45 }
 0x22a   : > { %v1524_v14 = vpop.permute.xlu1 %1523  ;;  %v1477_v49 = vpop.permute.xlu0 %1476 }
 0x22b   : > { %v1532_v32 = vadd.f32 %v1524_v14, %v4661_v39  ;;  %v1483_v30 = vadd.f32 %v1477_v49, %v4664_v63  ;;  %v4666_v39 = vld [vmem:[#allocation42_spill] sm:$0xff]  ;;  %v1491_v62 = vand.u32 2147483647, %v1488_v11 }
 0x22e   : > { %v4208_v19 = vpop.permute.xlu1 %1470  ;;  %v1526_v1 = vpop.permute.xlu0 %1525 }
 0x22f   : > { %v1533_v25 = vadd.f32 %v1526_v1, %v4658_v27  ;;  %v4261_v1 = vmul.f32 9.0, %v4063_v8  ;;  %v1486_v43 = vadd.f32 %v1483_v30, %v4208_v19  ;;  %v1393_v19 = vadd.f32 %v1390_v59, %v4202_v13 }
 0x232   : > { %v1520_v6 = vpop.permute.xlu1 %1519  ;;  %v1518_v47 = vpop.permute.xlu0 %1517 }
 0x233   : > { %v1536_v61 = vadd.f32 %v1533_v25, %v1520_v6  ;;  %v1535_v27 = vadd.f32 %v1532_v32, %v1518_v47  ;;  %v1439_v6 = vand.u32 2147483647, %v1436_v3 }
 0x235   : > { %v1539_v8 = vsub.f32 %v1530_v16, %v1536_v61  ;;  %v1538_v49 = vsub.f32 %v4228_v10, %v1535_v27 }
 0x236   : > { %v1575_v5 = vpop.permute.xlu1 %1574  ;;  %v1528_v38 = vpop.permute.xlu0 %1527 }
 0x237   : > { %v1583_v40 = vadd.f32 %v1575_v5, %v4663_v51  ;;  %v1534_v36 = vadd.f32 %v1528_v38, %v4666_v39  ;;  %v1438_v5 = vsub.f32 %v4219_v21, %v1435_v26  ;;  %v1443_v38 = vadd.f32 %v1440_v23, %v4204_v44 }
 0x238   : > { %v1489_v21 = vsub.f32 %v4224_v24, %v1486_v43 }
 0x239   : > { %v1441_v55 = vand.u32 2147483647, %v1438_v5  ;;  %v1494_v32 = vadd.f32 %v1491_v62, %v1443_v38 }
 0x23a   : > { %v4210_v41 = vpop.permute.xlu1 %1521  ;;  %v1577_v34 = vpop.permute.xlu0 %1576 }
 0x23b   : > { %v1584_v9 = vadd.f32 %v1577_v34, %v4662_v56  ;;  %v1537_v45 = vadd.f32 %v1534_v36, %v4210_v41 }
 0x23e   : > { %v1571_v50 = vpop.permute.xlu1 %1570  ;;  %v1569_v15 = vpop.permute.xlu0 %1568 }
 0x23f   : > { %v1587_v12 = vadd.f32 %v1584_v9, %v1571_v50  ;;  %v1586_v25 = vadd.f32 %v1583_v40, %v1569_v15  ;;  %v1542_v40 = vand.u32 2147483647, %v1539_v8 }
 0x241   : > { %v1590_v15 = vsub.f32 %v4236_v4, %v1587_v12  ;;  %v1589_v16 = vsub.f32 %v4239_v46, %v1586_v25  ;;  %v1541_v4 = vand.u32 2147483647, %v1538_v49  ;;  %v1545_v56 = vadd.f32 %v1542_v40, %v1494_v32  ;;  %v4668_v12 = vld [vmem:[#allocation53_spill] sm:$0xff]  ;;  %v4669_v25 = vld [vmem:[#allocation24_spill] sm:$0xff] }
 0x242   : > { %v1626_v2 = vpop.permute.xlu1 %1625  ;;  %v1579_v17 = vpop.permute.xlu0 %1578 }
 0x243   : > { %v1634_v34 = vadd.f32 %v1626_v2, %v4088_v58  ;;  %v4667_v58 = vld [vmem:[#allocation45_spill] sm:$0xff]  ;;  %v1593_v59 = vand.u32 2147483647, %v1590_v15  ;;  %v1592_v46 = vand.u32 2147483647, %v1589_v16 }
 0x244   : > { %v1585_v2 = vadd.f32 %v1579_v17, %v4667_v58  ;;  %v1707_v58 = vld [vmem:[%s2418_s26 + $0x8] sm:$0xff] }
 0x245   : > { %v1596_v63 = vadd.f32 %v1593_v59, %v1545_v56 }
 0x246   : > { %v1573_v29 = vpop.permute.xlu1 %1572  ;;  %v1628_v42 = vpop.permute.xlu0 %1627 }
 0x247   : > { %v1635_v14 = vadd.f32 %v1628_v42, %v4665_v57  ;;  %v1490_v42 = vand.u32 2147483647, %v1487_v37  ;;  %v1588_v10 = vadd.f32 %v1585_v2, %v1573_v29  ;;  %v1444_v37 = vadd.f32 %v1441_v55, %v1393_v19  ;;  %v1706_v2 = vld [vmem:[%s2418_s26] sm:$0xff] }
 0x248   : > { %v1710_v19 = vmul.f32 0.003921569, %v1707_v58 }
 0x249   : > { %v1591_v9 = vsub.f32 %v4242_v54, %v1588_v10 }
 0x24a   : > { %v1622_v18 = vpop.permute.xlu1 %1621  ;;  %v1620_v53 = vpop.permute.xlu0 %1619 }
 0x24b   : > { %v1638_v20 = vadd.f32 %v1635_v14, %v1622_v18  ;;  %v1637_v50 = vadd.f32 %v1634_v34, %v1620_v53  ;;  %v1442_v18 = vadd.f32 %v1439_v6, %v4206_v60  ;;  %v1540_v60 = vsub.f32 %v4232_v0, %v1537_v45 }
 0x24c   : > { %v1594_v23 = vand.u32 2147483647, %v1591_v9  ;;  %v1684_v34 = vmul.f32 9.0, %v4669_v25 }
 0x24d   : > { %v1641_v35 = vsub.f32 %v4245_v7, %v1638_v20  ;;  %v1640_v17 = vsub.f32 %v4248_v52, %v1637_v50  ;;  %v1493_v44 = vadd.f32 %v1490_v42, %v1442_v18  ;;  %v1492_v7 = vand.u32 2147483647, %v1489_v21  ;;  %v4670_v20 = vld [vmem:[#allocation23_spill] sm:$0xff]  ;;  %v4671_v21 = vld [vmem:[#allocation34_spill] sm:$0xff] }
 0x24e   : > { %v1677_v47 = vpop.permute.xlu1 %1676  ;;  %v1630_v22 = vpop.permute.xlu0 %1629  ;;  %v1543_v0 = vand.u32 2147483647, %v1540_v60  ;;  %v1709_v18 = vmul.f32 0.003921569, %v1706_v2 }
 0x24f   : > { %v1636_v13 = vadd.f32 %v1630_v22, %v4142_v31  ;;  %v1685_v24 = vadd.f32 %v1677_v47, %v4140_v33  ;;  %v1644_v53 = vand.u32 2147483647, %v1641_v35  ;;  %v1544_v11 = vadd.f32 %v1541_v4, %v1493_v44  ;;  %v1708_v35 = vld [vmem:[%s2418_s26 + $0x10] sm:$0xff] }
 0x250   : > { %v1643_v31 = vand.u32 2147483647, %v1640_v17  ;;  %v1495_v14 = vadd.f32 %v1492_v7, %v1444_v37  ;;  %v1711_v4 = vmul.f32 0.003921569, %v1708_v35 }
 0x251   : > { %v1595_v30 = vadd.f32 %v1592_v46, %v1544_v11  ;;  %v1647_v54 = vadd.f32 %v1644_v53, %v1596_v63 }
 0x252   : > { %v1624_v3 = vpop.permute.xlu1 %1623  ;;  %v1679_v41 = vpop.permute.xlu0 %1678  ;;  %v1546_v22 = vadd.f32 %v1543_v0, %v1495_v14 }
 0x253   : > { %v1639_v61 = vadd.f32 %v1636_v13, %v1624_v3  ;;  %v1686_v29 = vadd.f32 %v1679_v41, %v4154_v48  ;;  %v1646_v8 = vadd.f32 %v1643_v31, %v1595_v30 }
 0x255   : > { %v1642_v33 = vsub.f32 %v4252_v28, %v1639_v61 }
 0x256   : > { %v1673_v26 = vpop.permute.xlu1 %1672  ;;  %v1671_v52 = vpop.permute.xlu0 %1670 }
 0x257   : > { %v1689_v27 = vadd.f32 %v1686_v29, %v1673_v26  ;;  %v1688_v51 = vadd.f32 %v1685_v24, %v1671_v52  ;;  %v1645_v28 = vand.u32 2147483647, %v1642_v33 }
 0x259   : > { %v1692_v57 = vsub.f32 %v4668_v12, %v1689_v27  ;;  %v1691_v48 = vsub.f32 %v4261_v1, %v1688_v51  ;;  %v1597_v1 = vadd.f32 %v1594_v23, %v1546_v22 }
 0x25a   : > { %v1681_v6 = vpop.permute.xlu0 %1680  ;;  %v1675_v43 = vpop.permute.xlu1 %1674 }
 0x25b   : > { %v1695_v39 = vand.u32 2147483647, %v1692_v57  ;;  %v1694_v36 = vand.u32 2147483647, %v1691_v48  ;;  %v1687_v47 = vadd.f32 %v1681_v6, %v4670_v20  ;;  %v1648_v42 = vadd.f32 %v1645_v28, %v1597_v1 }
 0x25d   : > { %v1698_v5 = vadd.f32 %v1695_v39, %v1647_v54  ;;  %v1697_v62 = vadd.f32 %v1694_v36, %v1646_v8  ;;  %v1690_v49 = vadd.f32 %v1687_v47, %v1675_v43 }
 0x25f   : > { %2105 = vtanh.f32 %v1698_v5  ;;  %v1693_v50 = vsub.f32 %v1684_v34, %v1690_v49 }
 0x260   : > { %2107 = vtanh.f32 %v1697_v62 }
 0x261   : > { %v1696_v45 = vand.u32 2147483647, %v1693_v50 }
 0x263   : > { %v1699_v15 = vadd.f32 %v1696_v45, %v1648_v42 }
 0x265   : > { %2109 = vtanh.f32 %v1699_v15 }
 0x26c   : > { %v2106_v38 = vpop.eup %2105 }
 0x26d   : > { %v2108_v16 = vpop.eup %2107  ;;  %v1704_v40 = vmul.f32 %v2106_v38, %v4671_v21 }
 0x26e   : > { %v1703_v10 = vmul.f32 %v2108_v16, %v4671_v21 }
 0x26f   : > { %v1713_v3 = vsub.f32 %v1704_v40, %v1710_v19 }
 0x270   : > { %v1712_v41 = vsub.f32 %v1703_v10, %v1709_v18  ;;  %v1729_v55 = vadd.f32 %v1704_v40, %v1703_v10 }
 0x271   : > { %v1716_v17 = vand.u32 2147483647, %v1713_v3 }
 0x272   : > { %v2110_v13 = vpop.eup %2109  ;;  %v1715_v32 = vand.u32 2147483647, %v1712_v41 }
 0x273   : > { %v1705_v44 = vmul.f32 0.0, %v2110_v13  ;;  %v1719_v60 = vmul.f32 %v1716_v17, %v1704_v40 }
 0x274   : > { %v1718_v59 = vmul.f32 %v1715_v32, %v1703_v10 }
 0x275   : > { %v1714_v46 = vsub.f32 %v1705_v44, %v1711_v4  ;;  %v1730_v24 = vadd.f32 %v1729_v55, %v1705_v44 }
 0x276   : > { %v1721_v61 = vadd.f32 %v1719_v60, %v1718_v59 }
 0x277   : > { %v1717_v29 = vand.u32 2147483647, %v1714_v46  ;;  %v1731_v7 = vrot.slane %v1730_v24, 4 }
 0x279   : > { %v1720_v56 = vmul.f32 %v1717_v29, %v1705_v44  ;;  %v1732_v9 = vadd.f32 %v1731_v7, %v1730_v24 }
 0x27b   : > { %v1722_v53 = vadd.f32 %v1721_v61, %v1720_v56  ;;  %v1733_v26 = vrot.slane %v1732_v9, 2 }
 0x27d   : > { %v1723_v52 = vrot.slane %v1722_v53, 4  ;;  %v1734_v11 = vadd.f32 %v1733_v26, %v1732_v9 }
 0x27f   : > { %v1735_v31 = vrot.slane %v1734_v11, 1  ;;  %v1724_v27 = vadd.f32 %v1723_v52, %v1722_v53 }
 0x281   : > { %v1736_v51 = vadd.f32 %v1735_v31, %v1734_v11  ;;  %v1725_v37 = vrot.slane %v1724_v27, 2 }
 0x283   : > { %2111 = vrcp.f32 %v1736_v51  ;;  %v1726_v0 = vadd.f32 %v1725_v37, %v1724_v27 }
 0x285   : > { %v1727_v63 = vrot.slane %v1726_v0, 1 }
 0x287   : > { %v1728_v30 = vadd.f32 %v1727_v63, %v1726_v0 }
 0x290   : > { %v2112_v33 = vpop.eup %2111 }
 0x291   : > { %v1738_v12 = vmul.f32 %v2112_v33, %v1728_v30 }
 0x293   : > { %1739 = vst [vmem:[%s200_s16] sm:$0x1] %v1738_v12 }
 0x294   : > { %2182 = shalt.err (!%p2179_p4)
}
 0x295   : > { %s2183_s30 = scalar_lea.hbm %s1751_s5, 16  ;;  %s2187_s17 = scalar_lea.hbm %s4334_s2, 32 }
 0x296   : > { %p2184_p9 = scmp.ne.s32.totalorder %s1751_s5, %s2183_s30  ;;  %p2188_p5 = scmp.lt.s32.totalorder %s1751_s5, %s4334_s2 }
 0x297   : > { %p2189_p8 = scmp.lt.s32.totalorder %s2187_s17, %s2183_s30 }
 0x298   : > { %p2185_p11 = pnand %p2184_p9, %p4672_p1 }
 0x299   : > { %p2190_p6 = por %p2189_p8, %p2188_p5 }
 0x29a   : > { %p2186_p3 = pneg %p2185_p11 }
 0x29c   : > { %p2191_p13 = pnand %p2190_p6, %p2186_p3 }
 0x29e   : > { %2194 = shalt.err (!%p2191_p13)
}
 0x29f   : > { %1921 = dma.vmem_to_hbm [thread:$0]  (%p4672_p1), %s1754_s27, 16, %s1751_s5, %s1741_s22  }
 0x2a0 PF: > { %s1765_s26 = sand.u32 1, %s2225_s9   ;;  %p4673_p12 = scmp.ne.s32.totalorder %s4449_s21, 0 }
 0x2a1   : > { %p4674_p7 = scmp.ge.s32.totalorder %s2237_s12, 2  ;;  %s1766_s19 = scalar_lea.sflag [#allocation4], %s1765_s26 }
 0x2a3   : > { %p1931_p10 = pnand %p4674_p7, %p4673_p12 }
 0x2a5   : > { %p1932_p0 = pneg %p1931_p10 }
 0x2a7   : > { %2220 = dma.done.wait (%p1932_p0), %s1766_s19, 16  }
 0x2a8   : > { %2222 = vsyncadd (%p1932_p0), %s1766_s19, 4294967280  ;;  %p18_p2 = scmp.ge.s32.totalorder %s2287_s15, 4   ;;  %s4675_s9 = smov %s2229_s10 }
 0x2a9   : > { %s4676_s10 = smov %s2233_s11  ;;  %s4677_s11 = smov %s2299_s18 }
 0x2aa   : > { %s4678_s12 = smov %s2287_s15  ;;  %20 = sbr.rel (!%p18_p2) target bundleno = 7 (0x7), region = 106 }
 0x2af   :  { %1770 = vsyncpa [#allocation3], 1 }
 0x2b0   :  { %1772 = vsyncpa [#allocation3 + $0x1], 1 }
 0x2b1   :  { %1773 = vsyncpa [#allocation6], 1 }
 0x2b2   :  { %1775 = vsyncpa [#allocation6 + $0x1], 1 }
 0x2b3   :  { %1776 = vsyncpa [#allocation4], 1 }
 0x2b4   :  { %1778 = vsyncpa [#allocation4 + $0x1], 1 }

</bundles_post_ra>
